<compile_context>
chip_gen: v7x
topology: tpu7x:2x2x1
jax: 0.10.0
libtpu: 0.0.40
codegen_flags: <defaults>
</compile_context>

<pallas_src>
import functools

import jax
import jax.numpy as jnp
from jax.experimental import pallas as pl
from jax.experimental.pallas import tpu as pltpu


N_TUNNEL = 5  # number of CSTResNext(64) blocks in CST's tunnel


def _lrelu(v):
    # leaky_relu(0.2) — matches F.leaky_relu(v, 0.2)
    return jnp.where(v > 0, v, 0.2 * v)


def _cst_kernel(x_ref,
                w0_ref, b0_ref, w1_ref, b1_ref, w2_ref, b2_ref,
                wr_ref, wc_ref, bc_ref, we_ref,
                w3_ref, b3_ref, w4_ref, b4_ref, w5_ref, b5_ref,
                o_ref):
    # x_ref: (1, 3, T) pixel tile — channels on sublanes, pixels on lanes.
    x = x_ref[0]                                               # (3, T)

    def mm(w, h):
        return jnp.dot(w, h, preferred_element_type=jnp.float32)

    # stem: 3 -> 32 -> 64 -> 64, each followed by leaky_relu(0.2)
    h = _lrelu(mm(w0_ref[...], x) + b0_ref[...])               # (32, T)
    h = _lrelu(mm(w1_ref[...], h) + b1_ref[...])               # (64, T)
    h = _lrelu(mm(w2_ref[...], h) + b2_ref[...])               # (64, T)

    # tunnel: 5 x CSTResNext(64): 64 -> 32 -> 32 -> 64 + residual (unrolled)
    for i in range(N_TUNNEL):
        r = _lrelu(mm(wr_ref[i], h))                           # (32, T) reduce, no bias
        r = _lrelu(mm(wc_ref[i], r) + bc_ref[i])               # (32, T) conv,  bias
        r = mm(we_ref[i], r)                                   # (64, T) expand, no bias
        h = h + r                                              # residual add

    # head: 64 -> 64 -> 32 -> 3, final tanh
    h = _lrelu(mm(w3_ref[...], h) + b3_ref[...])               # (64, T)
    h = _lrelu(mm(w4_ref[...], h) + b4_ref[...])               # (32, T)
    h = mm(w5_ref[...], h) + b5_ref[...]                       # (3, T)

    o_ref[0] = jnp.tanh(h).astype(o_ref.dtype)


def _round_up(a, b):
    return ((a + b - 1) // b) * b


@functools.partial(jax.jit, static_argnames=("tile_hw",))
def cst_pallas(x, params, *, tile_hw=1024):
    """Forward of CST.

    x:      (N, 3, H, W) float32 (NCHW, kept native — no layout transposes)
    params: dict of 1x1-conv weights (C_out, C_in) and biases (C_out,);
            tunnel weights stacked along a leading axis of size N_TUNNEL.
    """
    N, C_in, H, W = x.shape
    HW = H * W

    # Lane-dense pixel tile: multiple of 128, 512-1024 preferred for the HBM
    # roofline, capped at the (128-rounded) image size for small inputs.
    t = min(tile_hw, _round_up(HW, 128))
    hw_pad = _round_up(HW, t)

    x3 = x.reshape(N, C_in, HW)            # free: NCHW is already contiguous
    if hw_pad != HW:                       # ragged last tile -> zero-pad pixels
        x3 = jnp.pad(x3, ((0, 0), (0, 0), (0, hw_pad - HW)))

    # W @ X orientation: conv weights used as-is; biases as (C, 1) columns so
    # the in-kernel add is a lane broadcast (no XLU work).
    col = lambda b: b.reshape(-1, 1)
    weights = (
        params["w0"], col(params["b0"]),
        params["w1"], col(params["b1"]),
        params["w2"], col(params["b2"]),
        params["wr"], params["wc"], params["bc"].reshape(N_TUNNEL, -1, 1), params["we"],
        params["w3"], col(params["b3"]),
        params["w4"], col(params["b4"]),
        params["w5"], col(params["b5"]),
    )

    grid = (N, hw_pad // t)

    def x_map(n, j):
        return (n, 0, j)

    def resident(w):
        # Full (tiny) weight resident in VMEM; same block every grid step.
        if w.ndim == 2:
            return pl.BlockSpec(w.shape, lambda n, j: (0, 0))
        return pl.BlockSpec(w.shape, lambda n, j: (0, 0, 0))

    out3 = pl.pallas_call(
        _cst_kernel,
        out_shape=jax.ShapeDtypeStruct((N, C_in, hw_pad), x.dtype),
        grid_spec=pltpu.PrefetchScalarGridSpec(
            num_scalar_prefetch=0,
            grid=grid,
            in_specs=[pl.BlockSpec((1, C_in, t), x_map)]
                     + [resident(w) for w in weights],
            out_specs=pl.BlockSpec((1, C_in, t), x_map),
        ),
        compiler_params=pltpu.CompilerParams(
            # Both grid axes are independent -> megacore sharding on v7x.
            dimension_semantics=("parallel", "parallel"),
        ),
    )(x3, *weights)

    if hw_pad != HW:
        out3 = out3[:, :, :HW]
    return out3.reshape(N, C_in, H, W)


def _reference(x, params):
    # Pure-JAX reference of the PyTorch CST forward (1x1 convs as einsums).
    def conv1x1(h, w, b=None):
        out = jnp.einsum("nchw,oc->nohw", h, w)
        if b is not None:
            out = out + b[None, :, None, None]
        return out

    h = _lrelu(conv1x1(x, params["w0"], params["b0"]))
    h = _lrelu(conv1x1(h, params["w1"], params["b1"]))
    h = _lrelu(conv1x1(h, params["w2"], params["b2"]))
    for i in range(N_TUNNEL):
        r = _lrelu(conv1x1(h, params["wr"][i]))
        r = _lrelu(conv1x1(r, params["wc"][i], params["bc"][i]))
        r = conv1x1(r, params["we"][i])
        h = h + r
    h = _lrelu(conv1x1(h, params["w3"], params["b3"]))
    h = _lrelu(conv1x1(h, params["w4"], params["b4"]))
    h = conv1x1(h, params["w5"], params["b5"])
    return jnp.tanh(h)


if __name__ == "__main__":
    key = jax.random.PRNGKey(0)
    N, H, W = 2, 16, 16               # CST input is a 3-channel image
    C0, C1, C2 = 3, 32, 64            # channel widths from the CST module
    D = C2 // 2                       # bottleneck width of CSTResNext(64)

    def rnd(k, shape, scale=0.1):
        return jax.random.normal(k, shape, dtype=jnp.float32) * scale

    ks = jax.random.split(key, 17)
    x = jax.random.normal(ks[0], (N, C0, H, W), dtype=jnp.float32)
    params = {
        # model[0]: Conv2d(3, 32, 1)
        "w0": rnd(ks[1], (C1, C0)), "b0": rnd(ks[2], (C1,)),
        # model[2]: Conv2d(32, 64, 1)
        "w1": rnd(ks[3], (C2, C1)), "b1": rnd(ks[4], (C2,)),
        # model[4]: Conv2d(64, 64, 1)
        "w2": rnd(ks[5], (C2, C2)), "b2": rnd(ks[6], (C2,)),
        # tunnel: 5 x CSTResNext(64); per-block weights stacked on axis 0
        "wr": rnd(ks[7], (N_TUNNEL, D, C2)),     # conv_reduce (no bias)
        "wc": rnd(ks[8], (N_TUNNEL, D, D)),      # conv_conv
        "bc": rnd(ks[9], (N_TUNNEL, D)),         # conv_conv bias
        "we": rnd(ks[10], (N_TUNNEL, C2, D)),    # conv_expand (no bias)
        # model[7]: Conv2d(64, 64, 1)
        "w3": rnd(ks[11], (C2, C2)), "b3": rnd(ks[12], (C2,)),
        # model[9]: Conv2d(64, 32, 1)
        "w4": rnd(ks[13], (C1, C2)), "b4": rnd(ks[14], (C1,)),
        # model[11]: Conv2d(32, 3, 1)
        "w5": rnd(ks[15], (C0, C1)), "b5": rnd(ks[16], (C0,)),
    }

    out = cst_pallas(x, params)
    out = jax.block_until_ready(out)

    ref = _reference(x, params)
    assert out.shape == (N, C0, H, W)
    err = jnp.max(jnp.abs(out - ref))
    assert err < 1e-4, f"mismatch vs reference: {err}"

    print("KERNEL_OK")
</pallas_src>

<mosaic_0001>
module attributes {stable_mosaic.version = 11 : i64} {
  func.func @_cst_kernel(%arg0: i32, %arg1: i32, %arg2: memref<1x3x256xf32, #tpu.memory_space<vmem>>, %arg3: memref<32x3xf32, #tpu.memory_space<vmem>>, %arg4: memref<32x1xf32, #tpu.memory_space<vmem>>, %arg5: memref<64x32xf32, #tpu.memory_space<vmem>>, %arg6: memref<64x1xf32, #tpu.memory_space<vmem>>, %arg7: memref<64x64xf32, #tpu.memory_space<vmem>>, %arg8: memref<64x1xf32, #tpu.memory_space<vmem>>, %arg9: memref<5x32x64xf32, #tpu.memory_space<vmem>>, %arg10: memref<5x32x32xf32, #tpu.memory_space<vmem>>, %arg11: memref<5x32x1xf32, #tpu.memory_space<vmem>>, %arg12: memref<5x64x32xf32, #tpu.memory_space<vmem>>, %arg13: memref<64x64xf32, #tpu.memory_space<vmem>>, %arg14: memref<64x1xf32, #tpu.memory_space<vmem>>, %arg15: memref<32x64xf32, #tpu.memory_space<vmem>>, %arg16: memref<32x1xf32, #tpu.memory_space<vmem>>, %arg17: memref<3x32xf32, #tpu.memory_space<vmem>>, %arg18: memref<3x1xf32, #tpu.memory_space<vmem>>, %arg19: memref<1x3x256xf32, #tpu.memory_space<vmem>>) attributes {dimension_semantics = [#tpu.dimension_semantics<parallel>, #tpu.dimension_semantics<parallel>], iteration_bounds = array<i64: 2, 1>, scalar_prefetch = 0 : i64, scratch_operands = 0 : i64, tpu.core_type = #tpu.core_type<tc>, window_params = [{transform_indices = @transform_0, window_bounds = array<i64: 1, 3, 256>}, {pipeline_mode = #tpu.pipeline_mode<synchronous>, transform_indices = @transform_1, window_bounds = array<i64: 32, 3>}, {pipeline_mode = #tpu.pipeline_mode<synchronous>, transform_indices = @transform_2, window_bounds = array<i64: 32, 1>}, {pipeline_mode = #tpu.pipeline_mode<synchronous>, transform_indices = @transform_3, window_bounds = array<i64: 64, 32>}, {pipeline_mode = #tpu.pipeline_mode<synchronous>, transform_indices = @transform_4, window_bounds = array<i64: 64, 1>}, {pipeline_mode = #tpu.pipeline_mode<synchronous>, transform_indices = @transform_5, window_bounds = array<i64: 64, 64>}, {pipeline_mode = #tpu.pipeline_mode<synchronous>, transform_indices = @transform_6, window_bounds = array<i64: 64, 1>}, {pipeline_mode = #tpu.pipeline_mode<synchronous>, transform_indices = @transform_7, window_bounds = array<i64: 5, 32, 64>}, {pipeline_mode = #tpu.pipeline_mode<synchronous>, transform_indices = @transform_8, window_bounds = array<i64: 5, 32, 32>}, {pipeline_mode = #tpu.pipeline_mode<synchronous>, transform_indices = @transform_9, window_bounds = array<i64: 5, 32, 1>}, {pipeline_mode = #tpu.pipeline_mode<synchronous>, transform_indices = @transform_10, window_bounds = array<i64: 5, 64, 32>}, {pipeline_mode = #tpu.pipeline_mode<synchronous>, transform_indices = @transform_11, window_bounds = array<i64: 64, 64>}, {pipeline_mode = #tpu.pipeline_mode<synchronous>, transform_indices = @transform_12, window_bounds = array<i64: 64, 1>}, {pipeline_mode = #tpu.pipeline_mode<synchronous>, transform_indices = @transform_13, window_bounds = array<i64: 32, 64>}, {pipeline_mode = #tpu.pipeline_mode<synchronous>, transform_indices = @transform_14, window_bounds = array<i64: 32, 1>}, {pipeline_mode = #tpu.pipeline_mode<synchronous>, transform_indices = @transform_15, window_bounds = array<i64: 3, 32>}, {pipeline_mode = #tpu.pipeline_mode<synchronous>, transform_indices = @transform_16, window_bounds = array<i64: 3, 1>}, {transform_indices = @transform_17, window_bounds = array<i64: 1, 3, 256>}]} {
    %c0 = arith.constant 0 : index
    %c0_0 = arith.constant 0 : index
    %c0_1 = arith.constant 0 : index
    %0 = vector.load %arg2[%c0, %c0_0, %c0_1] : memref<1x3x256xf32, #tpu.memory_space<vmem>>, vector<1x3x256xf32>
    %1 = vector.shape_cast %0 : vector<1x3x256xf32> to vector<3x256xf32>
    %c0_2 = arith.constant 0 : index
    %c0_3 = arith.constant 0 : index
    %2 = vector.load %arg3[%c0_2, %c0_3] : memref<32x3xf32, #tpu.memory_space<vmem>>, vector<32x3xf32>
    %cst = arith.constant dense<0.000000e+00> : vector<32x256xf32>
    %3 = tpu.matmul %2, %1, %cst {dimension_numbers = #tpu.dot_dimension_numbers<[1], [0], [0], [1], [0, 0, 1, 1], [], []>} : vector<32x3xf32>, vector<3x256xf32>, vector<32x256xf32> -> vector<32x256xf32>
    %c0_4 = arith.constant 0 : index
    %c0_5 = arith.constant 0 : index
    %4 = vector.load %arg4[%c0_4, %c0_5] : memref<32x1xf32, #tpu.memory_space<vmem>>, vector<32x1xf32>
    %5 = vector.broadcast %4 : vector<32x1xf32> to vector<32x256xf32>
    %6 = arith.addf %3, %5 : vector<32x256xf32>
    %cst_6 = arith.constant 0.000000e+00 : f32
    %7 = vector.broadcast %cst_6 : f32 to vector<32x256xf32>
    %8 = arith.cmpf ogt, %6, %7 : vector<32x256xf32>
    %cst_7 = arith.constant 2.000000e-01 : f32
    %9 = vector.broadcast %cst_7 : f32 to vector<32x256xf32>
    %10 = arith.mulf %9, %6 : vector<32x256xf32>
    %11 = arith.select %8, %6, %10 : vector<32x256xi1>, vector<32x256xf32>
    %c0_8 = arith.constant 0 : index
    %c0_9 = arith.constant 0 : index
    %12 = vector.load %arg5[%c0_8, %c0_9] : memref<64x32xf32, #tpu.memory_space<vmem>>, vector<64x32xf32>
    %cst_10 = arith.constant dense<0.000000e+00> : vector<64x256xf32>
    %13 = tpu.matmul %12, %11, %cst_10 {dimension_numbers = #tpu.dot_dimension_numbers<[1], [0], [0], [1], [0, 0, 1, 1], [], []>} : vector<64x32xf32>, vector<32x256xf32>, vector<64x256xf32> -> vector<64x256xf32>
    %c0_11 = arith.constant 0 : index
    %c0_12 = arith.constant 0 : index
    %14 = vector.load %arg6[%c0_11, %c0_12] : memref<64x1xf32, #tpu.memory_space<vmem>>, vector<64x1xf32>
    %15 = vector.broadcast %14 : vector<64x1xf32> to vector<64x256xf32>
    %16 = arith.addf %13, %15 : vector<64x256xf32>
    %cst_13 = arith.constant 0.000000e+00 : f32
    %17 = vector.broadcast %cst_13 : f32 to vector<64x256xf32>
    %18 = arith.cmpf ogt, %16, %17 : vector<64x256xf32>
    %cst_14 = arith.constant 2.000000e-01 : f32
    %19 = vector.broadcast %cst_14 : f32 to vector<64x256xf32>
    %20 = arith.mulf %19, %16 : vector<64x256xf32>
    %21 = arith.select %18, %16, %20 : vector<64x256xi1>, vector<64x256xf32>
    %c0_15 = arith.constant 0 : index
    %c0_16 = arith.constant 0 : index
    %22 = vector.load %arg7[%c0_15, %c0_16] : memref<64x64xf32, #tpu.memory_space<vmem>>, vector<64x64xf32>
    %cst_17 = arith.constant dense<0.000000e+00> : vector<64x256xf32>
    %23 = tpu.matmul %22, %21, %cst_17 {dimension_numbers = #tpu.dot_dimension_numbers<[1], [0], [0], [1], [0, 0, 1, 1], [], []>} : vector<64x64xf32>, vector<64x256xf32>, vector<64x256xf32> -> vector<64x256xf32>
    %c0_18 = arith.constant 0 : index
    %c0_19 = arith.constant 0 : index
    %24 = vector.load %arg8[%c0_18, %c0_19] : memref<64x1xf32, #tpu.memory_space<vmem>>, vector<64x1xf32>
    %25 = vector.broadcast %24 : vector<64x1xf32> to vector<64x256xf32>
    %26 = arith.addf %23, %25 : vector<64x256xf32>
    %cst_20 = arith.constant 0.000000e+00 : f32
    %27 = vector.broadcast %cst_20 : f32 to vector<64x256xf32>
    %28 = arith.cmpf ogt, %26, %27 : vector<64x256xf32>
    %cst_21 = arith.constant 2.000000e-01 : f32
    %29 = vector.broadcast %cst_21 : f32 to vector<64x256xf32>
    %30 = arith.mulf %29, %26 : vector<64x256xf32>
    %31 = arith.select %28, %26, %30 : vector<64x256xi1>, vector<64x256xf32>
    %c0_22 = arith.constant 0 : index
    %c0_23 = arith.constant 0 : index
    %c0_24 = arith.constant 0 : index
    %32 = vector.load %arg9[%c0_22, %c0_23, %c0_24] : memref<5x32x64xf32, #tpu.memory_space<vmem>>, vector<1x32x64xf32>
    %33 = vector.shape_cast %32 : vector<1x32x64xf32> to vector<32x64xf32>
    %cst_25 = arith.constant dense<0.000000e+00> : vector<32x256xf32>
    %34 = tpu.matmul %33, %31, %cst_25 {dimension_numbers = #tpu.dot_dimension_numbers<[1], [0], [0], [1], [0, 0, 1, 1], [], []>} : vector<32x64xf32>, vector<64x256xf32>, vector<32x256xf32> -> vector<32x256xf32>
    %cst_26 = arith.constant 0.000000e+00 : f32
    %35 = vector.broadcast %cst_26 : f32 to vector<32x256xf32>
    %36 = arith.cmpf ogt, %34, %35 : vector<32x256xf32>
    %cst_27 = arith.constant 2.000000e-01 : f32
    %37 = vector.broadcast %cst_27 : f32 to vector<32x256xf32>
    %38 = arith.mulf %37, %34 : vector<32x256xf32>
    %39 = arith.select %36, %34, %38 : vector<32x256xi1>, vector<32x256xf32>
    %c0_28 = arith.constant 0 : index
    %c0_29 = arith.constant 0 : index
    %c0_30 = arith.constant 0 : index
    %40 = vector.load %arg10[%c0_28, %c0_29, %c0_30] : memref<5x32x32xf32, #tpu.memory_space<vmem>>, vector<1x32x32xf32>
    %41 = vector.shape_cast %40 : vector<1x32x32xf32> to vector<32x32xf32>
    %cst_31 = arith.constant dense<0.000000e+00> : vector<32x256xf32>
    %42 = tpu.matmul %41, %39, %cst_31 {dimension_numbers = #tpu.dot_dimension_numbers<[1], [0], [0], [1], [0, 0, 1, 1], [], []>} : vector<32x32xf32>, vector<32x256xf32>, vector<32x256xf32> -> vector<32x256xf32>
    %c0_32 = arith.constant 0 : index
    %c0_33 = arith.constant 0 : index
    %c0_34 = arith.constant 0 : index
    %43 = vector.load %arg11[%c0_32, %c0_33, %c0_34] : memref<5x32x1xf32, #tpu.memory_space<vmem>>, vector<1x32x1xf32>
    %44 = vector.shape_cast %43 : vector<1x32x1xf32> to vector<32x1xf32>
    %45 = vector.broadcast %44 : vector<32x1xf32> to vector<32x256xf32>
    %46 = arith.addf %42, %45 : vector<32x256xf32>
    %cst_35 = arith.constant 0.000000e+00 : f32
    %47 = vector.broadcast %cst_35 : f32 to vector<32x256xf32>
    %48 = arith.cmpf ogt, %46, %47 : vector<32x256xf32>
    %cst_36 = arith.constant 2.000000e-01 : f32
    %49 = vector.broadcast %cst_36 : f32 to vector<32x256xf32>
    %50 = arith.mulf %49, %46 : vector<32x256xf32>
    %51 = arith.select %48, %46, %50 : vector<32x256xi1>, vector<32x256xf32>
    %c0_37 = arith.constant 0 : index
    %c0_38 = arith.constant 0 : index
    %c0_39 = arith.constant 0 : index
    %52 = vector.load %arg12[%c0_37, %c0_38, %c0_39] : memref<5x64x32xf32, #tpu.memory_space<vmem>>, vector<1x64x32xf32>
    %53 = vector.shape_cast %52 : vector<1x64x32xf32> to vector<64x32xf32>
    %cst_40 = arith.constant dense<0.000000e+00> : vector<64x256xf32>
    %54 = tpu.matmul %53, %51, %cst_40 {dimension_numbers = #tpu.dot_dimension_numbers<[1], [0], [0], [1], [0, 0, 1, 1], [], []>} : vector<64x32xf32>, vector<32x256xf32>, vector<64x256xf32> -> vector<64x256xf32>
    %55 = arith.addf %31, %54 : vector<64x256xf32>
    %c1 = arith.constant 1 : index
    %c0_41 = arith.constant 0 : index
    %c0_42 = arith.constant 0 : index
    %56 = vector.load %arg9[%c1, %c0_41, %c0_42] : memref<5x32x64xf32, #tpu.memory_space<vmem>>, vector<1x32x64xf32>
    %57 = vector.shape_cast %56 : vector<1x32x64xf32> to vector<32x64xf32>
    %cst_43 = arith.constant dense<0.000000e+00> : vector<32x256xf32>
    %58 = tpu.matmul %57, %55, %cst_43 {dimension_numbers = #tpu.dot_dimension_numbers<[1], [0], [0], [1], [0, 0, 1, 1], [], []>} : vector<32x64xf32>, vector<64x256xf32>, vector<32x256xf32> -> vector<32x256xf32>
    %cst_44 = arith.constant 0.000000e+00 : f32
    %59 = vector.broadcast %cst_44 : f32 to vector<32x256xf32>
    %60 = arith.cmpf ogt, %58, %59 : vector<32x256xf32>
    %cst_45 = arith.constant 2.000000e-01 : f32
    %61 = vector.broadcast %cst_45 : f32 to vector<32x256xf32>
    %62 = arith.mulf %61, %58 : vector<32x256xf32>
    %63 = arith.select %60, %58, %62 : vector<32x256xi1>, vector<32x256xf32>
    %c1_46 = arith.constant 1 : index
    %c0_47 = arith.constant 0 : index
    %c0_48 = arith.constant 0 : index
    %64 = vector.load %arg10[%c1_46, %c0_47, %c0_48] : memref<5x32x32xf32, #tpu.memory_space<vmem>>, vector<1x32x32xf32>
    %65 = vector.shape_cast %64 : vector<1x32x32xf32> to vector<32x32xf32>
    %cst_49 = arith.constant dense<0.000000e+00> : vector<32x256xf32>
    %66 = tpu.matmul %65, %63, %cst_49 {dimension_numbers = #tpu.dot_dimension_numbers<[1], [0], [0], [1], [0, 0, 1, 1], [], []>} : vector<32x32xf32>, vector<32x256xf32>, vector<32x256xf32> -> vector<32x256xf32>
    %c1_50 = arith.constant 1 : index
    %c0_51 = arith.constant 0 : index
    %c0_52 = arith.constant 0 : index
    %67 = vector.load %arg11[%c1_50, %c0_51, %c0_52] : memref<5x32x1xf32, #tpu.memory_space<vmem>>, vector<1x32x1xf32>
    %68 = vector.shape_cast %67 : vector<1x32x1xf32> to vector<32x1xf32>
    %69 = vector.broadcast %68 : vector<32x1xf32> to vector<32x256xf32>
    %70 = arith.addf %66, %69 : vector<32x256xf32>
    %cst_53 = arith.constant 0.000000e+00 : f32
    %71 = vector.broadcast %cst_53 : f32 to vector<32x256xf32>
    %72 = arith.cmpf ogt, %70, %71 : vector<32x256xf32>
    %cst_54 = arith.constant 2.000000e-01 : f32
    %73 = vector.broadcast %cst_54 : f32 to vector<32x256xf32>
    %74 = arith.mulf %73, %70 : vector<32x256xf32>
    %75 = arith.select %72, %70, %74 : vector<32x256xi1>, vector<32x256xf32>
    %c1_55 = arith.constant 1 : index
    %c0_56 = arith.constant 0 : index
    %c0_57 = arith.constant 0 : index
    %76 = vector.load %arg12[%c1_55, %c0_56, %c0_57] : memref<5x64x32xf32, #tpu.memory_space<vmem>>, vector<1x64x32xf32>
    %77 = vector.shape_cast %76 : vector<1x64x32xf32> to vector<64x32xf32>
    %cst_58 = arith.constant dense<0.000000e+00> : vector<64x256xf32>
    %78 = tpu.matmul %77, %75, %cst_58 {dimension_numbers = #tpu.dot_dimension_numbers<[1], [0], [0], [1], [0, 0, 1, 1], [], []>} : vector<64x32xf32>, vector<32x256xf32>, vector<64x256xf32> -> vector<64x256xf32>
    %79 = arith.addf %55, %78 : vector<64x256xf32>
    %c2 = arith.constant 2 : index
    %c0_59 = arith.constant 0 : index
    %c0_60 = arith.constant 0 : index
    %80 = vector.load %arg9[%c2, %c0_59, %c0_60] : memref<5x32x64xf32, #tpu.memory_space<vmem>>, vector<1x32x64xf32>
    %81 = vector.shape_cast %80 : vector<1x32x64xf32> to vector<32x64xf32>
    %cst_61 = arith.constant dense<0.000000e+00> : vector<32x256xf32>
    %82 = tpu.matmul %81, %79, %cst_61 {dimension_numbers = #tpu.dot_dimension_numbers<[1], [0], [0], [1], [0, 0, 1, 1], [], []>} : vector<32x64xf32>, vector<64x256xf32>, vector<32x256xf32> -> vector<32x256xf32>
    %cst_62 = arith.constant 0.000000e+00 : f32
    %83 = vector.broadcast %cst_62 : f32 to vector<32x256xf32>
    %84 = arith.cmpf ogt, %82, %83 : vector<32x256xf32>
    %cst_63 = arith.constant 2.000000e-01 : f32
    %85 = vector.broadcast %cst_63 : f32 to vector<32x256xf32>
    %86 = arith.mulf %85, %82 : vector<32x256xf32>
    %87 = arith.select %84, %82, %86 : vector<32x256xi1>, vector<32x256xf32>
    %c2_64 = arith.constant 2 : index
    %c0_65 = arith.constant 0 : index
    %c0_66 = arith.constant 0 : index
    %88 = vector.load %arg10[%c2_64, %c0_65, %c0_66] : memref<5x32x32xf32, #tpu.memory_space<vmem>>, vector<1x32x32xf32>
    %89 = vector.shape_cast %88 : vector<1x32x32xf32> to vector<32x32xf32>
    %cst_67 = arith.constant dense<0.000000e+00> : vector<32x256xf32>
    %90 = tpu.matmul %89, %87, %cst_67 {dimension_numbers = #tpu.dot_dimension_numbers<[1], [0], [0], [1], [0, 0, 1, 1], [], []>} : vector<32x32xf32>, vector<32x256xf32>, vector<32x256xf32> -> vector<32x256xf32>
    %c2_68 = arith.constant 2 : index
    %c0_69 = arith.constant 0 : index
    %c0_70 = arith.constant 0 : index
    %91 = vector.load %arg11[%c2_68, %c0_69, %c0_70] : memref<5x32x1xf32, #tpu.memory_space<vmem>>, vector<1x32x1xf32>
    %92 = vector.shape_cast %91 : vector<1x32x1xf32> to vector<32x1xf32>
    %93 = vector.broadcast %92 : vector<32x1xf32> to vector<32x256xf32>
    %94 = arith.addf %90, %93 : vector<32x256xf32>
    %cst_71 = arith.constant 0.000000e+00 : f32
    %95 = vector.broadcast %cst_71 : f32 to vector<32x256xf32>
    %96 = arith.cmpf ogt, %94, %95 : vector<32x256xf32>
    %cst_72 = arith.constant 2.000000e-01 : f32
    %97 = vector.broadcast %cst_72 : f32 to vector<32x256xf32>
    %98 = arith.mulf %97, %94 : vector<32x256xf32>
    %99 = arith.select %96, %94, %98 : vector<32x256xi1>, vector<32x256xf32>
    %c2_73 = arith.constant 2 : index
    %c0_74 = arith.constant 0 : index
    %c0_75 = arith.constant 0 : index
    %100 = vector.load %arg12[%c2_73, %c0_74, %c0_75] : memref<5x64x32xf32, #tpu.memory_space<vmem>>, vector<1x64x32xf32>
    %101 = vector.shape_cast %100 : vector<1x64x32xf32> to vector<64x32xf32>
    %cst_76 = arith.constant dense<0.000000e+00> : vector<64x256xf32>
    %102 = tpu.matmul %101, %99, %cst_76 {dimension_numbers = #tpu.dot_dimension_numbers<[1], [0], [0], [1], [0, 0, 1, 1], [], []>} : vector<64x32xf32>, vector<32x256xf32>, vector<64x256xf32> -> vector<64x256xf32>
    %103 = arith.addf %79, %102 : vector<64x256xf32>
    %c3 = arith.constant 3 : index
    %c0_77 = arith.constant 0 : index
    %c0_78 = arith.constant 0 : index
    %104 = vector.load %arg9[%c3, %c0_77, %c0_78] : memref<5x32x64xf32, #tpu.memory_space<vmem>>, vector<1x32x64xf32>
    %105 = vector.shape_cast %104 : vector<1x32x64xf32> to vector<32x64xf32>
    %cst_79 = arith.constant dense<0.000000e+00> : vector<32x256xf32>
    %106 = tpu.matmul %105, %103, %cst_79 {dimension_numbers = #tpu.dot_dimension_numbers<[1], [0], [0], [1], [0, 0, 1, 1], [], []>} : vector<32x64xf32>, vector<64x256xf32>, vector<32x256xf32> -> vector<32x256xf32>
    %cst_80 = arith.constant 0.000000e+00 : f32
    %107 = vector.broadcast %cst_80 : f32 to vector<32x256xf32>
    %108 = arith.cmpf ogt, %106, %107 : vector<32x256xf32>
    %cst_81 = arith.constant 2.000000e-01 : f32
    %109 = vector.broadcast %cst_81 : f32 to vector<32x256xf32>
    %110 = arith.mulf %109, %106 : vector<32x256xf32>
    %111 = arith.select %108, %106, %110 : vector<32x256xi1>, vector<32x256xf32>
    %c3_82 = arith.constant 3 : index
    %c0_83 = arith.constant 0 : index
    %c0_84 = arith.constant 0 : index
    %112 = vector.load %arg10[%c3_82, %c0_83, %c0_84] : memref<5x32x32xf32, #tpu.memory_space<vmem>>, vector<1x32x32xf32>
    %113 = vector.shape_cast %112 : vector<1x32x32xf32> to vector<32x32xf32>
    %cst_85 = arith.constant dense<0.000000e+00> : vector<32x256xf32>
    %114 = tpu.matmul %113, %111, %cst_85 {dimension_numbers = #tpu.dot_dimension_numbers<[1], [0], [0], [1], [0, 0, 1, 1], [], []>} : vector<32x32xf32>, vector<32x256xf32>, vector<32x256xf32> -> vector<32x256xf32>
    %c3_86 = arith.constant 3 : index
    %c0_87 = arith.constant 0 : index
    %c0_88 = arith.constant 0 : index
    %115 = vector.load %arg11[%c3_86, %c0_87, %c0_88] : memref<5x32x1xf32, #tpu.memory_space<vmem>>, vector<1x32x1xf32>
    %116 = vector.shape_cast %115 : vector<1x32x1xf32> to vector<32x1xf32>
    %117 = vector.broadcast %116 : vector<32x1xf32> to vector<32x256xf32>
    %118 = arith.addf %114, %117 : vector<32x256xf32>
    %cst_89 = arith.constant 0.000000e+00 : f32
    %119 = vector.broadcast %cst_89 : f32 to vector<32x256xf32>
    %120 = arith.cmpf ogt, %118, %119 : vector<32x256xf32>
    %cst_90 = arith.constant 2.000000e-01 : f32
    %121 = vector.broadcast %cst_90 : f32 to vector<32x256xf32>
    %122 = arith.mulf %121, %118 : vector<32x256xf32>
    %123 = arith.select %120, %118, %122 : vector<32x256xi1>, vector<32x256xf32>
    %c3_91 = arith.constant 3 : index
    %c0_92 = arith.constant 0 : index
    %c0_93 = arith.constant 0 : index
    %124 = vector.load %arg12[%c3_91, %c0_92, %c0_93] : memref<5x64x32xf32, #tpu.memory_space<vmem>>, vector<1x64x32xf32>
    %125 = vector.shape_cast %124 : vector<1x64x32xf32> to vector<64x32xf32>
    %cst_94 = arith.constant dense<0.000000e+00> : vector<64x256xf32>
    %126 = tpu.matmul %125, %123, %cst_94 {dimension_numbers = #tpu.dot_dimension_numbers<[1], [0], [0], [1], [0, 0, 1, 1], [], []>} : vector<64x32xf32>, vector<32x256xf32>, vector<64x256xf32> -> vector<64x256xf32>
    %127 = arith.addf %103, %126 : vector<64x256xf32>
    %c4 = arith.constant 4 : index
    %c0_95 = arith.constant 0 : index
    %c0_96 = arith.constant 0 : index
    %128 = vector.load %arg9[%c4, %c0_95, %c0_96] : memref<5x32x64xf32, #tpu.memory_space<vmem>>, vector<1x32x64xf32>
    %129 = vector.shape_cast %128 : vector<1x32x64xf32> to vector<32x64xf32>
    %cst_97 = arith.constant dense<0.000000e+00> : vector<32x256xf32>
    %130 = tpu.matmul %129, %127, %cst_97 {dimension_numbers = #tpu.dot_dimension_numbers<[1], [0], [0], [1], [0, 0, 1, 1], [], []>} : vector<32x64xf32>, vector<64x256xf32>, vector<32x256xf32> -> vector<32x256xf32>
    %cst_98 = arith.constant 0.000000e+00 : f32
    %131 = vector.broadcast %cst_98 : f32 to vector<32x256xf32>
    %132 = arith.cmpf ogt, %130, %131 : vector<32x256xf32>
    %cst_99 = arith.constant 2.000000e-01 : f32
    %133 = vector.broadcast %cst_99 : f32 to vector<32x256xf32>
    %134 = arith.mulf %133, %130 : vector<32x256xf32>
    %135 = arith.select %132, %130, %134 : vector<32x256xi1>, vector<32x256xf32>
    %c4_100 = arith.constant 4 : index
    %c0_101 = arith.constant 0 : index
    %c0_102 = arith.constant 0 : index
    %136 = vector.load %arg10[%c4_100, %c0_101, %c0_102] : memref<5x32x32xf32, #tpu.memory_space<vmem>>, vector<1x32x32xf32>
    %137 = vector.shape_cast %136 : vector<1x32x32xf32> to vector<32x32xf32>
    %cst_103 = arith.constant dense<0.000000e+00> : vector<32x256xf32>
    %138 = tpu.matmul %137, %135, %cst_103 {dimension_numbers = #tpu.dot_dimension_numbers<[1], [0], [0], [1], [0, 0, 1, 1], [], []>} : vector<32x32xf32>, vector<32x256xf32>, vector<32x256xf32> -> vector<32x256xf32>
    %c4_104 = arith.constant 4 : index
    %c0_105 = arith.constant 0 : index
    %c0_106 = arith.constant 0 : index
    %139 = vector.load %arg11[%c4_104, %c0_105, %c0_106] : memref<5x32x1xf32, #tpu.memory_space<vmem>>, vector<1x32x1xf32>
    %140 = vector.shape_cast %139 : vector<1x32x1xf32> to vector<32x1xf32>
    %141 = vector.broadcast %140 : vector<32x1xf32> to vector<32x256xf32>
    %142 = arith.addf %138, %141 : vector<32x256xf32>
    %cst_107 = arith.constant 0.000000e+00 : f32
    %143 = vector.broadcast %cst_107 : f32 to vector<32x256xf32>
    %144 = arith.cmpf ogt, %142, %143 : vector<32x256xf32>
    %cst_108 = arith.constant 2.000000e-01 : f32
    %145 = vector.broadcast %cst_108 : f32 to vector<32x256xf32>
    %146 = arith.mulf %145, %142 : vector<32x256xf32>
    %147 = arith.select %144, %142, %146 : vector<32x256xi1>, vector<32x256xf32>
    %c4_109 = arith.constant 4 : index
    %c0_110 = arith.constant 0 : index
    %c0_111 = arith.constant 0 : index
    %148 = vector.load %arg12[%c4_109, %c0_110, %c0_111] : memref<5x64x32xf32, #tpu.memory_space<vmem>>, vector<1x64x32xf32>
    %149 = vector.shape_cast %148 : vector<1x64x32xf32> to vector<64x32xf32>
    %cst_112 = arith.constant dense<0.000000e+00> : vector<64x256xf32>
    %150 = tpu.matmul %149, %147, %cst_112 {dimension_numbers = #tpu.dot_dimension_numbers<[1], [0], [0], [1], [0, 0, 1, 1], [], []>} : vector<64x32xf32>, vector<32x256xf32>, vector<64x256xf32> -> vector<64x256xf32>
    %151 = arith.addf %127, %150 : vector<64x256xf32>
    %c0_113 = arith.constant 0 : index
    %c0_114 = arith.constant 0 : index
    %152 = vector.load %arg13[%c0_113, %c0_114] : memref<64x64xf32, #tpu.memory_space<vmem>>, vector<64x64xf32>
    %cst_115 = arith.constant dense<0.000000e+00> : vector<64x256xf32>
    %153 = tpu.matmul %152, %151, %cst_115 {dimension_numbers = #tpu.dot_dimension_numbers<[1], [0], [0], [1], [0, 0, 1, 1], [], []>} : vector<64x64xf32>, vector<64x256xf32>, vector<64x256xf32> -> vector<64x256xf32>
    %c0_116 = arith.constant 0 : index
    %c0_117 = arith.constant 0 : index
    %154 = vector.load %arg14[%c0_116, %c0_117] : memref<64x1xf32, #tpu.memory_space<vmem>>, vector<64x1xf32>
    %155 = vector.broadcast %154 : vector<64x1xf32> to vector<64x256xf32>
    %156 = arith.addf %153, %155 : vector<64x256xf32>
    %cst_118 = arith.constant 0.000000e+00 : f32
    %157 = vector.broadcast %cst_118 : f32 to vector<64x256xf32>
    %158 = arith.cmpf ogt, %156, %157 : vector<64x256xf32>
    %cst_119 = arith.constant 2.000000e-01 : f32
    %159 = vector.broadcast %cst_119 : f32 to vector<64x256xf32>
    %160 = arith.mulf %159, %156 : vector<64x256xf32>
    %161 = arith.select %158, %156, %160 : vector<64x256xi1>, vector<64x256xf32>
    %c0_120 = arith.constant 0 : index
    %c0_121 = arith.constant 0 : index
    %162 = vector.load %arg15[%c0_120, %c0_121] : memref<32x64xf32, #tpu.memory_space<vmem>>, vector<32x64xf32>
    %cst_122 = arith.constant dense<0.000000e+00> : vector<32x256xf32>
    %163 = tpu.matmul %162, %161, %cst_122 {dimension_numbers = #tpu.dot_dimension_numbers<[1], [0], [0], [1], [0, 0, 1, 1], [], []>} : vector<32x64xf32>, vector<64x256xf32>, vector<32x256xf32> -> vector<32x256xf32>
    %c0_123 = arith.constant 0 : index
    %c0_124 = arith.constant 0 : index
    %164 = vector.load %arg16[%c0_123, %c0_124] : memref<32x1xf32, #tpu.memory_space<vmem>>, vector<32x1xf32>
    %165 = vector.broadcast %164 : vector<32x1xf32> to vector<32x256xf32>
    %166 = arith.addf %163, %165 : vector<32x256xf32>
    %cst_125 = arith.constant 0.000000e+00 : f32
    %167 = vector.broadcast %cst_125 : f32 to vector<32x256xf32>
    %168 = arith.cmpf ogt, %166, %167 : vector<32x256xf32>
    %cst_126 = arith.constant 2.000000e-01 : f32
    %169 = vector.broadcast %cst_126 : f32 to vector<32x256xf32>
    %170 = arith.mulf %169, %166 : vector<32x256xf32>
    %171 = arith.select %168, %166, %170 : vector<32x256xi1>, vector<32x256xf32>
    %c0_127 = arith.constant 0 : index
    %c0_128 = arith.constant 0 : index
    %172 = vector.load %arg17[%c0_127, %c0_128] : memref<3x32xf32, #tpu.memory_space<vmem>>, vector<3x32xf32>
    %cst_129 = arith.constant dense<0.000000e+00> : vector<3x256xf32>
    %173 = tpu.matmul %172, %171, %cst_129 {dimension_numbers = #tpu.dot_dimension_numbers<[1], [0], [0], [1], [0, 0, 1, 1], [], []>} : vector<3x32xf32>, vector<32x256xf32>, vector<3x256xf32> -> vector<3x256xf32>
    %c0_130 = arith.constant 0 : index
    %c0_131 = arith.constant 0 : index
    %174 = vector.load %arg18[%c0_130, %c0_131] : memref<3x1xf32, #tpu.memory_space<vmem>>, vector<3x1xf32>
    %175 = vector.broadcast %174 : vector<3x1xf32> to vector<3x256xf32>
    %176 = arith.addf %173, %175 : vector<3x256xf32>
    %177 = math.tanh %176 : vector<3x256xf32>
    %c0_132 = arith.constant 0 : index
    %c0_133 = arith.constant 0 : index
    %c0_134 = arith.constant 0 : index
    %178 = vector.load %arg19[%c0_132, %c0_133, %c0_134] : memref<1x3x256xf32, #tpu.memory_space<vmem>>, vector<1x3x256xf32>
    %179 = vector.shape_cast %178 : vector<1x3x256xf32> to vector<3x256xf32>
    %180 = vector.shape_cast %177 : vector<3x256xf32> to vector<1x3x256xf32>
    tpu.vector_store %arg19[%c0_132, %c0_133, %c0_134], %180 {strides = array<i32>} : memref<1x3x256xf32, #tpu.memory_space<vmem>>, vector<1x3x256xf32>,
    return
  }
  func.func @transform_0(%arg0: i32, %arg1: i32) -> (i32, i32, i32) {
    %c0_i32 = arith.constant 0 : i32
    %c0_i32_0 = arith.constant 0 : i32
    return %arg0, %c0_i32, %arg1 : i32, i32, i32
  }
  func.func @transform_1(%arg0: i32, %arg1: i32) -> (i32, i32) {
    %c0_i32 = arith.constant 0 : i32
    %c0_i32_0 = arith.constant 0 : i32
    %c0_i32_1 = arith.constant 0 : i32
    return %c0_i32, %c0_i32_0 : i32, i32
  }
  func.func @transform_2(%arg0: i32, %arg1: i32) -> (i32, i32) {
    %c0_i32 = arith.constant 0 : i32
    %c0_i32_0 = arith.constant 0 : i32
    %c0_i32_1 = arith.constant 0 : i32
    return %c0_i32, %c0_i32_0 : i32, i32
  }
  func.func @transform_3(%arg0: i32, %arg1: i32) -> (i32, i32) {
    %c0_i32 = arith.constant 0 : i32
    %c0_i32_0 = arith.constant 0 : i32
    %c0_i32_1 = arith.constant 0 : i32
    return %c0_i32, %c0_i32_0 : i32, i32
  }
  func.func @transform_4(%arg0: i32, %arg1: i32) -> (i32, i32) {
    %c0_i32 = arith.constant 0 : i32
    %c0_i32_0 = arith.constant 0 : i32
    %c0_i32_1 = arith.constant 0 : i32
    return %c0_i32, %c0_i32_0 : i32, i32
  }
  func.func @transform_5(%arg0: i32, %arg1: i32) -> (i32, i32) {
    %c0_i32 = arith.constant 0 : i32
    %c0_i32_0 = arith.constant 0 : i32
    %c0_i32_1 = arith.constant 0 : i32
    return %c0_i32, %c0_i32_0 : i32, i32
  }
  func.func @transform_6(%arg0: i32, %arg1: i32) -> (i32, i32) {
    %c0_i32 = arith.constant 0 : i32
    %c0_i32_0 = arith.constant 0 : i32
    %c0_i32_1 = arith.constant 0 : i32
    return %c0_i32, %c0_i32_0 : i32, i32
  }
  func.func @transform_7(%arg0: i32, %arg1: i32) -> (i32, i32, i32) {
    %c0_i32 = arith.constant 0 : i32
    %c0_i32_0 = arith.constant 0 : i32
    %c0_i32_1 = arith.constant 0 : i32
    %c0_i32_2 = arith.constant 0 : i32
    return %c0_i32, %c0_i32_0, %c0_i32_1 : i32, i32, i32
  }
  func.func @transform_8(%arg0: i32, %arg1: i32) -> (i32, i32, i32) {
    %c0_i32 = arith.constant 0 : i32
    %c0_i32_0 = arith.constant 0 : i32
    %c0_i32_1 = arith.constant 0 : i32
    %c0_i32_2 = arith.constant 0 : i32
    return %c0_i32, %c0_i32_0, %c0_i32_1 : i32, i32, i32
  }
  func.func @transform_9(%arg0: i32, %arg1: i32) -> (i32, i32, i32) {
    %c0_i32 = arith.constant 0 : i32
    %c0_i32_0 = arith.constant 0 : i32
    %c0_i32_1 = arith.constant 0 : i32
    %c0_i32_2 = arith.constant 0 : i32
    return %c0_i32, %c0_i32_0, %c0_i32_1 : i32, i32, i32
  }
  func.func @transform_10(%arg0: i32, %arg1: i32) -> (i32, i32, i32) {
    %c0_i32 = arith.constant 0 : i32
    %c0_i32_0 = arith.constant 0 : i32
    %c0_i32_1 = arith.constant 0 : i32
    %c0_i32_2 = arith.constant 0 : i32
    return %c0_i32, %c0_i32_0, %c0_i32_1 : i32, i32, i32
  }
  func.func @transform_11(%arg0: i32, %arg1: i32) -> (i32, i32) {
    %c0_i32 = arith.constant 0 : i32
    %c0_i32_0 = arith.constant 0 : i32
    %c0_i32_1 = arith.constant 0 : i32
    return %c0_i32, %c0_i32_0 : i32, i32
  }
  func.func @transform_12(%arg0: i32, %arg1: i32) -> (i32, i32) {
    %c0_i32 = arith.constant 0 : i32
    %c0_i32_0 = arith.constant 0 : i32
    %c0_i32_1 = arith.constant 0 : i32
    return %c0_i32, %c0_i32_0 : i32, i32
  }
  func.func @transform_13(%arg0: i32, %arg1: i32) -> (i32, i32) {
    %c0_i32 = arith.constant 0 : i32
    %c0_i32_0 = arith.constant 0 : i32
    %c0_i32_1 = arith.constant 0 : i32
    return %c0_i32, %c0_i32_0 : i32, i32
  }
  func.func @transform_14(%arg0: i32, %arg1: i32) -> (i32, i32) {
    %c0_i32 = arith.constant 0 : i32
    %c0_i32_0 = arith.constant 0 : i32
    %c0_i32_1 = arith.constant 0 : i32
    return %c0_i32, %c0_i32_0 : i32, i32
  }
  func.func @transform_15(%arg0: i32, %arg1: i32) -> (i32, i32) {
    %c0_i32 = arith.constant 0 : i32
    %c0_i32_0 = arith.constant 0 : i32
    %c0_i32_1 = arith.constant 0 : i32
    return %c0_i32, %c0_i32_0 : i32, i32
  }
  func.func @transform_16(%arg0: i32, %arg1: i32) -> (i32, i32) {
    %c0_i32 = arith.constant 0 : i32
    %c0_i32_0 = arith.constant 0 : i32
    %c0_i32_1 = arith.constant 0 : i32
    return %c0_i32, %c0_i32_0 : i32, i32
  }
  func.func @transform_17(%arg0: i32, %arg1: i32) -> (i32, i32, i32) {
    %c0_i32 = arith.constant 0 : i32
    %c0_i32_0 = arith.constant 0 : i32
    return %arg0, %c0_i32, %arg1 : i32, i32, i32
  }
}

</mosaic_0001>

<bundles_post_ra>
// kernel: cst_pallas.1
= control target key start
LH: loop header
LB: loop body
LE: loop exit
PB: predicated region body
PF: predicated region fallthrough
CT: control target
= control target key end

     0   :  { %s4615_s24 = smov 0   ;;  %s4617_s25 = smov 0   ;;  %s5699_s0 = inlined_call_operand.vmem [shape: f32[2,3,256], index: 0, kind: input, shape index: {}]   ;;  %s5700_s1 = inlined_call_operand.vmem [shape: f32[32,3], index: 1, kind: input, shape index: {}]   ;;  %s5701_s2 = inlined_call_operand.vmem [shape: f32[32,1], index: 2, kind: input, shape index: {}]   ;;  %s5702_s3 = inlined_call_operand.vmem [shape: f32[64,32], index: 3, kind: input, shape index: {}]   ;;  %s5703_s4 = inlined_call_operand.vmem [shape: f32[64,1], index: 4, kind: input, shape index: {}]   ;;  %s5704_s5 = inlined_call_operand.vmem [shape: f32[64,64], index: 5, kind: input, shape index: {}]   ;;  %s5705_s6 = inlined_call_operand.vmem [shape: f32[64,1], index: 6, kind: input, shape index: {}]   ;;  %s5706_s7 = inlined_call_operand.vmem [shape: f32[5,32,64], index: 7, kind: input, shape index: {}]   ;;  %s5707_s8 = inlined_call_operand.vmem [shape: f32[5,32,32], index: 8, kind: input, shape index: {}]   ;;  %s5708_s9 = inlined_call_operand.vmem [shape: f32[5,32,1], index: 9, kind: input, shape index: {}]   ;;  %s5709_s10 = inlined_call_operand.vmem [shape: f32[5,64,32], index: 10, kind: input, shape index: {}]   ;;  %s5710_s11 = inlined_call_operand.vmem [shape: f32[64,64], index: 11, kind: input, shape index: {}]   ;;  %s5711_s12 = inlined_call_operand.vmem [shape: f32[64,1], index: 12, kind: input, shape index: {}]   ;;  %s5712_s13 = inlined_call_operand.vmem [shape: f32[32,64], index: 13, kind: input, shape index: {}]   ;;  %s5713_s14 = inlined_call_operand.vmem [shape: f32[32,1], index: 14, kind: input, shape index: {}]   ;;  %s5714_s15 = inlined_call_operand.vmem [shape: f32[3,32], index: 15, kind: input, shape index: {}]   ;;  %s5715_s16 = inlined_call_operand.vmem [shape: f32[3,1], index: 16, kind: input, shape index: {}]   ;;  %s5716_s17 = inlined_call_operand.vmem [shape: f32[2,3,256], index: 17, kind: output, shape index: {}]  }
   0x1   :  { %5718 = sst [smem:[#allocation2_spill]] %s5699_s0  ;;  %s4619_s26 = smov 0  }
   0x2   :  { %5719 = sst [smem:[#allocation3_spill]] %s5700_s1 }
   0x3   :  { %5720 = sst [smem:[#allocation4_spill]] %s5701_s2 }
   0x4 LB: > { %s39_s27 = sadd.s32 1, %s4517_s25  ;;  %p4038_p0 = scmp.ge.s32.totalorder %s4521_s26, 1  ;;  %s4521_s26 = sphi %s4619_s26, %s27_s26   ;;  %s4517_s25 = sphi %s4617_s25, %s5725_s25   ;;  %s4513_s24 = sphi %s4615_s24, %s5724_s24  }
   0x5   : > { %p41_p1 = scmp.ge.s32.totalorder %s39_s27, 2  ;;  %p508_p2 = scmp.lt.s32.totalorder %s4521_s26, 3 }
   0x7   : > { %s5727_s27 = smov (%p41_p1, %s39_s27), 0  ;;  %p509_p3 = pnand %p4038_p0, %p508_p2 }
   0x8   : > { %s5721_s2 = sld [smem:[#allocation4_spill]] (!%p509_p3)  ;;  %p569_p4 = scmp.lt.s32.totalorder (!%p509_p3), %s4513_s24, 1  ;;  %v4523_v2 = vmov (!%p509_p3), 0   ;;  %v4524_v5 = vmov (!%p509_p3), 0.0   ;;  %vm632_vm0 = vcmask (!%p509_p3), 1042432   ;;  %v758_v8 = vld [vmem:[%s5703_s4] sm:$0xff] (!%p509_p3) }
   0x9   : > { %512 = sbr.rel (%p509_p3) target bundleno = 5076 (0x13d4), region = 88  ;;  %4492 = vset.pattern.permute.xlu0 (!%p509_p3), %v4523_v2  ;;  %4493 = vset.pattern.permute.xlu1 (!%p509_p3), %v4523_v2  ;;  %s5722_s28 = sld [smem:[#allocation2_spill]] (!%p509_p3)  ;;  %vm619_vm1 = vcmask (!%p509_p3), 23552   ;;  %v759_v10 = vld [vmem:[%s5703_s4 + $0x8] sm:$0xff] (!%p509_p3)  ;;  %v760_v11 = vld [vmem:[%s5703_s4 + $0x10] sm:$0xff] (!%p509_p3)  ;;  %v761_v13 = vld [vmem:[%s5703_s4 + $0x18] sm:$0xff] (!%p509_p3) }
   0xa   : > { %701 = vmatprep.mubr.f32.mxu0 (!%p509_p3), %v4524_v5  ;;  %895 = vmatprep.mubr.f32.mxu1 (!%p509_p3), %v4524_v5  ;;  %s5723_s1 = sld [smem:[#allocation3_spill]] (!%p509_p3)  ;;  %v762_v14 = vld [vmem:[%s5703_s4 + $0x20] sm:$0xff] (!%p509_p3)  ;;  %v763_v16 = vld [vmem:[%s5703_s4 + $0x28] sm:$0xff] (!%p509_p3)  ;;  %v764_v17 = vld [vmem:[%s5703_s4 + $0x30] sm:$0xff] (!%p509_p3)  ;;  %vm806_vm10 = vcmask (!%p509_p3), 261120  }
   0xb   : > { %v765_v19 = vld [vmem:[%s5703_s4 + $0x38] sm:$0xff] (!%p509_p3)  ;;  %v1000_v20 = vld [vmem:[%s5705_s6] sm:$0xff] (!%p509_p3)  ;;  %v1001_v21 = vld [vmem:[%s5705_s6 + $0x8] sm:$0xff] (!%p509_p3) }
   0xc   : > { %v1002_v22 = vld [vmem:[%s5705_s6 + $0x10] sm:$0xff] (!%p509_p3)  ;;  %v1003_v23 = vld [vmem:[%s5705_s6 + $0x18] sm:$0xff] (!%p509_p3)  ;;  %v1004_v24 = vld [vmem:[%s5705_s6 + $0x20] sm:$0xff] (!%p509_p3) }
   0xd   : > { %v1005_v25 = vld [vmem:[%s5705_s6 + $0x28] sm:$0xff] (!%p509_p3)  ;;  %v1006_v26 = vld [vmem:[%s5705_s6 + $0x30] sm:$0xff] (!%p509_p3)  ;;  %v1007_v27 = vld [vmem:[%s5705_s6 + $0x38] sm:$0xff] (!%p509_p3) }
   0xe   : > { %v593_v0 = vld [vmem:[%s5721_s2] sm:$0xff] (!%p509_p3)  ;;  %v595_v1 = vld [vmem:[%s5721_s2 + $0x10] sm:$0xff] (!%p509_p3)  ;;  %v594_v3 = vld [vmem:[%s5721_s2 + $0x8] sm:$0xff] (!%p509_p3) }
   0xf   : > { %599 = vperm.xlu0 (!%p509_p3), %4492, %v593_v0   ;;  %609 = vperm.xlu1 (!%p509_p3), %4493, %v595_v1   ;;  %v596_v4 = vld [vmem:[%s5721_s2 + $0x18] sm:$0xff] (!%p509_p3)  ;;  %v1367_v28 = vld [vmem:[%s5708_s9] sm:$0xff] (!%p509_p3)  ;;  %v1368_v29 = vld [vmem:[%s5708_s9 + $0x8] sm:$0xff] (!%p509_p3) }
  0x10   : > { %s5729_s24 = smov (!%p569_p4, %s4513_s24), 1  ;;  %v589_v9 = vld [vmem:[%s5723_s1] sm:$0xff]  ;;  %v590_v12 = vld [vmem:[%s5723_s1 + $0x8] sm:$0xff]  ;;  %v591_v15 = vld [vmem:[%s5723_s1 + $0x10] sm:$0xff] }
  0x11   : > { %s4240_s21 = sshll.u32 %s5729_s24, 3  ;;  %v592_v18 = vld [vmem:[%s5723_s1 + $0x18] sm:$0xff]  ;;  %v1369_v30 = vld [vmem:[%s5708_s9 + $0x10] sm:$0xff]  ;;  %v4093_v32 = vld [vmem:[%s5708_s9 + $0x20] sm:$0xff] }
  0x12   : > { %s576_s29 = scalar_lea.vmem %s5722_s28, %s4240_s21  ;;  %v1370_v31 = vld [vmem:[%s5708_s9 + $0x18] sm:$0xff]  ;;  %v4094_v33 = vld [vmem:[%s5708_s9 + $0x28] sm:$0xff]  ;;  %v4095_v34 = vld [vmem:[%s5708_s9 + $0x30] sm:$0xff]  ;;  %s586_s22 = scalar_lea.vmem %s5716_s17, %s4240_s21 }
  0x13   : > { %604 = vperm.xlu0 %4492, %v594_v3   ;;  %614 = vperm.xlu1 %4493, %v596_v4   ;;  %v588_v6 = vld [vmem:[%s576_s29] sm:$0x77]  ;;  %v4096_v35 = vld [vmem:[%s5708_s9 + $0x38] sm:$0xff]  ;;  %v4130_v37 = vld [vmem:[%s5708_s9 + $0x48] sm:$0xff] }
  0x14   : > { %v618_v7 = vcombine.high %v588_v6, %v588_v6  ;;  %v4129_v36 = vld [vmem:[%s5708_s9 + $0x40] sm:$0xff]  ;;  %v4131_v38 = vld [vmem:[%s5708_s9 + $0x50] sm:$0xff]  ;;  %v4132_v39 = vld [vmem:[%s5708_s9 + $0x58] sm:$0xff] }
  0x15   : > { %v4165_v40 = vld [vmem:[%s5708_s9 + $0x60] sm:$0xff]  ;;  %v4166_v41 = vld [vmem:[%s5708_s9 + $0x68] sm:$0xff]  ;;  %v4167_v42 = vld [vmem:[%s5708_s9 + $0x70] sm:$0xff] }
  0x16   : > { %4043 = vmatprep.subr.msk.mxu0 %vm632_vm0, %v618_v7  ;;  %v4168_v43 = vld [vmem:[%s5708_s9 + $0x78] sm:$0xff]  ;;  %v4201_v44 = vld [vmem:[%s5708_s9 + $0x80] sm:$0xff]  ;;  %v4202_v45 = vld [vmem:[%s5708_s9 + $0x88] sm:$0xff] }
  0x17   : > { %768 = vperm.xlu0 %4492, %v758_v8   ;;  %4044 = vmatpush1.msk.msra.mxu0 %vm632_vm0, %v588_v6  ;;  %v4203_v46 = vld [vmem:[%s5708_s9 + $0x90] sm:$0xff]  ;;  %v4204_v47 = vld [vmem:[%s5708_s9 + $0x98] sm:$0xff]  ;;  %v3473_v48 = vld [vmem:[%s5711_s12] sm:$0xff] }
  0x18   : > { %4045 = vmatmul.mubr.msk.f32.vlgmr.msra.gmra.mrb[0].mxu0 %vm619_vm1, %v589_v9  ;;  %773 = vperm.xlu1 %4493, %v759_v10   ;;  %v3474_v49 = vld [vmem:[%s5711_s12 + $0x8] sm:$0xff]  ;;  %v3475_v50 = vld [vmem:[%s5711_s12 + $0x10] sm:$0xff]  ;;  %v3476_v51 = vld [vmem:[%s5711_s12 + $0x18] sm:$0xff] }
  0x19   : > { %707 = vmatprep.mubr.f32.mxu0 %v4524_v5  ;;  %v3477_v52 = vld [vmem:[%s5711_s12 + $0x20] sm:$0xff]  ;;  %v3478_v53 = vld [vmem:[%s5711_s12 + $0x28] sm:$0xff]  ;;  %v3479_v54 = vld [vmem:[%s5711_s12 + $0x30] sm:$0xff] }
  0x1a   : > { %v3480_v55 = vld [vmem:[%s5711_s12 + $0x38] sm:$0xff]  ;;  %v3710_v56 = vld [vmem:[%s5713_s14] sm:$0xff]  ;;  %v3711_v57 = vld [vmem:[%s5713_s14 + $0x8] sm:$0xff] }
  0x1b   : > { %778 = vperm.xlu0 %4492, %v760_v11   ;;  %v3712_v58 = vld [vmem:[%s5713_s14 + $0x10] sm:$0xff]  ;;  %v3713_v59 = vld [vmem:[%s5713_s14 + $0x18] sm:$0xff]  ;;  %v3860_v60 = vld [vmem:[%s5715_s16] sm:$0x7] }
  0x1c   : > { %4046 = vmatmul.mubr.msk.f32.gmra.mrb[2].mxu0 %vm619_vm1, %v590_v12  ;;  %783 = vperm.xlu1 %4493, %v761_v13  }
  0x1d   : > { %713 = vmatprep.mubr.f32.mxu0 %v4524_v5 }
  0x1f   : > { %788 = vperm.xlu0 %4492, %v762_v14  }
  0x20   : > { %4047 = vmatmul.mubr.msk.f32.gmra.mrb[4].mxu0 %vm619_vm1, %v591_v15  ;;  %793 = vperm.xlu1 %4493, %v763_v16  }
  0x21   : > { %719 = vmatprep.mubr.f32.mxu0 %v4524_v5 }
  0x23   : > { %798 = vperm.xlu0 %4492, %v764_v17  }
  0x24   : > { %4048 = vmatmul.mubr.msk.f32.gmra.mrb[6].mxu0 %vm619_vm1, %v592_v18  ;;  %803 = vperm.xlu1 %4493, %v765_v19  }
  0x25   : > { %1137 = vmatprep.mubr.f32.mxu0 %v4524_v5 }
  0x27   : > { %1010 = vperm.xlu0 %4492, %v1000_v20  }
  0x28   : > { %1015 = vperm.xlu1 %4493, %v1001_v21  }
  0x2b   : > { %1020 = vperm.xlu0 %4492, %v1002_v22  }
  0x2c   : > { %1025 = vperm.xlu1 %4493, %v1003_v23  }
  0x2f   : > { %1030 = vperm.xlu0 %4492, %v1004_v24  }
  0x30   : > { %1035 = vperm.xlu1 %4493, %v1005_v25  }
  0x33   : > { %1040 = vperm.xlu0 %4492, %v1006_v26  }
  0x34   : > { %1045 = vperm.xlu1 %4493, %v1007_v27  }
  0x37   : > { %1373 = vperm.xlu0 %4492, %v1367_v28  }
  0x38   : > { %1378 = vperm.xlu1 %4493, %v1368_v29  }
  0x3b   : > { %1383 = vperm.xlu0 %4492, %v1369_v30  }
  0x3c   : > { %1388 = vperm.xlu1 %4493, %v1370_v31  }
  0x3f   : > { %1819 = vperm.xlu0 %4492, %v4093_v32  }
  0x40   : > { %1824 = vperm.xlu1 %4493, %v4094_v33  }
  0x43   : > { %1829 = vperm.xlu0 %4492, %v4095_v34  }
  0x44   : > { %1834 = vperm.xlu1 %4493, %v4096_v35  }
  0x47   : > { %2266 = vperm.xlu0 %4492, %v4129_v36  }
  0x48   : > { %2271 = vperm.xlu1 %4493, %v4130_v37  }
  0x4b   : > { %2276 = vperm.xlu0 %4492, %v4131_v38   ;;  %v750_v38 = vld [vmem:[%s5702_s3] sm:$0xff] }
  0x4c   : > { %2281 = vperm.xlu1 %4493, %v4132_v39   ;;  %v751_v39 = vld [vmem:[%s5702_s3 + $0x8] sm:$0xff] }
  0x4f   : > { %2713 = vperm.xlu0 %4492, %v4165_v40   ;;  %v752_v40 = vld [vmem:[%s5702_s3 + $0x10] sm:$0xff] }
  0x50   : > { %2718 = vperm.xlu1 %4493, %v4166_v41   ;;  %v753_v41 = vld [vmem:[%s5702_s3 + $0x18] sm:$0xff] }
  0x53   : > { %2723 = vperm.xlu0 %4492, %v4167_v42   ;;  %v754_v42 = vld [vmem:[%s5702_s3 + $0x20] sm:$0xff] }
  0x54   : > { %2728 = vperm.xlu1 %4493, %v4168_v43   ;;  %v755_v43 = vld [vmem:[%s5702_s3 + $0x28] sm:$0xff] }
  0x57   : > { %3160 = vperm.xlu0 %4492, %v4201_v44   ;;  %v756_v44 = vld [vmem:[%s5702_s3 + $0x30] sm:$0xff] }
  0x58   : > { %3165 = vperm.xlu1 %4493, %v4202_v45   ;;  %v757_v45 = vld [vmem:[%s5702_s3 + $0x38] sm:$0xff] }
  0x5b   : > { %3170 = vperm.xlu0 %4492, %v4203_v46  }
  0x5c   : > { %3175 = vperm.xlu1 %4493, %v4204_v47  }
  0x5f   : > { %3483 = vperm.xlu0 %4492, %v3473_v48  }
  0x60   : > { %3488 = vperm.xlu1 %4493, %v3474_v49  }
  0x63   : > { %3493 = vperm.xlu0 %4492, %v3475_v50  }
  0x64   : > { %3498 = vperm.xlu1 %4493, %v3476_v51  }
  0x67   : > { %3503 = vperm.xlu0 %4492, %v3477_v52  }
  0x68   : > { %3508 = vperm.xlu1 %4493, %v3478_v53  }
  0x6b   : > { %3513 = vperm.xlu0 %4492, %v3479_v54  }
  0x6c   : > { %3518 = vperm.xlu1 %4493, %v3480_v55  }
  0x6f   : > { %3716 = vperm.xlu0 %4492, %v3710_v56  }
  0x70   : > { %3721 = vperm.xlu1 %4493, %v3711_v57  }
  0x73   : > { %3726 = vperm.xlu0 %4492, %v3712_v58  }
  0x74   : > { %3731 = vperm.xlu1 %4493, %v3713_v59  }
  0x77   : > { %3863 = vperm.xlu0 %4492, %v3860_v60  }
  0x8e   : > { %v600_v61 = vpop.permute.xlu0 %599  ;;  %v610_v8 = vpop.permute.xlu1 %609 }
  0x92   : > { %v605_v2 = vpop.permute.xlu0 %604  ;;  %v615_v23 = vpop.permute.xlu1 %614 }
  0x96   : > { %v769_v46 = vpop.permute.xlu0 %768 }
  0x97   : > { %v774_v51 = vpop.permute.xlu1 %773 }
  0x9a   : > { %v779_v59 = vpop.permute.xlu0 %778 }
  0xeb   : > { %v703_v62 = vpop.f32.mrb[0].mxu0 }
  0xec   : > { %v704_v63 = vadd.f32 %v703_v62, %v600_v61  ;;  %v705_v0 = vpop.f32.mrb[1].mxu0 }
  0xed   : > { %v706_v1 = vadd.f32 %v705_v0, %v600_v61 }
  0xee   : > { %v734_v4 = vmul.f32 0.2, %v704_v63  ;;  %vm726_vm2 = vcmp.gt.f32.partialorder %v704_v63, 0.0 }
  0xef   : > { %v709_v3 = vpop.f32.mrb[2].mxu0  ;;  %v735_v9 = vmul.f32 0.2, %v706_v1  ;;  %vm727_vm3 = vcmp.gt.f32.partialorder %v706_v1, 0.0 }
  0xf0   : > { %v710_v6 = vadd.f32 %v709_v3, %v605_v2  ;;  %v711_v7 = vpop.f32.mrb[3].mxu0  ;;  %v742_v16 = vsel %vm726_vm2, %v704_v63, %v734_v4 }
  0xf1   : > { %v712_v10 = vadd.f32 %v711_v7, %v605_v2  ;;  %v743_v19 = vsel %vm727_vm3, %v706_v1, %v735_v9 }
  0xf2   : > { %v736_v11 = vmul.f32 0.2, %v710_v6  ;;  %vm728_vm4 = vcmp.gt.f32.partialorder %v710_v6, 0.0 }
  0xf3   : > { %v737_v12 = vmul.f32 0.2, %v712_v10  ;;  %v715_v13 = vpop.f32.mrb[4].mxu0  ;;  %vm729_vm5 = vcmp.gt.f32.partialorder %v712_v10, 0.0 }
  0xf4   : > { %v716_v14 = vadd.f32 %v715_v13, %v610_v8  ;;  %v717_v15 = vpop.f32.mrb[5].mxu0  ;;  %v744_v17 = vsel %vm728_vm4, %v710_v6, %v736_v11 }
  0xf5   : > { %v718_v18 = vadd.f32 %v717_v15, %v610_v8  ;;  %v745_v20 = vsel %vm729_vm5, %v712_v10, %v737_v12  ;;  %v4244_v21 = vpack.c.bf16 %v744_v17, %v742_v16  ;;  %v784_v8 = vpop.permute.xlu1 %783  ;;  %v789_v16 = vpop.permute.xlu0 %788 }
  0xf6   : > { %v4242_v22 = vpack.c.bf16 %v745_v20, %v743_v19  ;;  %v738_v25 = vmul.f32 0.2, %v716_v14  ;;  %vm730_vm6 = vcmp.gt.f32.partialorder %v716_v14, 0.0 }
  0xf7   : > { %v721_v24 = vpop.f32.mrb[6].mxu0  ;;  %v739_v28 = vmul.f32 0.2, %v718_v18  ;;  %vm731_vm7 = vcmp.gt.f32.partialorder %v718_v18, 0.0 }
  0xf8   : > { %v722_v26 = vadd.f32 %v721_v24, %v615_v23  ;;  %v723_v27 = vpop.f32.mrb[7].mxu0  ;;  %4243 = vmatprep.subr.bf16.mxu1 %v4242_v22  ;;  %v746_v32 = vsel %vm730_vm6, %v716_v14, %v738_v25 }
  0xf9   : > { %v724_v29 = vadd.f32 %v723_v27, %v615_v23  ;;  %4245 = vmatpush1.bf16.msra.mxu1 %v4244_v21  ;;  %v747_v34 = vsel %vm731_vm7, %v718_v18, %v739_v28  ;;  %v794_v28 = vpop.permute.xlu1 %793 }
  0xfa   : > { %vm732_vm8 = vcmp.gt.f32.partialorder %v722_v26, 0.0  ;;  %v740_v30 = vmul.f32 0.2, %v722_v26 }
  0xfb   : > { %vm733_vm9 = vcmp.gt.f32.partialorder %v724_v29, 0.0  ;;  %v741_v31 = vmul.f32 0.2, %v724_v29 }
  0xfc   : > { %v748_v33 = vsel %vm732_vm8, %v722_v26, %v740_v30 }
  0xfd   : > { %v749_v35 = vsel %vm733_vm9, %v724_v29, %v741_v31  ;;  %v4248_v36 = vpack.c.bf16 %v748_v33, %v746_v32 }
  0xfe   : > { %v4246_v37 = vpack.c.bf16 %v749_v35, %v747_v34 }
 0x100   : > { %4247 = vmatprep.subr.bf16.mxu1 %v4246_v37 }
 0x101   : > { %4249 = vmatpush1.bf16.msra.mxu1 %v4248_v36  ;;  %v799_v36 = vpop.permute.xlu0 %798 }
 0x104   : > { %4049 = vmatmul.mubr.msk.f32.vlgmr.msra.gmra.mrb[0].mxu1 %vm806_vm10, %v750_v38 }
 0x105   : > { %901 = vmatprep.mubr.f32.mxu1 %v4524_v5 }
 0x108   : > { %4050 = vmatmul.mubr.msk.f32.gmra.mrb[2].mxu1 %vm806_vm10, %v751_v39 }
 0x109   : > { %907 = vmatprep.mubr.f32.mxu1 %v4524_v5 }
 0x10c   : > { %4051 = vmatmul.mubr.msk.f32.gmra.mrb[4].mxu1 %vm806_vm10, %v752_v40 }
 0x10d   : > { %913 = vmatprep.mubr.f32.mxu1 %v4524_v5 }
 0x110   : > { %4052 = vmatmul.mubr.msk.f32.gmra.mrb[6].mxu1 %vm806_vm10, %v753_v41 }
 0x111   : > { %919 = vmatprep.mubr.f32.mxu1 %v4524_v5 }
 0x114   : > { %4053 = vmatmul.mubr.msk.f32.gmra.mrb[8].mxu1 %vm806_vm10, %v754_v42 }
 0x115   : > { %925 = vmatprep.mubr.f32.mxu1 %v4524_v5 }
 0x118   : > { %4054 = vmatmul.mubr.msk.f32.gmra.mrb[10].mxu1 %vm806_vm10, %v755_v43 }
 0x119   : > { %931 = vmatprep.mubr.f32.mxu1 %v4524_v5 }
 0x11c   : > { %4055 = vmatmul.mubr.msk.f32.gmra.mrb[12].mxu1 %vm806_vm10, %v756_v44 }
 0x11d   : > { %937 = vmatprep.mubr.f32.mxu1 %v4524_v5 }
 0x120   : > { %4056 = vmatmul.mubr.msk.f32.gmra.mrb[14].mxu1 %vm806_vm10, %v757_v45 }
 0x121   : > { %1314 = vmatprep.mubr.f32.mxu1 %v4524_v5 }
 0x1d7   : > { %v897_v47 = vpop.f32.mrb[0].mxu1 }
 0x1d8   : > { %v898_v48 = vadd.f32 %v897_v47, %v769_v46  ;;  %v899_v49 = vpop.f32.mrb[1].mxu1 }
 0x1d9   : > { %v900_v50 = vadd.f32 %v899_v49, %v769_v46 }
 0x1da   : > { %v960_v53 = vmul.f32 0.2, %v898_v48  ;;  %vm944_vm11 = vcmp.gt.f32.partialorder %v898_v48, 0.0 }
 0x1db   : > { %v903_v52 = vpop.f32.mrb[2].mxu1  ;;  %v961_v56 = vmul.f32 0.2, %v900_v50  ;;  %vm945_vm12 = vcmp.gt.f32.partialorder %v900_v50, 0.0 }
 0x1dc   : > { %v904_v54 = vadd.f32 %v903_v52, %v774_v51  ;;  %v905_v55 = vpop.f32.mrb[3].mxu1  ;;  %v976_v62 = vsel %vm944_vm11, %v898_v48, %v960_v53  ;;  %v804_v48 = vpop.permute.xlu1 %803 }
 0x1dd   : > { %v906_v57 = vadd.f32 %v905_v55, %v774_v51  ;;  %v977_v4 = vsel %vm945_vm12, %v900_v50, %v961_v56  ;;  %vm1048_vm12 = vcmask 523264  }
 0x1de   : > { %vm946_vm13 = vcmp.gt.f32.partialorder %v904_v54, 0.0  ;;  %v962_v58 = vmul.f32 0.2, %v904_v54 }
 0x1df   : > { %vm947_vm14 = vcmp.gt.f32.partialorder %v906_v57, 0.0  ;;  %v963_v60 = vmul.f32 0.2, %v906_v57  ;;  %v909_v61 = vpop.f32.mrb[4].mxu1 }
 0x1e0   : > { %v978_v63 = vsel %vm946_vm13, %v904_v54, %v962_v58  ;;  %v910_v0 = vadd.f32 %v909_v61, %v779_v59  ;;  %v911_v1 = vpop.f32.mrb[5].mxu1 }
 0x1e1   : > { %v4252_v2 = vpack.c.bf16 %v978_v63, %v976_v62  ;;  %v912_v3 = vadd.f32 %v911_v1, %v779_v59  ;;  %v979_v6 = vsel %vm947_vm14, %v906_v57, %v963_v60  ;;  %v992_v63 = vld [vmem:[%s5704_s5] sm:$0xff]  ;;  %v994_v1 = vld [vmem:[%s5704_s5 + $0x10] sm:$0xff] }
 0x1e2   : > { %v4250_v7 = vpack.c.bf16 %v979_v6, %v977_v4  ;;  %v964_v10 = vmul.f32 0.2, %v910_v0  ;;  %vm948_vm15 = vcmp.gt.f32.partialorder %v910_v0, 0.0  ;;  %v997_v4 = vld [vmem:[%s5704_s5 + $0x28] sm:$0xff]  ;;  %v998_v6 = vld [vmem:[%s5704_s5 + $0x30] sm:$0xff] }
 0x1e3   : > { %v915_v9 = vpop.f32.mrb[6].mxu1  ;;  %v965_v13 = vmul.f32 0.2, %v912_v3  ;;  %vm949_vm0 = vcmp.gt.f32.partialorder %v912_v3, 0.0 }
 0x1e4   : > { %v916_v11 = vadd.f32 %v915_v9, %v784_v8  ;;  %v917_v12 = vpop.f32.mrb[7].mxu1  ;;  %4251 = vmatprep.subr.bf16.mxu0 %v4250_v7  ;;  %v980_v19 = vsel %vm948_vm15, %v910_v0, %v964_v10  ;;  %v993_v0 = vld [vmem:[%s5704_s5 + $0x8] sm:$0xff]  ;;  %v999_v7 = vld [vmem:[%s5704_s5 + $0x38] sm:$0xff]  ;;  %v1011_v9 = vpop.permute.xlu0 %1010 }
 0x1e5   : > { %v918_v14 = vadd.f32 %v917_v12, %v784_v8  ;;  %4253 = vmatpush1.bf16.msra.mxu0 %v4252_v2  ;;  %v981_v25 = vsel %vm949_vm0, %v912_v3, %v965_v13  ;;  %v995_v2 = vld [vmem:[%s5704_s5 + $0x18] sm:$0xff]  ;;  %v996_v3 = vld [vmem:[%s5704_s5 + $0x20] sm:$0xff]  ;;  %v1016_v13 = vpop.permute.xlu1 %1015 }
 0x1e6   : > { %vm950_vm1 = vcmp.gt.f32.partialorder %v916_v11, 0.0  ;;  %v966_v15 = vmul.f32 0.2, %v916_v11 }
 0x1e7   : > { %vm951_vm2 = vcmp.gt.f32.partialorder %v918_v14, 0.0  ;;  %v967_v17 = vmul.f32 0.2, %v918_v14  ;;  %v921_v18 = vpop.f32.mrb[8].mxu1 }
 0x1e8   : > { %v982_v20 = vsel %vm950_vm1, %v916_v11, %v966_v15  ;;  %v922_v21 = vadd.f32 %v921_v18, %v789_v16  ;;  %v923_v22 = vpop.f32.mrb[9].mxu1 }
 0x1e9   : > { %v4256_v23 = vpack.c.bf16 %v982_v20, %v980_v19  ;;  %v924_v24 = vadd.f32 %v923_v22, %v789_v16  ;;  %v983_v26 = vsel %vm951_vm2, %v918_v14, %v967_v17 }
 0x1ea   : > { %v4254_v27 = vpack.c.bf16 %v983_v26, %v981_v25  ;;  %v968_v30 = vmul.f32 0.2, %v922_v21  ;;  %vm952_vm3 = vcmp.gt.f32.partialorder %v922_v21, 0.0 }
 0x1eb   : > { %v927_v29 = vpop.f32.mrb[10].mxu1  ;;  %v969_v33 = vmul.f32 0.2, %v924_v24  ;;  %vm953_vm4 = vcmp.gt.f32.partialorder %v924_v24, 0.0 }
 0x1ec   : > { %v928_v31 = vadd.f32 %v927_v29, %v794_v28  ;;  %v929_v32 = vpop.f32.mrb[11].mxu1  ;;  %4255 = vmatprep.subr.bf16.mxu0 %v4254_v27  ;;  %v984_v39 = vsel %vm952_vm3, %v922_v21, %v968_v30 }
 0x1ed   : > { %v930_v34 = vadd.f32 %v929_v32, %v794_v28  ;;  %4257 = vmatpush1.bf16.msra.mxu0 %v4256_v23  ;;  %v985_v45 = vsel %vm953_vm4, %v924_v24, %v969_v33  ;;  %v1021_v23 = vpop.permute.xlu0 %1020  ;;  %v1026_v32 = vpop.permute.xlu1 %1025 }
 0x1ee   : > { %vm954_vm5 = vcmp.gt.f32.partialorder %v928_v31, 0.0  ;;  %v970_v35 = vmul.f32 0.2, %v928_v31 }
 0x1ef   : > { %vm955_vm6 = vcmp.gt.f32.partialorder %v930_v34, 0.0  ;;  %v971_v37 = vmul.f32 0.2, %v930_v34  ;;  %v933_v38 = vpop.f32.mrb[12].mxu1 }
 0x1f0   : > { %v986_v40 = vsel %vm954_vm5, %v928_v31, %v970_v35  ;;  %v934_v41 = vadd.f32 %v933_v38, %v799_v36  ;;  %v935_v42 = vpop.f32.mrb[13].mxu1 }
 0x1f1   : > { %v4260_v43 = vpack.c.bf16 %v986_v40, %v984_v39  ;;  %v936_v44 = vadd.f32 %v935_v42, %v799_v36  ;;  %v987_v46 = vsel %vm955_vm6, %v930_v34, %v971_v37 }
 0x1f2   : > { %v4258_v47 = vpack.c.bf16 %v987_v46, %v985_v45  ;;  %v972_v50 = vmul.f32 0.2, %v934_v41  ;;  %vm956_vm7 = vcmp.gt.f32.partialorder %v934_v41, 0.0 }
 0x1f3   : > { %v939_v49 = vpop.f32.mrb[14].mxu1  ;;  %v973_v53 = vmul.f32 0.2, %v936_v44  ;;  %vm957_vm8 = vcmp.gt.f32.partialorder %v936_v44, 0.0 }
 0x1f4   : > { %v940_v51 = vadd.f32 %v939_v49, %v804_v48  ;;  %v941_v52 = vpop.f32.mrb[15].mxu1  ;;  %4259 = vmatprep.subr.bf16.mxu0 %v4258_v47  ;;  %v988_v57 = vsel %vm956_vm7, %v934_v41, %v972_v50 }
 0x1f5   : > { %v942_v54 = vadd.f32 %v941_v52, %v804_v48  ;;  %4261 = vmatpush1.bf16.msra.mxu0 %v4260_v43  ;;  %v989_v60 = vsel %vm957_vm8, %v936_v44, %v973_v53  ;;  %v1031_v43 = vpop.permute.xlu0 %1030  ;;  %v1036_v52 = vpop.permute.xlu1 %1035 }
 0x1f6   : > { %vm958_vm9 = vcmp.gt.f32.partialorder %v940_v51, 0.0  ;;  %v974_v55 = vmul.f32 0.2, %v940_v51 }
 0x1f7   : > { %vm959_vm11 = vcmp.gt.f32.partialorder %v942_v54, 0.0  ;;  %v975_v56 = vmul.f32 0.2, %v942_v54 }
 0x1f8   : > { %v990_v58 = vsel %vm958_vm9, %v940_v51, %v974_v55 }
 0x1f9   : > { %v4264_v59 = vpack.c.bf16 %v990_v58, %v988_v57  ;;  %v991_v61 = vsel %vm959_vm11, %v942_v54, %v975_v56 }
 0x1fa   : > { %v4262_v62 = vpack.c.bf16 %v991_v61, %v989_v60 }
 0x1fc   : > { %4263 = vmatprep.subr.bf16.mxu0 %v4262_v62 }
 0x1fd   : > { %4265 = vmatpush1.bf16.msra.mxu0 %v4264_v59 }
 0x200   : > { %4057 = vmatmul.mubr.msk.f32.vlgmr.msra.gmra.mrb[8].mxu0 %vm1048_vm12, %v992_v63  ;;  %v1041_v63 = vpop.permute.xlu0 %1040 }
 0x201   : > { %1143 = vmatprep.mubr.f32.mxu0 %v4524_v5 }
 0x204   : > { %4058 = vmatmul.mubr.msk.f32.gmra.mrb[10].mxu0 %vm1048_vm12, %v993_v0 }
 0x205   : > { %1149 = vmatprep.mubr.f32.mxu0 %v4524_v5 }
 0x208   : > { %4059 = vmatmul.mubr.msk.f32.gmra.mrb[12].mxu0 %vm1048_vm12, %v994_v1 }
 0x209   : > { %1155 = vmatprep.mubr.f32.mxu0 %v4524_v5 }
 0x20c   : > { %4060 = vmatmul.mubr.msk.f32.gmra.mrb[14].mxu0 %vm1048_vm12, %v995_v2 }
 0x20d   : > { %1161 = vmatprep.mubr.f32.mxu0 %v4524_v5 }
 0x210   : > { %4061 = vmatmul.mubr.msk.f32.gmra.mrb[16].mxu0 %vm1048_vm12, %v996_v3 }
 0x211   : > { %1167 = vmatprep.mubr.f32.mxu0 %v4524_v5 }
 0x214   : > { %4062 = vmatmul.mubr.msk.f32.gmra.mrb[18].mxu0 %vm1048_vm12, %v997_v4 }
 0x215   : > { %1173 = vmatprep.mubr.f32.mxu0 %v4524_v5 }
 0x218   : > { %4063 = vmatmul.mubr.msk.f32.gmra.mrb[20].mxu0 %vm1048_vm12, %v998_v6 }
 0x219   : > { %1179 = vmatprep.mubr.f32.mxu0 %v4524_v5 }
 0x21c   : > { %4064 = vmatmul.mubr.msk.f32.gmra.mrb[22].mxu0 %vm1048_vm12, %v999_v7 }
 0x21d   : > { %1467 = vmatprep.mubr.f32.mxu0 %v4524_v5 }
 0x2d3   : > { %v1139_v8 = vpop.f32.mrb[8].mxu0 }
 0x2d4   : > { %v1141_v10 = vpop.f32.mrb[9].mxu0  ;;  %v1140_v12 = vadd.f32 %v1139_v8, %v1011_v9 }
 0x2d5   : > { %v1142_v11 = vadd.f32 %v1141_v10, %v1011_v9  ;;  %v1046_v9 = vpop.permute.xlu1 %1045 }
 0x2d6   : > { %v1202_v19 = vmul.f32 0.2, %v1140_v12  ;;  %vm1186_vm15 = vcmp.gt.f32.partialorder %v1140_v12, 0.0 }
 0x2d7   : > { %v1145_v14 = vpop.f32.mrb[10].mxu0  ;;  %v1203_v17 = vmul.f32 0.2, %v1142_v11  ;;  %vm1187_vm13 = vcmp.gt.f32.partialorder %v1142_v11, 0.0 }
 0x2d8   : > { %v1146_v15 = vadd.f32 %v1145_v14, %v1016_v13  ;;  %v1147_v16 = vpop.f32.mrb[11].mxu0  ;;  %v4908_v29 = vsel %vm1186_vm15, %v1140_v12, %v1202_v19 }
 0x2d9   : > { %v1148_v18 = vadd.f32 %v1147_v16, %v1016_v13  ;;  %v4904_v27 = vsel %vm1187_vm13, %v1142_v11, %v1203_v17 }
 0x2da   : > { %vm1188_vm14 = vcmp.gt.f32.partialorder %v1146_v15, 0.0  ;;  %v1204_v20 = vmul.f32 0.2, %v1146_v15 }
 0x2db   : > { %vm1189_vm0 = vcmp.gt.f32.partialorder %v1148_v18, 0.0  ;;  %v1205_v21 = vmul.f32 0.2, %v1148_v18  ;;  %v1151_v22 = vpop.f32.mrb[12].mxu0 }
 0x2dc   : > { %v4902_v24 = vsel %vm1188_vm14, %v1146_v15, %v1204_v20  ;;  %v1153_v25 = vpop.f32.mrb[13].mxu0  ;;  %v1152_v30 = vadd.f32 %v1151_v22, %v1021_v23 }
 0x2dd   : > { %v1154_v26 = vadd.f32 %v1153_v25, %v1021_v23  ;;  %v4906_v28 = vsel %vm1189_vm0, %v1148_v18, %v1205_v21  ;;  %v4268_v33 = vpack.c.bf16 %v4902_v24, %v4908_v29 }
 0x2de   : > { %v4266_v31 = vpack.c.bf16 %v4906_v28, %v4904_v27  ;;  %v1206_v39 = vmul.f32 0.2, %v1152_v30  ;;  %vm1190_vm3 = vcmp.gt.f32.partialorder %v1152_v30, 0.0 }
 0x2df   : > { %v1157_v34 = vpop.f32.mrb[14].mxu0  ;;  %v1207_v37 = vmul.f32 0.2, %v1154_v26  ;;  %vm1191_vm1 = vcmp.gt.f32.partialorder %v1154_v26, 0.0 }
 0x2e0   : > { %v1158_v35 = vadd.f32 %v1157_v34, %v1026_v32  ;;  %v1159_v36 = vpop.f32.mrb[15].mxu0  ;;  %4267 = vmatprep.subr.bf16.mxu1 %v4266_v31  ;;  %v4920_v49 = vsel %vm1190_vm3, %v1152_v30, %v1206_v39  ;;  %v1235_v30 = vld [vmem:[%s5706_s7 + $0x8] sm:$0xff]  ;;  %v1236_v31 = vld [vmem:[%s5706_s7 + $0x10] sm:$0xff] }
 0x2e1   : > { %v1160_v38 = vadd.f32 %v1159_v36, %v1026_v32  ;;  %4269 = vmatpush1.bf16.msra.mxu1 %v4268_v33  ;;  %v4916_v47 = vsel %vm1191_vm1, %v1154_v26, %v1207_v37  ;;  %v1234_v26 = vld [vmem:[%s5706_s7] sm:$0xff]  ;;  %v1237_v32 = vld [vmem:[%s5706_s7 + $0x18] sm:$0xff] }
 0x2e2   : > { %vm1192_vm2 = vcmp.gt.f32.partialorder %v1158_v35, 0.0  ;;  %v1208_v40 = vmul.f32 0.2, %v1158_v35 }
 0x2e3   : > { %vm1193_vm4 = vcmp.gt.f32.partialorder %v1160_v38, 0.0  ;;  %v1209_v41 = vmul.f32 0.2, %v1160_v38  ;;  %v1163_v42 = vpop.f32.mrb[16].mxu0 }
 0x2e4   : > { %v4914_v44 = vsel %vm1192_vm2, %v1158_v35, %v1208_v40  ;;  %v1165_v45 = vpop.f32.mrb[17].mxu0  ;;  %v1164_v50 = vadd.f32 %v1163_v42, %v1031_v43 }
 0x2e5   : > { %v1166_v46 = vadd.f32 %v1165_v45, %v1031_v43  ;;  %v4918_v48 = vsel %vm1193_vm4, %v1160_v38, %v1209_v41  ;;  %v4272_v53 = vpack.c.bf16 %v4914_v44, %v4920_v49 }
 0x2e6   : > { %v4270_v51 = vpack.c.bf16 %v4918_v48, %v4916_v47  ;;  %v1210_v59 = vmul.f32 0.2, %v1164_v50  ;;  %vm1194_vm7 = vcmp.gt.f32.partialorder %v1164_v50, 0.0 }
 0x2e7   : > { %v1169_v54 = vpop.f32.mrb[18].mxu0  ;;  %v1211_v57 = vmul.f32 0.2, %v1166_v46  ;;  %vm1195_vm5 = vcmp.gt.f32.partialorder %v1166_v46, 0.0 }
 0x2e8   : > { %v1170_v55 = vadd.f32 %v1169_v54, %v1036_v52  ;;  %v1171_v56 = vpop.f32.mrb[19].mxu0  ;;  %4271 = vmatprep.subr.bf16.mxu1 %v4270_v51  ;;  %v4932_v6 = vsel %vm1194_vm7, %v1164_v50, %v1210_v59 }
 0x2e9   : > { %v1172_v58 = vadd.f32 %v1171_v56, %v1036_v52  ;;  %4273 = vmatpush1.bf16.msra.mxu1 %v4272_v53  ;;  %v4928_v3 = vsel %vm1195_vm5, %v1166_v46, %v1211_v57 }
 0x2ea   : > { %vm1196_vm6 = vcmp.gt.f32.partialorder %v1170_v55, 0.0  ;;  %v1212_v60 = vmul.f32 0.2, %v1170_v55 }
 0x2eb   : > { %vm1197_vm8 = vcmp.gt.f32.partialorder %v1172_v58, 0.0  ;;  %v1213_v61 = vmul.f32 0.2, %v1172_v58  ;;  %v1175_v62 = vpop.f32.mrb[20].mxu0 }
 0x2ec   : > { %v4926_v0 = vsel %vm1196_vm6, %v1170_v55, %v1212_v60  ;;  %v1177_v1 = vpop.f32.mrb[21].mxu0  ;;  %v1176_v7 = vadd.f32 %v1175_v62, %v1041_v63 }
 0x2ed   : > { %v1178_v2 = vadd.f32 %v1177_v1, %v1041_v63  ;;  %v4930_v4 = vsel %vm1197_vm8, %v1172_v58, %v1213_v61  ;;  %v4276_v10 = vpack.c.bf16 %v4926_v0, %v4932_v6 }
 0x2ee   : > { %v4274_v8 = vpack.c.bf16 %v4930_v4, %v4928_v3  ;;  %v1214_v16 = vmul.f32 0.2, %v1176_v7  ;;  %vm1198_vm13 = vcmp.gt.f32.partialorder %v1176_v7, 0.0 }
 0x2ef   : > { %v1181_v11 = vpop.f32.mrb[22].mxu0  ;;  %v1215_v14 = vmul.f32 0.2, %v1178_v2  ;;  %vm1199_vm9 = vcmp.gt.f32.partialorder %v1178_v2, 0.0 }
 0x2f0   : > { %v1182_v12 = vadd.f32 %v1181_v11, %v1046_v9  ;;  %v1183_v13 = vpop.f32.mrb[23].mxu0  ;;  %4275 = vmatprep.subr.bf16.mxu1 %v4274_v8  ;;  %v4944_v22 = vsel %vm1198_vm13, %v1176_v7, %v1214_v16  ;;  %v1364_v7 = vld [vmem:[%s5707_s8 + $0x8] sm:$0xff]  ;;  %v1365_v8 = vld [vmem:[%s5707_s8 + $0x10] sm:$0xff] }
 0x2f1   : > { %v1184_v15 = vadd.f32 %v1183_v13, %v1046_v9  ;;  %4277 = vmatpush1.bf16.msra.mxu1 %v4276_v10  ;;  %v4940_v20 = vsel %vm1199_vm9, %v1178_v2, %v1215_v14  ;;  %v1363_v2 = vld [vmem:[%s5707_s8] sm:$0xff]  ;;  %v1366_v9 = vld [vmem:[%s5707_s8 + $0x18] sm:$0xff]  ;;  %v1374_v10 = vpop.permute.xlu0 %1373 }
 0x2f2   : > { %vm1200_vm11 = vcmp.gt.f32.partialorder %v1182_v12, 0.0  ;;  %v1216_v17 = vmul.f32 0.2, %v1182_v12 }
 0x2f3   : > { %vm1201_vm14 = vcmp.gt.f32.partialorder %v1184_v15, 0.0  ;;  %v1217_v18 = vmul.f32 0.2, %v1184_v15 }
 0x2f4   : > { %v4938_v19 = vsel %vm1200_vm11, %v1182_v12, %v1216_v17 }
 0x2f5   : > { %v4942_v21 = vsel %vm1201_vm14, %v1184_v15, %v1217_v18  ;;  %v4280_v25 = vpack.c.bf16 %v4938_v19, %v4944_v22  ;;  %v1379_v15 = vpop.permute.xlu1 %1378 }
 0x2f6   : > { %v4278_v23 = vpack.c.bf16 %v4942_v21, %v4940_v20 }
 0x2f8   : > { %4279 = vmatprep.subr.bf16.mxu1 %v4278_v23 }
 0x2f9   : > { %4281 = vmatpush1.bf16.msra.mxu1 %v4280_v25 }
 0x2fc   : > { %4065 = vmatmul.mubr.msk.f32.vlgmr.msra.gmra.mrb[16].mxu1 %vm1048_vm12, %v1234_v26 }
 0x2fd   : > { %1320 = vmatprep.mubr.f32.mxu1 %v4524_v5 }
 0x300   : > { %4066 = vmatmul.mubr.msk.f32.gmra.mrb[18].mxu1 %vm1048_vm12, %v1235_v30 }
 0x301   : > { %1326 = vmatprep.mubr.f32.mxu1 %v4524_v5 }
 0x304   : > { %4067 = vmatmul.mubr.msk.f32.gmra.mrb[20].mxu1 %vm1048_vm12, %v1236_v31  ;;  %v1384_v31 = vpop.permute.xlu0 %1383 }
 0x305   : > { %1332 = vmatprep.mubr.f32.mxu1 %v4524_v5 }
 0x308   : > { %4068 = vmatmul.mubr.msk.f32.gmra.mrb[22].mxu1 %vm1048_vm12, %v1237_v32 }
 0x309   : > { %1612 = vmatprep.mubr.f32.mxu1 %v4524_v5 }
 0x3cf   : > { %v1316_v33 = vpop.f32.mrb[16].mxu1 }
 0x3d0   : > { %v1318_v34 = vpop.f32.mrb[17].mxu1  ;;  %v1347_v35 = vmul.f32 0.2, %v1316_v33  ;;  %vm1339_vm15 = vcmp.gt.f32.partialorder %v1316_v33, 0.0 }
 0x3d1   : > { %v1348_v36 = vmul.f32 0.2, %v1318_v34  ;;  %vm1340_vm0 = vcmp.gt.f32.partialorder %v1318_v34, 0.0 }
 0x3d2   : > { %v1355_v41 = vsel %vm1339_vm15, %v1316_v33, %v1347_v35 }
 0x3d3   : > { %v1322_v37 = vpop.f32.mrb[18].mxu1  ;;  %v1356_v43 = vsel %vm1340_vm0, %v1318_v34, %v1348_v36 }
 0x3d4   : > { %vm1341_vm1 = vcmp.gt.f32.partialorder %v1322_v37, 0.0  ;;  %v1349_v38 = vmul.f32 0.2, %v1322_v37  ;;  %v1324_v39 = vpop.f32.mrb[19].mxu1 }
 0x3d5   : > { %vm1342_vm2 = vcmp.gt.f32.partialorder %v1324_v39, 0.0  ;;  %v1350_v40 = vmul.f32 0.2, %v1324_v39 }
 0x3d6   : > { %v1357_v42 = vsel %vm1341_vm1, %v1322_v37, %v1349_v38 }
 0x3d7   : > { %v4284_v45 = vpack.c.bf16 %v1357_v42, %v1355_v41  ;;  %v1358_v46 = vsel %vm1342_vm2, %v1324_v39, %v1350_v40  ;;  %v1328_v50 = vpop.f32.mrb[20].mxu1 }
 0x3d8   : > { %v1330_v51 = vpop.f32.mrb[21].mxu1  ;;  %v4282_v52 = vpack.c.bf16 %v1358_v46, %v1356_v43  ;;  %v1351_v53 = vmul.f32 0.2, %v1328_v50  ;;  %vm1343_vm3 = vcmp.gt.f32.partialorder %v1328_v50, 0.0  ;;  %v1389_v43 = vpop.permute.xlu1 %1388 }
 0x3d9   : > { %v1352_v54 = vmul.f32 0.2, %v1330_v51  ;;  %vm1344_vm4 = vcmp.gt.f32.partialorder %v1330_v51, 0.0 }
 0x3da   : > { %4283 = vmatprep.subr.bf16.mxu0 %v4282_v52  ;;  %v1359_v59 = vsel %vm1343_vm3, %v1328_v50, %v1351_v53 }
 0x3db   : > { %v1334_v55 = vpop.f32.mrb[22].mxu1  ;;  %4285 = vmatpush1.bf16.msra.mxu0 %v4284_v45  ;;  %v1360_v61 = vsel %vm1344_vm4, %v1330_v51, %v1352_v54 }
 0x3dc   : > { %vm1345_vm5 = vcmp.gt.f32.partialorder %v1334_v55, 0.0  ;;  %v1353_v56 = vmul.f32 0.2, %v1334_v55  ;;  %v1336_v57 = vpop.f32.mrb[23].mxu1 }
 0x3dd   : > { %vm1346_vm6 = vcmp.gt.f32.partialorder %v1336_v57, 0.0  ;;  %v1354_v58 = vmul.f32 0.2, %v1336_v57 }
 0x3de   : > { %v1361_v60 = vsel %vm1345_vm5, %v1334_v55, %v1353_v56 }
 0x3df   : > { %v4288_v62 = vpack.c.bf16 %v1361_v60, %v1359_v59  ;;  %v1362_v63 = vsel %vm1346_vm6, %v1336_v57, %v1354_v58 }
 0x3e0   : > { %v4286_v1 = vpack.c.bf16 %v1362_v63, %v1360_v61  ;;  %v1517_v63 = vld [vmem:[%s5709_s10 + $0x8] sm:$0xff] }
 0x3e2   : > { %4287 = vmatprep.subr.bf16.mxu0 %v4286_v1  ;;  %v1518_v1 = vld [vmem:[%s5709_s10 + $0x10] sm:$0xff] }
 0x3e3   : > { %4289 = vmatpush1.bf16.msra.mxu0 %v4288_v62  ;;  %v1516_v62 = vld [vmem:[%s5709_s10] sm:$0xff] }
 0x3e6   : > { %4069 = vmatmul.mubr.msk.f32.vlgmr.msra.gmra.mrb[24].mxu0 %vm806_vm10, %v1363_v2  ;;  %v1519_v2 = vld [vmem:[%s5709_s10 + $0x18] sm:$0xff] }
 0x3e7   : > { %1473 = vmatprep.mubr.f32.mxu0 %v4524_v5 }
 0x3ea   : > { %4070 = vmatmul.mubr.msk.f32.gmra.mrb[26].mxu0 %vm806_vm10, %v1364_v7  ;;  %v1520_v7 = vld [vmem:[%s5709_s10 + $0x20] sm:$0xff] }
 0x3eb   : > { %1479 = vmatprep.mubr.f32.mxu0 %v4524_v5 }
 0x3ee   : > { %4071 = vmatmul.mubr.msk.f32.gmra.mrb[28].mxu0 %vm806_vm10, %v1365_v8  ;;  %v1521_v8 = vld [vmem:[%s5709_s10 + $0x28] sm:$0xff] }
 0x3ef   : > { %1485 = vmatprep.mubr.f32.mxu0 %v4524_v5 }
 0x3f2   : > { %4072 = vmatmul.mubr.msk.f32.gmra.mrb[30].mxu0 %vm806_vm10, %v1366_v9  ;;  %v1522_v9 = vld [vmem:[%s5709_s10 + $0x30] sm:$0xff] }
 0x3f3   : > { %1758 = vmatprep.mubr.f32.mxu0 %v4524_v5 }
 0x4b9   : > { %v1469_v11 = vpop.f32.mrb[24].mxu0 }
 0x4ba   : > { %v1470_v12 = vadd.f32 %v1469_v11, %v1374_v10  ;;  %v1471_v13 = vpop.f32.mrb[25].mxu0 }
 0x4bb   : > { %v1472_v14 = vadd.f32 %v1471_v13, %v1374_v10  ;;  %v1523_v10 = vld [vmem:[%s5709_s10 + $0x38] sm:$0xff] }
 0x4bc   : > { %v1500_v17 = vmul.f32 0.2, %v1470_v12  ;;  %vm1492_vm7 = vcmp.gt.f32.partialorder %v1470_v12, 0.0 }
 0x4bd   : > { %v1475_v16 = vpop.f32.mrb[26].mxu0  ;;  %v1501_v25 = vmul.f32 0.2, %v1472_v14  ;;  %vm1493_vm8 = vcmp.gt.f32.partialorder %v1472_v14, 0.0 }
 0x4be   : > { %v1476_v18 = vadd.f32 %v1475_v16, %v1379_v15  ;;  %v1477_v23 = vpop.f32.mrb[27].mxu0  ;;  %v1508_v34 = vsel %vm1492_vm7, %v1470_v12, %v1500_v17 }
 0x4bf   : > { %v1478_v26 = vadd.f32 %v1477_v23, %v1379_v15  ;;  %v1509_v40 = vsel %vm1493_vm8, %v1472_v14, %v1501_v25 }
 0x4c0   : > { %vm1494_vm9 = vcmp.gt.f32.partialorder %v1476_v18, 0.0  ;;  %v1502_v30 = vmul.f32 0.2, %v1476_v18 }
 0x4c1   : > { %vm1495_vm11 = vcmp.gt.f32.partialorder %v1478_v26, 0.0  ;;  %v1503_v32 = vmul.f32 0.2, %v1478_v26  ;;  %v1481_v33 = vpop.f32.mrb[28].mxu0 }
 0x4c2   : > { %v1510_v35 = vsel %vm1494_vm9, %v1476_v18, %v1502_v30  ;;  %v1482_v36 = vadd.f32 %v1481_v33, %v1384_v31  ;;  %v1483_v37 = vpop.f32.mrb[29].mxu0 }
 0x4c3   : > { %v4292_v38 = vpack.c.bf16 %v1510_v35, %v1508_v34  ;;  %v1484_v39 = vadd.f32 %v1483_v37, %v1384_v31  ;;  %v1511_v41 = vsel %vm1495_vm11, %v1478_v26, %v1503_v32 }
 0x4c4   : > { %v4290_v42 = vpack.c.bf16 %v1511_v41, %v1509_v40  ;;  %v1504_v46 = vmul.f32 0.2, %v1482_v36  ;;  %vm1496_vm13 = vcmp.gt.f32.partialorder %v1482_v36, 0.0 }
 0x4c5   : > { %v1487_v45 = vpop.f32.mrb[30].mxu0  ;;  %v1505_v52 = vmul.f32 0.2, %v1484_v39  ;;  %vm1497_vm14 = vcmp.gt.f32.partialorder %v1484_v39, 0.0 }
 0x4c6   : > { %v1488_v50 = vadd.f32 %v1487_v45, %v1389_v43  ;;  %v1489_v51 = vpop.f32.mrb[31].mxu0  ;;  %4291 = vmatprep.subr.bf16.mxu1 %v4290_v42  ;;  %v1512_v56 = vsel %vm1496_vm13, %v1482_v36, %v1504_v46 }
 0x4c7   : > { %v1490_v53 = vadd.f32 %v1489_v51, %v1389_v43  ;;  %4293 = vmatpush1.bf16.msra.mxu1 %v4292_v38  ;;  %v1513_v59 = vsel %vm1497_vm14, %v1484_v39, %v1505_v52 }
 0x4c8   : > { %vm1498_vm15 = vcmp.gt.f32.partialorder %v1488_v50, 0.0  ;;  %v1506_v54 = vmul.f32 0.2, %v1488_v50 }
 0x4c9   : > { %vm1499_vm0 = vcmp.gt.f32.partialorder %v1490_v53, 0.0  ;;  %v1507_v55 = vmul.f32 0.2, %v1490_v53 }
 0x4ca   : > { %v1514_v57 = vsel %vm1498_vm15, %v1488_v50, %v1506_v54 }
 0x4cb   : > { %v4296_v58 = vpack.c.bf16 %v1514_v57, %v1512_v56  ;;  %v1515_v60 = vsel %vm1499_vm0, %v1490_v53, %v1507_v55 }
 0x4cc   : > { %v4294_v61 = vpack.c.bf16 %v1515_v60, %v1513_v59 }
 0x4ce   : > { %4295 = vmatprep.subr.bf16.mxu1 %v4294_v61 }
 0x4cf   : > { %4297 = vmatpush1.bf16.msra.mxu1 %v4296_v58 }
 0x4d2   : > { %4073 = vmatmul.mubr.msk.f32.vlgmr.msra.gmra.mrb[24].mxu1 %vm806_vm10, %v1516_v62 }
 0x4d3   : > { %1618 = vmatprep.mubr.f32.mxu1 %v4524_v5 }
 0x4d6   : > { %4074 = vmatmul.mubr.msk.f32.gmra.mrb[26].mxu1 %vm806_vm10, %v1517_v63 }
 0x4d7   : > { %1624 = vmatprep.mubr.f32.mxu1 %v4524_v5 }
 0x4da   : > { %4075 = vmatmul.mubr.msk.f32.gmra.mrb[28].mxu1 %vm806_vm10, %v1518_v1 }
 0x4db   : > { %1630 = vmatprep.mubr.f32.mxu1 %v4524_v5 }
 0x4de   : > { %4076 = vmatmul.mubr.msk.f32.gmra.mrb[30].mxu1 %vm806_vm10, %v1519_v2 }
 0x4df   : > { %1636 = vmatprep.mubr.f32.mxu1 %v4524_v5 }
 0x4e2   : > { %4077 = vmatmul.mubr.msk.f32.gmra.mrb[32].mxu1 %vm806_vm10, %v1520_v7 }
 0x4e3   : > { %1642 = vmatprep.mubr.f32.mxu1 %v4524_v5 }
 0x4e6   : > { %4078 = vmatmul.mubr.msk.f32.gmra.mrb[34].mxu1 %vm806_vm10, %v1521_v8 }
 0x4e7   : > { %1648 = vmatprep.mubr.f32.mxu1 %v4524_v5 }
 0x4ea   : > { %4079 = vmatmul.mubr.msk.f32.gmra.mrb[36].mxu1 %vm806_vm10, %v1522_v9 }
 0x4eb   : > { %1654 = vmatprep.mubr.f32.mxu1 %v4524_v5 }
 0x4ee   : > { %4080 = vmatmul.mubr.msk.f32.gmra.mrb[38].mxu1 %vm806_vm10, %v1523_v10 }
 0x4ef   : > { %2059 = vmatprep.mubr.f32.mxu1 %v4524_v5 }
 0x5a5   : > { %v1614_v11 = vpop.f32.mrb[24].mxu1 }
 0x5a6   : > { %v1616_v12 = vpop.f32.mrb[25].mxu1  ;;  %v5040_v18 = vadd.f32 %v1614_v11, %v4908_v29 }
 0x5a7   : > { %v5034_v16 = vadd.f32 %v1616_v12, %v4904_v27 }
 0x5a9   : > { %v1620_v13 = vpop.f32.mrb[26].mxu1 }
 0x5aa   : > { %v5031_v14 = vadd.f32 %v1620_v13, %v4902_v24  ;;  %v1622_v15 = vpop.f32.mrb[27].mxu1 }
 0x5ab   : > { %v5037_v17 = vadd.f32 %v1622_v15, %v4906_v28 }
 0x5ac   : > { %v4300_v26 = vpack.c.bf16 %v5031_v14, %v5040_v18 }
 0x5ad   : > { %v4298_v23 = vpack.c.bf16 %v5037_v17, %v5034_v16  ;;  %v1626_v25 = vpop.f32.mrb[28].mxu1 }
 0x5ae   : > { %v1628_v30 = vpop.f32.mrb[29].mxu1  ;;  %v5056_v32 = vadd.f32 %v1626_v25, %v4920_v49 }
 0x5af   : > { %4299 = vmatprep.subr.bf16.mxu0 %v4298_v23  ;;  %v5050_v28 = vadd.f32 %v1628_v30, %v4916_v47 }
 0x5b0   : > { %4301 = vmatpush1.bf16.msra.mxu0 %v4300_v26 }
 0x5b1   : > { %v1632_v24 = vpop.f32.mrb[30].mxu1 }
 0x5b2   : > { %v5047_v27 = vadd.f32 %v1632_v24, %v4914_v44  ;;  %v1634_v31 = vpop.f32.mrb[31].mxu1 }
 0x5b3   : > { %v5053_v29 = vadd.f32 %v1634_v31, %v4918_v48  ;;  %v4089_v31 = vld [vmem:[%s5707_s8 + $0x20] sm:$0xff] }
 0x5b4   : > { %v4304_v35 = vpack.c.bf16 %v5047_v27, %v5056_v32 }
 0x5b5   : > { %v4302_v33 = vpack.c.bf16 %v5053_v29, %v5050_v28  ;;  %v1638_v34 = vpop.f32.mrb[32].mxu1 }
 0x5b6   : > { %v1640_v36 = vpop.f32.mrb[33].mxu1  ;;  %v5072_v38 = vadd.f32 %v1638_v34, %v4932_v6  ;;  %v4091_v34 = vld [vmem:[%s5707_s8 + $0x30] sm:$0xff] }
 0x5b7   : > { %4303 = vmatprep.subr.bf16.mxu0 %v4302_v33  ;;  %v5066_v48 = vadd.f32 %v1640_v36, %v4928_v3  ;;  %v4090_v33 = vld [vmem:[%s5707_s8 + $0x28] sm:$0xff]  ;;  %v1820_v36 = vpop.permute.xlu0 %1819 }
 0x5b8   : > { %4305 = vmatpush1.bf16.msra.mxu0 %v4304_v35  ;;  %v4092_v35 = vld [vmem:[%s5707_s8 + $0x38] sm:$0xff] }
 0x5b9   : > { %v1644_v44 = vpop.f32.mrb[34].mxu1 }
 0x5ba   : > { %v5063_v47 = vadd.f32 %v1644_v44, %v4926_v0  ;;  %v1646_v37 = vpop.f32.mrb[35].mxu1 }
 0x5bb   : > { %v5069_v49 = vadd.f32 %v1646_v37, %v4930_v4 }
 0x5bc   : > { %v4308_v41 = vpack.c.bf16 %v5063_v47, %v5072_v38 }
 0x5bd   : > { %v4306_v39 = vpack.c.bf16 %v5069_v49, %v5066_v48  ;;  %v1650_v40 = vpop.f32.mrb[36].mxu1 }
 0x5be   : > { %v1652_v42 = vpop.f32.mrb[37].mxu1  ;;  %v5088_v45 = vadd.f32 %v1650_v40, %v4944_v22  ;;  %v4084_v22 = vld [vmem:[%s5706_s7 + $0x38] sm:$0xff] }
 0x5bf   : > { %4307 = vmatprep.subr.bf16.mxu0 %v4306_v39  ;;  %v5082_v4 = vadd.f32 %v1652_v42, %v4940_v20  ;;  %v4082_v20 = vld [vmem:[%s5706_s7 + $0x28] sm:$0xff] }
 0x5c0   : > { %4309 = vmatpush1.bf16.msra.mxu0 %v4308_v41  ;;  %v1825_v41 = vpop.permute.xlu1 %1824 }
 0x5c1   : > { %v1656_v0 = vpop.f32.mrb[38].mxu1 }
 0x5c2   : > { %v5079_v3 = vadd.f32 %v1656_v0, %v4938_v19  ;;  %v1658_v43 = vpop.f32.mrb[39].mxu1  ;;  %v4081_v19 = vld [vmem:[%s5706_s7 + $0x20] sm:$0xff] }
 0x5c3   : > { %v5085_v6 = vadd.f32 %v1658_v43, %v4942_v21  ;;  %v4083_v21 = vld [vmem:[%s5706_s7 + $0x30] sm:$0xff] }
 0x5c4   : > { %v4312_v50 = vpack.c.bf16 %v5079_v3, %v5088_v45 }
 0x5c5   : > { %v4310_v46 = vpack.c.bf16 %v5085_v6, %v5082_v4 }
 0x5c7   : > { %4311 = vmatprep.subr.bf16.mxu0 %v4310_v46 }
 0x5c8   : > { %4313 = vmatpush1.bf16.msra.mxu0 %v4312_v50 }
 0x5cb   : > { %4085 = vmatmul.mubr.msk.f32.vlgmr.msra.gmra.mrb[32].mxu0 %vm1048_vm12, %v4081_v19 }
 0x5cc   : > { %1764 = vmatprep.mubr.f32.mxu0 %v4524_v5 }
 0x5cf   : > { %4086 = vmatmul.mubr.msk.f32.gmra.mrb[34].mxu0 %vm1048_vm12, %v4082_v20 }
 0x5d0   : > { %1770 = vmatprep.mubr.f32.mxu0 %v4524_v5 }
 0x5d3   : > { %4087 = vmatmul.mubr.msk.f32.gmra.mrb[36].mxu0 %vm1048_vm12, %v4083_v21  ;;  %v1830_v21 = vpop.permute.xlu0 %1829 }
 0x5d4   : > { %1776 = vmatprep.mubr.f32.mxu0 %v4524_v5 }
 0x5d7   : > { %4088 = vmatmul.mubr.msk.f32.gmra.mrb[38].mxu0 %vm1048_vm12, %v4084_v22 }
 0x5d8   : > { %1913 = vmatprep.mubr.f32.mxu0 %v4524_v5 }
 0x69e   : > { %v1760_v51 = vpop.f32.mrb[32].mxu0 }
 0x69f   : > { %v1762_v52 = vpop.f32.mrb[33].mxu0  ;;  %v1791_v53 = vmul.f32 0.2, %v1760_v51  ;;  %vm1783_vm1 = vcmp.gt.f32.partialorder %v1760_v51, 0.0 }
 0x6a0   : > { %v1792_v54 = vmul.f32 0.2, %v1762_v52  ;;  %vm1784_vm2 = vcmp.gt.f32.partialorder %v1762_v52, 0.0 }
 0x6a1   : > { %v1799_v59 = vsel %vm1783_vm1, %v1760_v51, %v1791_v53 }
 0x6a2   : > { %v1766_v55 = vpop.f32.mrb[34].mxu0  ;;  %v1800_v61 = vsel %vm1784_vm2, %v1762_v52, %v1792_v54 }
 0x6a3   : > { %vm1785_vm3 = vcmp.gt.f32.partialorder %v1766_v55, 0.0  ;;  %v1793_v56 = vmul.f32 0.2, %v1766_v55  ;;  %v1768_v57 = vpop.f32.mrb[35].mxu0 }
 0x6a4   : > { %vm1786_vm4 = vcmp.gt.f32.partialorder %v1768_v57, 0.0  ;;  %v1794_v58 = vmul.f32 0.2, %v1768_v57 }
 0x6a5   : > { %v1801_v60 = vsel %vm1785_vm3, %v1766_v55, %v1793_v56 }
 0x6a6   : > { %v4316_v62 = vpack.c.bf16 %v1801_v60, %v1799_v59  ;;  %v1802_v63 = vsel %vm1786_vm4, %v1768_v57, %v1794_v58  ;;  %v1772_v1 = vpop.f32.mrb[36].mxu0 }
 0x6a7   : > { %v1774_v2 = vpop.f32.mrb[37].mxu0  ;;  %v4314_v7 = vpack.c.bf16 %v1802_v63, %v1800_v61  ;;  %v1795_v8 = vmul.f32 0.2, %v1772_v1  ;;  %vm1787_vm5 = vcmp.gt.f32.partialorder %v1772_v1, 0.0  ;;  %v1835_v61 = vpop.permute.xlu1 %1834 }
 0x6a8   : > { %v1796_v9 = vmul.f32 0.2, %v1774_v2  ;;  %vm1788_vm6 = vcmp.gt.f32.partialorder %v1774_v2, 0.0 }
 0x6a9   : > { %4315 = vmatprep.subr.bf16.mxu0 %v4314_v7  ;;  %v1803_v15 = vsel %vm1787_vm5, %v1772_v1, %v1795_v8 }
 0x6aa   : > { %v1778_v10 = vpop.f32.mrb[38].mxu0  ;;  %4317 = vmatpush1.bf16.msra.mxu0 %v4316_v62  ;;  %v1804_v25 = vsel %vm1788_vm6, %v1774_v2, %v1796_v9 }
 0x6ab   : > { %vm1789_vm7 = vcmp.gt.f32.partialorder %v1778_v10, 0.0  ;;  %v1797_v11 = vmul.f32 0.2, %v1778_v10  ;;  %v1780_v12 = vpop.f32.mrb[39].mxu0 }
 0x6ac   : > { %vm1790_vm8 = vcmp.gt.f32.partialorder %v1780_v12, 0.0  ;;  %v1798_v13 = vmul.f32 0.2, %v1780_v12 }
 0x6ad   : > { %v1805_v23 = vsel %vm1789_vm7, %v1778_v10, %v1797_v11 }
 0x6ae   : > { %v4320_v26 = vpack.c.bf16 %v1805_v23, %v1803_v15  ;;  %v1806_v30 = vsel %vm1790_vm8, %v1780_v12, %v1798_v13 }
 0x6af   : > { %v4318_v24 = vpack.c.bf16 %v1806_v30, %v1804_v25  ;;  %v4102_v30 = vld [vmem:[%s5709_s10 + $0x48] sm:$0xff] }
 0x6b1   : > { %4319 = vmatprep.subr.bf16.mxu0 %v4318_v24  ;;  %v4103_v24 = vld [vmem:[%s5709_s10 + $0x50] sm:$0xff] }
 0x6b2   : > { %4321 = vmatpush1.bf16.msra.mxu0 %v4320_v26  ;;  %v4101_v26 = vld [vmem:[%s5709_s10 + $0x40] sm:$0xff] }
 0x6b5   : > { %4097 = vmatmul.mubr.msk.f32.vlgmr.msra.gmra.mrb[40].mxu0 %vm806_vm10, %v4089_v31  ;;  %v4104_v31 = vld [vmem:[%s5709_s10 + $0x58] sm:$0xff] }
 0x6b6   : > { %1919 = vmatprep.mubr.f32.mxu0 %v4524_v5 }
 0x6b9   : > { %4098 = vmatmul.mubr.msk.f32.gmra.mrb[42].mxu0 %vm806_vm10, %v4090_v33  ;;  %v4105_v33 = vld [vmem:[%s5709_s10 + $0x60] sm:$0xff] }
 0x6ba   : > { %1925 = vmatprep.mubr.f32.mxu0 %v4524_v5 }
 0x6bd   : > { %4099 = vmatmul.mubr.msk.f32.gmra.mrb[44].mxu0 %vm806_vm10, %v4091_v34  ;;  %v4106_v34 = vld [vmem:[%s5709_s10 + $0x68] sm:$0xff] }
 0x6be   : > { %1931 = vmatprep.mubr.f32.mxu0 %v4524_v5 }
 0x6c1   : > { %4100 = vmatmul.mubr.msk.f32.gmra.mrb[46].mxu0 %vm806_vm10, %v4092_v35  ;;  %v4107_v35 = vld [vmem:[%s5709_s10 + $0x70] sm:$0xff] }
 0x6c2   : > { %2205 = vmatprep.mubr.f32.mxu0 %v4524_v5 }
 0x788   : > { %v1915_v44 = vpop.f32.mrb[40].mxu0 }
 0x789   : > { %v1916_v37 = vadd.f32 %v1915_v44, %v1820_v36  ;;  %v1917_v39 = vpop.f32.mrb[41].mxu0 }
 0x78a   : > { %v1918_v40 = vadd.f32 %v1917_v39, %v1820_v36  ;;  %v4108_v36 = vld [vmem:[%s5709_s10 + $0x78] sm:$0xff] }
 0x78b   : > { %v1946_v0 = vmul.f32 0.2, %v1916_v37  ;;  %vm1938_vm9 = vcmp.gt.f32.partialorder %v1916_v37, 0.0 }
 0x78c   : > { %v1921_v42 = vpop.f32.mrb[42].mxu0  ;;  %v1947_v50 = vmul.f32 0.2, %v1918_v40  ;;  %vm1939_vm11 = vcmp.gt.f32.partialorder %v1918_v40, 0.0 }
 0x78d   : > { %v1922_v43 = vadd.f32 %v1921_v42, %v1825_v41  ;;  %v1923_v46 = vpop.f32.mrb[43].mxu0  ;;  %v1954_v52 = vsel %vm1938_vm9, %v1916_v37, %v1946_v0 }
 0x78e   : > { %v1924_v19 = vadd.f32 %v1923_v46, %v1825_v41  ;;  %v1955_v58 = vsel %vm1939_vm11, %v1918_v40, %v1947_v50 }
 0x78f   : > { %vm1940_vm13 = vcmp.gt.f32.partialorder %v1922_v43, 0.0  ;;  %v1948_v20 = vmul.f32 0.2, %v1922_v43 }
 0x790   : > { %vm1941_vm14 = vcmp.gt.f32.partialorder %v1924_v19, 0.0  ;;  %v1949_v22 = vmul.f32 0.2, %v1924_v19  ;;  %v1927_v51 = vpop.f32.mrb[44].mxu0 }
 0x791   : > { %v1956_v53 = vsel %vm1940_vm13, %v1922_v43, %v1948_v20  ;;  %v1928_v54 = vadd.f32 %v1927_v51, %v1830_v21  ;;  %v1929_v55 = vpop.f32.mrb[45].mxu0 }
 0x792   : > { %v4324_v56 = vpack.c.bf16 %v1956_v53, %v1954_v52  ;;  %v1930_v57 = vadd.f32 %v1929_v55, %v1830_v21  ;;  %v1957_v59 = vsel %vm1941_vm14, %v1924_v19, %v1949_v22 }
 0x793   : > { %v4322_v60 = vpack.c.bf16 %v1957_v59, %v1955_v58  ;;  %v1950_v63 = vmul.f32 0.2, %v1928_v54  ;;  %vm1942_vm15 = vcmp.gt.f32.partialorder %v1928_v54, 0.0 }
 0x794   : > { %v1933_v62 = vpop.f32.mrb[46].mxu0  ;;  %v1951_v7 = vmul.f32 0.2, %v1930_v57  ;;  %vm1943_vm0 = vcmp.gt.f32.partialorder %v1930_v57, 0.0 }
 0x795   : > { %v1934_v1 = vadd.f32 %v1933_v62, %v1835_v61  ;;  %v1935_v2 = vpop.f32.mrb[47].mxu0  ;;  %4323 = vmatprep.subr.bf16.mxu1 %v4322_v60  ;;  %v1958_v11 = vsel %vm1942_vm15, %v1928_v54, %v1950_v63 }
 0x796   : > { %v1936_v8 = vadd.f32 %v1935_v2, %v1835_v61  ;;  %4325 = vmatpush1.bf16.msra.mxu1 %v4324_v56  ;;  %v1959_v15 = vsel %vm1943_vm0, %v1930_v57, %v1951_v7 }
 0x797   : > { %vm1944_vm1 = vcmp.gt.f32.partialorder %v1934_v1, 0.0  ;;  %v1952_v9 = vmul.f32 0.2, %v1934_v1 }
 0x798   : > { %vm1945_vm2 = vcmp.gt.f32.partialorder %v1936_v8, 0.0  ;;  %v1953_v10 = vmul.f32 0.2, %v1936_v8 }
 0x799   : > { %v1960_v12 = vsel %vm1944_vm1, %v1934_v1, %v1952_v9 }
 0x79a   : > { %v4328_v13 = vpack.c.bf16 %v1960_v12, %v1958_v11  ;;  %v1961_v23 = vsel %vm1945_vm2, %v1936_v8, %v1953_v10 }
 0x79b   : > { %v4326_v25 = vpack.c.bf16 %v1961_v23, %v1959_v15 }
 0x79d   : > { %4327 = vmatprep.subr.bf16.mxu1 %v4326_v25 }
 0x79e   : > { %4329 = vmatpush1.bf16.msra.mxu1 %v4328_v13 }
 0x7a1   : > { %4109 = vmatmul.mubr.msk.f32.vlgmr.msra.gmra.mrb[40].mxu1 %vm806_vm10, %v4101_v26 }
 0x7a2   : > { %2065 = vmatprep.mubr.f32.mxu1 %v4524_v5 }
 0x7a5   : > { %4110 = vmatmul.mubr.msk.f32.gmra.mrb[42].mxu1 %vm806_vm10, %v4102_v30 }
 0x7a6   : > { %2071 = vmatprep.mubr.f32.mxu1 %v4524_v5 }
 0x7a9   : > { %4111 = vmatmul.mubr.msk.f32.gmra.mrb[44].mxu1 %vm806_vm10, %v4103_v24 }
 0x7aa   : > { %2077 = vmatprep.mubr.f32.mxu1 %v4524_v5 }
 0x7ad   : > { %4112 = vmatmul.mubr.msk.f32.gmra.mrb[46].mxu1 %vm806_vm10, %v4104_v31 }
 0x7ae   : > { %2083 = vmatprep.mubr.f32.mxu1 %v4524_v5 }
 0x7b1   : > { %4113 = vmatmul.mubr.msk.f32.gmra.mrb[48].mxu1 %vm806_vm10, %v4105_v33 }
 0x7b2   : > { %2089 = vmatprep.mubr.f32.mxu1 %v4524_v5 }
 0x7b5   : > { %4114 = vmatmul.mubr.msk.f32.gmra.mrb[50].mxu1 %vm806_vm10, %v4106_v34 }
 0x7b6   : > { %2095 = vmatprep.mubr.f32.mxu1 %v4524_v5 }
 0x7b9   : > { %4115 = vmatmul.mubr.msk.f32.gmra.mrb[52].mxu1 %vm806_vm10, %v4107_v35 }
 0x7ba   : > { %2101 = vmatprep.mubr.f32.mxu1 %v4524_v5 }
 0x7bd   : > { %4116 = vmatmul.mubr.msk.f32.gmra.mrb[54].mxu1 %vm806_vm10, %v4108_v36 }
 0x7be   : > { %2506 = vmatprep.mubr.f32.mxu1 %v4524_v5 }
 0x874   : > { %v2061_v44 = vpop.f32.mrb[40].mxu1 }
 0x875   : > { %v2063_v37 = vpop.f32.mrb[41].mxu1  ;;  %v5184_v43 = vadd.f32 %v2061_v44, %v5040_v18 }
 0x876   : > { %v5178_v42 = vadd.f32 %v2063_v37, %v5034_v16 }
 0x878   : > { %v2067_v39 = vpop.f32.mrb[42].mxu1 }
 0x879   : > { %v5175_v40 = vadd.f32 %v2067_v39, %v5031_v14  ;;  %v2069_v41 = vpop.f32.mrb[43].mxu1 }
 0x87a   : > { %v5181_v0 = vadd.f32 %v2069_v41, %v5037_v17 }
 0x87b   : > { %v4332_v19 = vpack.c.bf16 %v5175_v40, %v5184_v43 }
 0x87c   : > { %v4330_v46 = vpack.c.bf16 %v5181_v0, %v5178_v42  ;;  %v2073_v50 = vpop.f32.mrb[44].mxu1 }
 0x87d   : > { %v2075_v20 = vpop.f32.mrb[45].mxu1  ;;  %v5200_v22 = vadd.f32 %v2073_v50, %v5056_v32 }
 0x87e   : > { %4331 = vmatprep.subr.bf16.mxu0 %v4330_v46  ;;  %v5194_v17 = vadd.f32 %v2075_v20, %v5050_v28 }
 0x87f   : > { %4333 = vmatpush1.bf16.msra.mxu0 %v4332_v19 }
 0x880   : > { %v2079_v14 = vpop.f32.mrb[46].mxu1 }
 0x881   : > { %v5191_v16 = vadd.f32 %v2079_v14, %v5047_v27  ;;  %v2081_v21 = vpop.f32.mrb[47].mxu1 }
 0x882   : > { %v5197_v18 = vadd.f32 %v2081_v21, %v5053_v29  ;;  %v4125_v21 = vld [vmem:[%s5707_s8 + $0x40] sm:$0xff] }
 0x883   : > { %v4336_v53 = vpack.c.bf16 %v5191_v16, %v5200_v22 }
 0x884   : > { %v4334_v51 = vpack.c.bf16 %v5197_v18, %v5194_v17  ;;  %v2085_v52 = vpop.f32.mrb[48].mxu1 }
 0x885   : > { %v2087_v54 = vpop.f32.mrb[49].mxu1  ;;  %v5216_v56 = vadd.f32 %v2085_v52, %v5072_v38  ;;  %v4127_v52 = vld [vmem:[%s5707_s8 + $0x50] sm:$0xff] }
 0x886   : > { %4335 = vmatprep.subr.bf16.mxu0 %v4334_v51  ;;  %v5210_v29 = vadd.f32 %v2087_v54, %v5066_v48  ;;  %v4126_v51 = vld [vmem:[%s5707_s8 + $0x48] sm:$0xff]  ;;  %v2267_v54 = vpop.permute.xlu0 %2266 }
 0x887   : > { %4337 = vmatpush1.bf16.msra.mxu0 %v4336_v53  ;;  %v4128_v53 = vld [vmem:[%s5707_s8 + $0x58] sm:$0xff] }
 0x888   : > { %v2091_v27 = vpop.f32.mrb[50].mxu1 }
 0x889   : > { %v5207_v28 = vadd.f32 %v2091_v27, %v5063_v47  ;;  %v2093_v55 = vpop.f32.mrb[51].mxu1 }
 0x88a   : > { %v5213_v32 = vadd.f32 %v2093_v55, %v5069_v49 }
 0x88b   : > { %v4340_v59 = vpack.c.bf16 %v5207_v28, %v5216_v56 }
 0x88c   : > { %v4338_v57 = vpack.c.bf16 %v5213_v32, %v5210_v29  ;;  %v2097_v58 = vpop.f32.mrb[52].mxu1 }
 0x88d   : > { %v2099_v60 = vpop.f32.mrb[53].mxu1  ;;  %v5232_v62 = vadd.f32 %v2097_v58, %v5088_v45  ;;  %v4120_v45 = vld [vmem:[%s5706_s7 + $0x58] sm:$0xff] }
 0x88e   : > { %4339 = vmatprep.subr.bf16.mxu0 %v4338_v57  ;;  %v5226_v49 = vadd.f32 %v2099_v60, %v5082_v4  ;;  %v4118_v4 = vld [vmem:[%s5706_s7 + $0x48] sm:$0xff] }
 0x88f   : > { %4341 = vmatpush1.bf16.msra.mxu0 %v4340_v59  ;;  %v2272_v59 = vpop.permute.xlu1 %2271 }
 0x890   : > { %v2103_v47 = vpop.f32.mrb[54].mxu1 }
 0x891   : > { %v5223_v48 = vadd.f32 %v2103_v47, %v5079_v3  ;;  %v2105_v61 = vpop.f32.mrb[55].mxu1  ;;  %v4117_v3 = vld [vmem:[%s5706_s7 + $0x40] sm:$0xff] }
 0x892   : > { %v5229_v38 = vadd.f32 %v2105_v61, %v5085_v6  ;;  %v4119_v6 = vld [vmem:[%s5706_s7 + $0x50] sm:$0xff] }
 0x893   : > { %v4344_v1 = vpack.c.bf16 %v5223_v48, %v5232_v62 }
 0x894   : > { %v4342_v63 = vpack.c.bf16 %v5229_v38, %v5226_v49 }
 0x896   : > { %4343 = vmatprep.subr.bf16.mxu0 %v4342_v63 }
 0x897   : > { %4345 = vmatpush1.bf16.msra.mxu0 %v4344_v1 }
 0x89a   : > { %4121 = vmatmul.mubr.msk.f32.vlgmr.msra.gmra.mrb[48].mxu0 %vm1048_vm12, %v4117_v3 }
 0x89b   : > { %2211 = vmatprep.mubr.f32.mxu0 %v4524_v5 }
 0x89e   : > { %4122 = vmatmul.mubr.msk.f32.gmra.mrb[50].mxu0 %vm1048_vm12, %v4118_v4 }
 0x89f   : > { %2217 = vmatprep.mubr.f32.mxu0 %v4524_v5 }
 0x8a2   : > { %4123 = vmatmul.mubr.msk.f32.gmra.mrb[52].mxu0 %vm1048_vm12, %v4119_v6  ;;  %v2277_v6 = vpop.permute.xlu0 %2276 }
 0x8a3   : > { %2223 = vmatprep.mubr.f32.mxu0 %v4524_v5 }
 0x8a6   : > { %4124 = vmatmul.mubr.msk.f32.gmra.mrb[54].mxu0 %vm1048_vm12, %v4120_v45 }
 0x8a7   : > { %2360 = vmatprep.mubr.f32.mxu0 %v4524_v5 }
 0x96d   : > { %v2207_v2 = vpop.f32.mrb[48].mxu0 }
 0x96e   : > { %v2209_v7 = vpop.f32.mrb[49].mxu0  ;;  %v2238_v8 = vmul.f32 0.2, %v2207_v2  ;;  %vm2230_vm3 = vcmp.gt.f32.partialorder %v2207_v2, 0.0 }
 0x96f   : > { %v2239_v9 = vmul.f32 0.2, %v2209_v7  ;;  %vm2231_vm4 = vcmp.gt.f32.partialorder %v2209_v7, 0.0 }
 0x970   : > { %v2246_v15 = vsel %vm2230_vm3, %v2207_v2, %v2238_v8 }
 0x971   : > { %v2213_v10 = vpop.f32.mrb[50].mxu0  ;;  %v2247_v25 = vsel %vm2231_vm4, %v2209_v7, %v2239_v9 }
 0x972   : > { %vm2232_vm5 = vcmp.gt.f32.partialorder %v2213_v10, 0.0  ;;  %v2240_v11 = vmul.f32 0.2, %v2213_v10  ;;  %v2215_v12 = vpop.f32.mrb[51].mxu0 }
 0x973   : > { %vm2233_vm6 = vcmp.gt.f32.partialorder %v2215_v12, 0.0  ;;  %v2241_v13 = vmul.f32 0.2, %v2215_v12 }
 0x974   : > { %v2248_v23 = vsel %vm2232_vm5, %v2213_v10, %v2240_v11 }
 0x975   : > { %v4348_v26 = vpack.c.bf16 %v2248_v23, %v2246_v15  ;;  %v2249_v30 = vsel %vm2233_vm6, %v2215_v12, %v2241_v13  ;;  %v2219_v24 = vpop.f32.mrb[52].mxu0 }
 0x976   : > { %v2221_v31 = vpop.f32.mrb[53].mxu0  ;;  %v4346_v33 = vpack.c.bf16 %v2249_v30, %v2247_v25  ;;  %v2242_v34 = vmul.f32 0.2, %v2219_v24  ;;  %vm2234_vm7 = vcmp.gt.f32.partialorder %v2219_v24, 0.0  ;;  %v2282_v25 = vpop.permute.xlu1 %2281 }
 0x977   : > { %v2243_v35 = vmul.f32 0.2, %v2221_v31  ;;  %vm2235_vm8 = vcmp.gt.f32.partialorder %v2221_v31, 0.0 }
 0x978   : > { %4347 = vmatprep.subr.bf16.mxu0 %v4346_v33  ;;  %v2250_v41 = vsel %vm2234_vm7, %v2219_v24, %v2242_v34 }
 0x979   : > { %v2225_v36 = vpop.f32.mrb[54].mxu0  ;;  %4349 = vmatpush1.bf16.msra.mxu0 %v4348_v26  ;;  %v2251_v50 = vsel %vm2235_vm8, %v2221_v31, %v2243_v35 }
 0x97a   : > { %vm2236_vm9 = vcmp.gt.f32.partialorder %v2225_v36, 0.0  ;;  %v2244_v44 = vmul.f32 0.2, %v2225_v36  ;;  %v2227_v37 = vpop.f32.mrb[55].mxu0 }
 0x97b   : > { %vm2237_vm11 = vcmp.gt.f32.partialorder %v2227_v37, 0.0  ;;  %v2245_v39 = vmul.f32 0.2, %v2227_v37 }
 0x97c   : > { %v2252_v46 = vsel %vm2236_vm9, %v2225_v36, %v2244_v44 }
 0x97d   : > { %v4352_v19 = vpack.c.bf16 %v2252_v46, %v2250_v41  ;;  %v2253_v20 = vsel %vm2237_vm11, %v2227_v37, %v2245_v39 }
 0x97e   : > { %v4350_v14 = vpack.c.bf16 %v2253_v20, %v2251_v50  ;;  %v4138_v20 = vld [vmem:[%s5709_s10 + $0x88] sm:$0xff] }
 0x980   : > { %4351 = vmatprep.subr.bf16.mxu0 %v4350_v14  ;;  %v4139_v14 = vld [vmem:[%s5709_s10 + $0x90] sm:$0xff] }
 0x981   : > { %4353 = vmatpush1.bf16.msra.mxu0 %v4352_v19  ;;  %v4137_v19 = vld [vmem:[%s5709_s10 + $0x80] sm:$0xff] }
 0x984   : > { %4133 = vmatmul.mubr.msk.f32.vlgmr.msra.gmra.mrb[56].mxu0 %vm806_vm10, %v4125_v21  ;;  %v4140_v21 = vld [vmem:[%s5709_s10 + $0x98] sm:$0xff] }
 0x985   : > { %2366 = vmatprep.mubr.f32.mxu0 %v4524_v5 }
 0x988   : > { %4134 = vmatmul.mubr.msk.f32.gmra.mrb[58].mxu0 %vm806_vm10, %v4126_v51  ;;  %v4141_v51 = vld [vmem:[%s5709_s10 + $0xa0] sm:$0xff] }
 0x989   : > { %2372 = vmatprep.mubr.f32.mxu0 %v4524_v5 }
 0x98c   : > { %4135 = vmatmul.mubr.msk.f32.gmra.mrb[60].mxu0 %vm806_vm10, %v4127_v52  ;;  %v4142_v52 = vld [vmem:[%s5709_s10 + $0xa8] sm:$0xff] }
 0x98d   : > { %2378 = vmatprep.mubr.f32.mxu0 %v4524_v5 }
 0x990   : > { %4136 = vmatmul.mubr.msk.f32.gmra.mrb[62].mxu0 %vm806_vm10, %v4128_v53  ;;  %v4143_v53 = vld [vmem:[%s5709_s10 + $0xb0] sm:$0xff] }
 0x991   : > { %2652 = vmatprep.mubr.f32.mxu0 %v4524_v5 }
 0xa57   : > { %v2362_v27 = vpop.f32.mrb[56].mxu0 }
 0xa58   : > { %v2363_v55 = vadd.f32 %v2362_v27, %v2267_v54  ;;  %v2364_v57 = vpop.f32.mrb[57].mxu0 }
 0xa59   : > { %v2365_v58 = vadd.f32 %v2364_v57, %v2267_v54  ;;  %v4144_v54 = vld [vmem:[%s5709_s10 + $0xb8] sm:$0xff] }
 0xa5a   : > { %v2393_v47 = vmul.f32 0.2, %v2363_v55  ;;  %vm2385_vm13 = vcmp.gt.f32.partialorder %v2363_v55, 0.0 }
 0xa5b   : > { %v2368_v60 = vpop.f32.mrb[58].mxu0  ;;  %v2394_v1 = vmul.f32 0.2, %v2365_v58  ;;  %vm2386_vm14 = vcmp.gt.f32.partialorder %v2365_v58, 0.0 }
 0xa5c   : > { %v2369_v61 = vadd.f32 %v2368_v60, %v2272_v59  ;;  %v2370_v63 = vpop.f32.mrb[59].mxu0  ;;  %v2401_v7 = vsel %vm2385_vm13, %v2363_v55, %v2393_v47 }
 0xa5d   : > { %v2371_v3 = vadd.f32 %v2370_v63, %v2272_v59  ;;  %v2402_v13 = vsel %vm2386_vm14, %v2365_v58, %v2394_v1 }
 0xa5e   : > { %vm2387_vm15 = vcmp.gt.f32.partialorder %v2369_v61, 0.0  ;;  %v2395_v4 = vmul.f32 0.2, %v2369_v61 }
 0xa5f   : > { %vm2388_vm0 = vcmp.gt.f32.partialorder %v2371_v3, 0.0  ;;  %v2396_v45 = vmul.f32 0.2, %v2371_v3  ;;  %v2374_v2 = vpop.f32.mrb[60].mxu0 }
 0xa60   : > { %v2403_v8 = vsel %vm2387_vm15, %v2369_v61, %v2395_v4  ;;  %v2375_v9 = vadd.f32 %v2374_v2, %v2277_v6  ;;  %v2376_v10 = vpop.f32.mrb[61].mxu0 }
 0xa61   : > { %v4356_v11 = vpack.c.bf16 %v2403_v8, %v2401_v7  ;;  %v2377_v12 = vadd.f32 %v2376_v10, %v2277_v6  ;;  %v2404_v15 = vsel %vm2388_vm0, %v2371_v3, %v2396_v45 }
 0xa62   : > { %v4354_v23 = vpack.c.bf16 %v2404_v15, %v2402_v13  ;;  %v2397_v30 = vmul.f32 0.2, %v2375_v9  ;;  %vm2389_vm1 = vcmp.gt.f32.partialorder %v2375_v9, 0.0 }
 0xa63   : > { %v2380_v26 = vpop.f32.mrb[62].mxu0  ;;  %v2398_v33 = vmul.f32 0.2, %v2377_v12  ;;  %vm2390_vm2 = vcmp.gt.f32.partialorder %v2377_v12, 0.0 }
 0xa64   : > { %v2381_v24 = vadd.f32 %v2380_v26, %v2282_v25  ;;  %v2382_v31 = vpop.f32.mrb[63].mxu0  ;;  %4355 = vmatprep.subr.bf16.mxu1 %v4354_v23  ;;  %v2405_v44 = vsel %vm2389_vm1, %v2375_v9, %v2397_v30 }
 0xa65   : > { %v2383_v34 = vadd.f32 %v2382_v31, %v2282_v25  ;;  %4357 = vmatpush1.bf16.msra.mxu1 %v4356_v11  ;;  %v2406_v41 = vsel %vm2390_vm2, %v2377_v12, %v2398_v33 }
 0xa66   : > { %vm2391_vm3 = vcmp.gt.f32.partialorder %v2381_v24, 0.0  ;;  %v2399_v35 = vmul.f32 0.2, %v2381_v24 }
 0xa67   : > { %vm2392_vm4 = vcmp.gt.f32.partialorder %v2383_v34, 0.0  ;;  %v2400_v36 = vmul.f32 0.2, %v2383_v34 }
 0xa68   : > { %v2407_v37 = vsel %vm2391_vm3, %v2381_v24, %v2399_v35 }
 0xa69   : > { %v4360_v39 = vpack.c.bf16 %v2407_v37, %v2405_v44  ;;  %v2408_v46 = vsel %vm2392_vm4, %v2383_v34, %v2400_v36 }
 0xa6a   : > { %v4358_v50 = vpack.c.bf16 %v2408_v46, %v2406_v41 }
 0xa6c   : > { %4359 = vmatprep.subr.bf16.mxu1 %v4358_v50 }
 0xa6d   : > { %4361 = vmatpush1.bf16.msra.mxu1 %v4360_v39 }
 0xa70   : > { %4145 = vmatmul.mubr.msk.f32.vlgmr.msra.gmra.mrb[56].mxu1 %vm806_vm10, %v4137_v19 }
 0xa71   : > { %2512 = vmatprep.mubr.f32.mxu1 %v4524_v5 }
 0xa74   : > { %4146 = vmatmul.mubr.msk.f32.gmra.mrb[58].mxu1 %vm806_vm10, %v4138_v20 }
 0xa75   : > { %2518 = vmatprep.mubr.f32.mxu1 %v4524_v5 }
 0xa78   : > { %4147 = vmatmul.mubr.msk.f32.gmra.mrb[60].mxu1 %vm806_vm10, %v4139_v14 }
 0xa79   : > { %2524 = vmatprep.mubr.f32.mxu1 %v4524_v5 }
 0xa7c   : > { %4148 = vmatmul.mubr.msk.f32.gmra.mrb[62].mxu1 %vm806_vm10, %v4140_v21 }
 0xa7d   : > { %2530 = vmatprep.mubr.f32.mxu1 %v4524_v5 }
 0xa80   : > { %4149 = vmatmul.mubr.msk.f32.gmra.mrb[64].mxu1 %vm806_vm10, %v4141_v51 }
 0xa81   : > { %2536 = vmatprep.mubr.f32.mxu1 %v4524_v5 }
 0xa84   : > { %4150 = vmatmul.mubr.msk.f32.gmra.mrb[66].mxu1 %vm806_vm10, %v4142_v52 }
 0xa85   : > { %2542 = vmatprep.mubr.f32.mxu1 %v4524_v5 }
 0xa88   : > { %4151 = vmatmul.mubr.msk.f32.gmra.mrb[68].mxu1 %vm806_vm10, %v4143_v53 }
 0xa89   : > { %2548 = vmatprep.mubr.f32.mxu1 %v4524_v5 }
 0xa8c   : > { %4152 = vmatmul.mubr.msk.f32.gmra.mrb[70].mxu1 %vm806_vm10, %v4144_v54 }
 0xa8d   : > { %2953 = vmatprep.mubr.f32.mxu1 %v4524_v5 }
 0xb43   : > { %v2508_v27 = vpop.f32.mrb[56].mxu1 }
 0xb44   : > { %v2510_v55 = vpop.f32.mrb[57].mxu1  ;;  %v5328_v61 = vadd.f32 %v2508_v27, %v5184_v43 }
 0xb45   : > { %v5322_v60 = vadd.f32 %v2510_v55, %v5178_v42 }
 0xb47   : > { %v2514_v57 = vpop.f32.mrb[58].mxu1 }
 0xb48   : > { %v5319_v58 = vadd.f32 %v2514_v57, %v5175_v40  ;;  %v2516_v59 = vpop.f32.mrb[59].mxu1 }
 0xb49   : > { %v5325_v47 = vadd.f32 %v2516_v59, %v5181_v0 }
 0xb4a   : > { %v4364_v3 = vpack.c.bf16 %v5319_v58, %v5328_v61 }
 0xb4b   : > { %v4362_v63 = vpack.c.bf16 %v5325_v47, %v5322_v60  ;;  %v2520_v1 = vpop.f32.mrb[60].mxu1 }
 0xb4c   : > { %v2522_v4 = vpop.f32.mrb[61].mxu1  ;;  %v5344_v45 = vadd.f32 %v2520_v1, %v5200_v22 }
 0xb4d   : > { %4363 = vmatprep.subr.bf16.mxu0 %v4362_v63  ;;  %v5338_v0 = vadd.f32 %v2522_v4, %v5194_v17 }
 0xb4e   : > { %4365 = vmatpush1.bf16.msra.mxu0 %v4364_v3 }
 0xb4f   : > { %v2526_v40 = vpop.f32.mrb[62].mxu1 }
 0xb50   : > { %v5335_v42 = vadd.f32 %v2526_v40, %v5191_v16  ;;  %v2528_v6 = vpop.f32.mrb[63].mxu1 }
 0xb51   : > { %v5341_v43 = vadd.f32 %v2528_v6, %v5197_v18  ;;  %v4161_v6 = vld [vmem:[%s5707_s8 + $0x60] sm:$0xff] }
 0xb52   : > { %v4368_v8 = vpack.c.bf16 %v5335_v42, %v5344_v45 }
 0xb53   : > { %v4366_v2 = vpack.c.bf16 %v5341_v43, %v5338_v0  ;;  %v2532_v7 = vpop.f32.mrb[64].mxu1 }
 0xb54   : > { %v2534_v9 = vpop.f32.mrb[65].mxu1  ;;  %v5360_v11 = vadd.f32 %v2532_v7, %v5216_v56  ;;  %v4163_v7 = vld [vmem:[%s5707_s8 + $0x70] sm:$0xff] }
 0xb55   : > { %4367 = vmatprep.subr.bf16.mxu0 %v4366_v2  ;;  %v5354_v18 = vadd.f32 %v2534_v9, %v5210_v29  ;;  %v4162_v2 = vld [vmem:[%s5707_s8 + $0x68] sm:$0xff]  ;;  %v2714_v9 = vpop.permute.xlu0 %2713 }
 0xb56   : > { %4369 = vmatpush1.bf16.msra.mxu0 %v4368_v8  ;;  %v4164_v8 = vld [vmem:[%s5707_s8 + $0x78] sm:$0xff] }
 0xb57   : > { %v2538_v16 = vpop.f32.mrb[66].mxu1 }
 0xb58   : > { %v5351_v17 = vadd.f32 %v2538_v16, %v5207_v28  ;;  %v2540_v10 = vpop.f32.mrb[67].mxu1 }
 0xb59   : > { %v5357_v22 = vadd.f32 %v2540_v10, %v5213_v32 }
 0xb5a   : > { %v4372_v15 = vpack.c.bf16 %v5351_v17, %v5360_v11 }
 0xb5b   : > { %v4370_v12 = vpack.c.bf16 %v5357_v22, %v5354_v18  ;;  %v2544_v13 = vpop.f32.mrb[68].mxu1 }
 0xb5c   : > { %v2546_v23 = vpop.f32.mrb[69].mxu1  ;;  %v5376_v26 = vadd.f32 %v2544_v13, %v5232_v62  ;;  %v4156_v62 = vld [vmem:[%s5706_s7 + $0x78] sm:$0xff] }
 0xb5d   : > { %4371 = vmatprep.subr.bf16.mxu0 %v4370_v12  ;;  %v5370_v32 = vadd.f32 %v2546_v23, %v5226_v49  ;;  %v4154_v49 = vld [vmem:[%s5706_s7 + $0x68] sm:$0xff] }
 0xb5e   : > { %4373 = vmatpush1.bf16.msra.mxu0 %v4372_v15  ;;  %v2719_v15 = vpop.permute.xlu1 %2718 }
 0xb5f   : > { %v2550_v28 = vpop.f32.mrb[70].mxu1 }
 0xb60   : > { %v5367_v29 = vadd.f32 %v2550_v28, %v5223_v48  ;;  %v2552_v25 = vpop.f32.mrb[71].mxu1  ;;  %v4153_v48 = vld [vmem:[%s5706_s7 + $0x60] sm:$0xff] }
 0xb61   : > { %v5373_v56 = vadd.f32 %v2552_v25, %v5229_v38  ;;  %v4155_v38 = vld [vmem:[%s5706_s7 + $0x70] sm:$0xff] }
 0xb62   : > { %v4376_v24 = vpack.c.bf16 %v5367_v29, %v5376_v26 }
 0xb63   : > { %v4374_v30 = vpack.c.bf16 %v5373_v56, %v5370_v32 }
 0xb65   : > { %4375 = vmatprep.subr.bf16.mxu0 %v4374_v30 }
 0xb66   : > { %4377 = vmatpush1.bf16.msra.mxu0 %v4376_v24 }
 0xb69   : > { %4157 = vmatmul.mubr.msk.f32.vlgmr.msra.gmra.mrb[64].mxu0 %vm1048_vm12, %v4153_v48 }
 0xb6a   : > { %2658 = vmatprep.mubr.f32.mxu0 %v4524_v5 }
 0xb6d   : > { %4158 = vmatmul.mubr.msk.f32.gmra.mrb[66].mxu0 %vm1048_vm12, %v4154_v49 }
 0xb6e   : > { %2664 = vmatprep.mubr.f32.mxu0 %v4524_v5 }
 0xb71   : > { %4159 = vmatmul.mubr.msk.f32.gmra.mrb[68].mxu0 %vm1048_vm12, %v4155_v38  ;;  %v2724_v38 = vpop.permute.xlu0 %2723 }
 0xb72   : > { %2670 = vmatprep.mubr.f32.mxu0 %v4524_v5 }
 0xb75   : > { %4160 = vmatmul.mubr.msk.f32.gmra.mrb[70].mxu0 %vm1048_vm12, %v4156_v62 }
 0xb76   : > { %2807 = vmatprep.mubr.f32.mxu0 %v4524_v5 }
 0xc3c   : > { %v2654_v31 = vpop.f32.mrb[64].mxu0 }
 0xc3d   : > { %v2656_v33 = vpop.f32.mrb[65].mxu0  ;;  %v2685_v34 = vmul.f32 0.2, %v2654_v31  ;;  %vm2677_vm5 = vcmp.gt.f32.partialorder %v2654_v31, 0.0 }
 0xc3e   : > { %v2686_v35 = vmul.f32 0.2, %v2656_v33  ;;  %vm2678_vm6 = vcmp.gt.f32.partialorder %v2656_v33, 0.0 }
 0xc3f   : > { %v2693_v41 = vsel %vm2677_vm5, %v2654_v31, %v2685_v34 }
 0xc40   : > { %v2660_v36 = vpop.f32.mrb[66].mxu0  ;;  %v2694_v50 = vsel %vm2678_vm6, %v2656_v33, %v2686_v35 }
 0xc41   : > { %vm2679_vm7 = vcmp.gt.f32.partialorder %v2660_v36, 0.0  ;;  %v2687_v44 = vmul.f32 0.2, %v2660_v36  ;;  %v2662_v37 = vpop.f32.mrb[67].mxu0 }
 0xc42   : > { %vm2680_vm8 = vcmp.gt.f32.partialorder %v2662_v37, 0.0  ;;  %v2688_v39 = vmul.f32 0.2, %v2662_v37 }
 0xc43   : > { %v2695_v46 = vsel %vm2679_vm7, %v2660_v36, %v2687_v44 }
 0xc44   : > { %v4380_v19 = vpack.c.bf16 %v2695_v46, %v2693_v41  ;;  %v2696_v20 = vsel %vm2680_vm8, %v2662_v37, %v2688_v39  ;;  %v2666_v14 = vpop.f32.mrb[68].mxu0 }
 0xc45   : > { %v2668_v21 = vpop.f32.mrb[69].mxu0  ;;  %v4378_v51 = vpack.c.bf16 %v2696_v20, %v2694_v50  ;;  %v2689_v52 = vmul.f32 0.2, %v2666_v14  ;;  %vm2681_vm9 = vcmp.gt.f32.partialorder %v2666_v14, 0.0  ;;  %v2729_v50 = vpop.permute.xlu1 %2728 }
 0xc46   : > { %v2690_v53 = vmul.f32 0.2, %v2668_v21  ;;  %vm2682_vm11 = vcmp.gt.f32.partialorder %v2668_v21, 0.0 }
 0xc47   : > { %4379 = vmatprep.subr.bf16.mxu0 %v4378_v51  ;;  %v2697_v59 = vsel %vm2681_vm9, %v2666_v14, %v2689_v52 }
 0xc48   : > { %v2672_v54 = vpop.f32.mrb[70].mxu0  ;;  %4381 = vmatpush1.bf16.msra.mxu0 %v4380_v19  ;;  %v2698_v1 = vsel %vm2682_vm11, %v2668_v21, %v2690_v53 }
 0xc49   : > { %vm2683_vm13 = vcmp.gt.f32.partialorder %v2672_v54, 0.0  ;;  %v2691_v27 = vmul.f32 0.2, %v2672_v54  ;;  %v2674_v55 = vpop.f32.mrb[71].mxu0 }
 0xc4a   : > { %vm2684_vm14 = vcmp.gt.f32.partialorder %v2674_v55, 0.0  ;;  %v2692_v57 = vmul.f32 0.2, %v2674_v55 }
 0xc4b   : > { %v2699_v63 = vsel %vm2683_vm13, %v2672_v54, %v2691_v27 }
 0xc4c   : > { %v4384_v3 = vpack.c.bf16 %v2699_v63, %v2697_v59  ;;  %v2700_v4 = vsel %vm2684_vm14, %v2674_v55, %v2692_v57 }
 0xc4d   : > { %v4382_v40 = vpack.c.bf16 %v2700_v4, %v2698_v1  ;;  %v4174_v4 = vld [vmem:[%s5709_s10 + $0xc8] sm:$0xff] }
 0xc4f   : > { %4383 = vmatprep.subr.bf16.mxu0 %v4382_v40  ;;  %v4175_v40 = vld [vmem:[%s5709_s10 + $0xd0] sm:$0xff] }
 0xc50   : > { %4385 = vmatpush1.bf16.msra.mxu0 %v4384_v3  ;;  %v4173_v3 = vld [vmem:[%s5709_s10 + $0xc0] sm:$0xff] }
 0xc53   : > { %4169 = vmatmul.mubr.msk.f32.vlgmr.msra.gmra.mrb[72].mxu0 %vm806_vm10, %v4161_v6  ;;  %v4176_v6 = vld [vmem:[%s5709_s10 + $0xd8] sm:$0xff] }
 0xc54   : > { %2813 = vmatprep.mubr.f32.mxu0 %v4524_v5 }
 0xc57   : > { %4170 = vmatmul.mubr.msk.f32.gmra.mrb[74].mxu0 %vm806_vm10, %v4162_v2  ;;  %v4177_v2 = vld [vmem:[%s5709_s10 + $0xe0] sm:$0xff] }
 0xc58   : > { %2819 = vmatprep.mubr.f32.mxu0 %v4524_v5 }
 0xc5b   : > { %4171 = vmatmul.mubr.msk.f32.gmra.mrb[76].mxu0 %vm806_vm10, %v4163_v7  ;;  %v4178_v7 = vld [vmem:[%s5709_s10 + $0xe8] sm:$0xff] }
 0xc5c   : > { %2825 = vmatprep.mubr.f32.mxu0 %v4524_v5 }
 0xc5f   : > { %4172 = vmatmul.mubr.msk.f32.gmra.mrb[78].mxu0 %vm806_vm10, %v4164_v8  ;;  %v4179_v8 = vld [vmem:[%s5709_s10 + $0xf0] sm:$0xff] }
 0xc60   : > { %3099 = vmatprep.mubr.f32.mxu0 %v4524_v5 }
 0xd26   : > { %v2809_v16 = vpop.f32.mrb[72].mxu0 }
 0xd27   : > { %v2810_v10 = vadd.f32 %v2809_v16, %v2714_v9  ;;  %v2811_v12 = vpop.f32.mrb[73].mxu0 }
 0xd28   : > { %v2812_v13 = vadd.f32 %v2811_v12, %v2714_v9  ;;  %v4180_v9 = vld [vmem:[%s5709_s10 + $0xf8] sm:$0xff] }
 0xd29   : > { %v2840_v28 = vmul.f32 0.2, %v2810_v10  ;;  %vm2832_vm15 = vcmp.gt.f32.partialorder %v2810_v10, 0.0 }
 0xd2a   : > { %v2815_v23 = vpop.f32.mrb[74].mxu0  ;;  %v2841_v24 = vmul.f32 0.2, %v2812_v13  ;;  %vm2833_vm0 = vcmp.gt.f32.partialorder %v2812_v13, 0.0 }
 0xd2b   : > { %v2816_v25 = vadd.f32 %v2815_v23, %v2719_v15  ;;  %v2817_v30 = vpop.f32.mrb[75].mxu0  ;;  %v2848_v33 = vsel %vm2832_vm15, %v2810_v10, %v2840_v28 }
 0xd2c   : > { %v2818_v48 = vadd.f32 %v2817_v30, %v2719_v15  ;;  %v2849_v39 = vsel %vm2833_vm0, %v2812_v13, %v2841_v24 }
 0xd2d   : > { %vm2834_vm1 = vcmp.gt.f32.partialorder %v2816_v25, 0.0  ;;  %v2842_v49 = vmul.f32 0.2, %v2816_v25 }
 0xd2e   : > { %vm2835_vm2 = vcmp.gt.f32.partialorder %v2818_v48, 0.0  ;;  %v2843_v62 = vmul.f32 0.2, %v2818_v48  ;;  %v2821_v31 = vpop.f32.mrb[76].mxu0 }
 0xd2f   : > { %v2850_v34 = vsel %vm2834_vm1, %v2816_v25, %v2842_v49  ;;  %v2822_v35 = vadd.f32 %v2821_v31, %v2724_v38  ;;  %v2823_v36 = vpop.f32.mrb[77].mxu0 }
 0xd30   : > { %v4388_v44 = vpack.c.bf16 %v2850_v34, %v2848_v33  ;;  %v2824_v37 = vadd.f32 %v2823_v36, %v2724_v38  ;;  %v2851_v41 = vsel %vm2835_vm2, %v2818_v48, %v2843_v62 }
 0xd31   : > { %v4386_v46 = vpack.c.bf16 %v2851_v41, %v2849_v39  ;;  %v2844_v20 = vmul.f32 0.2, %v2822_v35  ;;  %vm2836_vm3 = vcmp.gt.f32.partialorder %v2822_v35, 0.0 }
 0xd32   : > { %v2827_v19 = vpop.f32.mrb[78].mxu0  ;;  %v2845_v51 = vmul.f32 0.2, %v2824_v37  ;;  %vm2837_vm4 = vcmp.gt.f32.partialorder %v2824_v37, 0.0 }
 0xd33   : > { %v2828_v14 = vadd.f32 %v2827_v19, %v2729_v50  ;;  %v2829_v21 = vpop.f32.mrb[79].mxu0  ;;  %4387 = vmatprep.subr.bf16.mxu1 %v4386_v46  ;;  %v2852_v27 = vsel %vm2836_vm3, %v2822_v35, %v2844_v20 }
 0xd34   : > { %v2830_v52 = vadd.f32 %v2829_v21, %v2729_v50  ;;  %4389 = vmatpush1.bf16.msra.mxu1 %v4388_v44  ;;  %v2853_v59 = vsel %vm2837_vm4, %v2824_v37, %v2845_v51 }
 0xd35   : > { %vm2838_vm5 = vcmp.gt.f32.partialorder %v2828_v14, 0.0  ;;  %v2846_v53 = vmul.f32 0.2, %v2828_v14 }
 0xd36   : > { %vm2839_vm6 = vcmp.gt.f32.partialorder %v2830_v52, 0.0  ;;  %v2847_v54 = vmul.f32 0.2, %v2830_v52 }
 0xd37   : > { %v2854_v55 = vsel %vm2838_vm5, %v2828_v14, %v2846_v53 }
 0xd38   : > { %v4392_v57 = vpack.c.bf16 %v2854_v55, %v2852_v27  ;;  %v2855_v63 = vsel %vm2839_vm6, %v2830_v52, %v2847_v54 }
 0xd39   : > { %v4390_v1 = vpack.c.bf16 %v2855_v63, %v2853_v59 }
 0xd3b   : > { %4391 = vmatprep.subr.bf16.mxu1 %v4390_v1 }
 0xd3c   : > { %4393 = vmatpush1.bf16.msra.mxu1 %v4392_v57 }
 0xd3f   : > { %4181 = vmatmul.mubr.msk.f32.vlgmr.msra.gmra.mrb[72].mxu1 %vm806_vm10, %v4173_v3 }
 0xd40   : > { %2959 = vmatprep.mubr.f32.mxu1 %v4524_v5 }
 0xd43   : > { %4182 = vmatmul.mubr.msk.f32.gmra.mrb[74].mxu1 %vm806_vm10, %v4174_v4 }
 0xd44   : > { %2965 = vmatprep.mubr.f32.mxu1 %v4524_v5 }
 0xd47   : > { %4183 = vmatmul.mubr.msk.f32.gmra.mrb[76].mxu1 %vm806_vm10, %v4175_v40 }
 0xd48   : > { %2971 = vmatprep.mubr.f32.mxu1 %v4524_v5 }
 0xd4b   : > { %4184 = vmatmul.mubr.msk.f32.gmra.mrb[78].mxu1 %vm806_vm10, %v4176_v6 }
 0xd4c   : > { %2977 = vmatprep.mubr.f32.mxu1 %v4524_v5 }
 0xd4f   : > { %4185 = vmatmul.mubr.msk.f32.gmra.mrb[80].mxu1 %vm806_vm10, %v4177_v2 }
 0xd50   : > { %2983 = vmatprep.mubr.f32.mxu1 %v4524_v5 }
 0xd53   : > { %4186 = vmatmul.mubr.msk.f32.gmra.mrb[82].mxu1 %vm806_vm10, %v4178_v7 }
 0xd54   : > { %2989 = vmatprep.mubr.f32.mxu1 %v4524_v5 }
 0xd57   : > { %4187 = vmatmul.mubr.msk.f32.gmra.mrb[84].mxu1 %vm806_vm10, %v4179_v8 }
 0xd58   : > { %2995 = vmatprep.mubr.f32.mxu1 %v4524_v5 }
 0xd5b   : > { %4188 = vmatmul.mubr.msk.f32.gmra.mrb[86].mxu1 %vm806_vm10, %v4180_v9 }
 0xd5c   : > { %3400 = vmatprep.mubr.f32.mxu1 %v4524_v5 }
 0xe12   : > { %v2955_v16 = vpop.f32.mrb[72].mxu1 }
 0xe13   : > { %v2957_v10 = vpop.f32.mrb[73].mxu1  ;;  %v5472_v25 = vadd.f32 %v2955_v16, %v5328_v61 }
 0xe14   : > { %v5466_v23 = vadd.f32 %v2957_v10, %v5322_v60 }
 0xe16   : > { %v2961_v12 = vpop.f32.mrb[74].mxu1 }
 0xe17   : > { %v5463_v13 = vadd.f32 %v2961_v12, %v5319_v58  ;;  %v2963_v15 = vpop.f32.mrb[75].mxu1 }
 0xe18   : > { %v5469_v28 = vadd.f32 %v2963_v15, %v5325_v47 }
 0xe19   : > { %v4396_v48 = vpack.c.bf16 %v5463_v13, %v5472_v25 }
 0xe1a   : > { %v4394_v30 = vpack.c.bf16 %v5469_v28, %v5466_v23  ;;  %v2967_v24 = vpop.f32.mrb[76].mxu1 }
 0xe1b   : > { %v2969_v49 = vpop.f32.mrb[77].mxu1  ;;  %v5488_v62 = vadd.f32 %v2967_v24, %v5344_v45 }
 0xe1c   : > { %4395 = vmatprep.subr.bf16.mxu0 %v4394_v30  ;;  %v5482_v47 = vadd.f32 %v2969_v49, %v5338_v0 }
 0xe1d   : > { %4397 = vmatpush1.bf16.msra.mxu0 %v4396_v48 }
 0xe1e   : > { %v2973_v58 = vpop.f32.mrb[78].mxu1 }
 0xe1f   : > { %v5479_v60 = vadd.f32 %v2973_v58, %v5335_v42  ;;  %v2975_v38 = vpop.f32.mrb[79].mxu1 }
 0xe20   : > { %v5485_v61 = vadd.f32 %v2975_v38, %v5341_v43  ;;  %v4197_v38 = vld [vmem:[%s5707_s8 + $0x80] sm:$0xff] }
 0xe21   : > { %v4400_v34 = vpack.c.bf16 %v5479_v60, %v5488_v62 }
 0xe22   : > { %v4398_v31 = vpack.c.bf16 %v5485_v61, %v5482_v47  ;;  %v2979_v33 = vpop.f32.mrb[80].mxu1 }
 0xe23   : > { %v2981_v35 = vpop.f32.mrb[81].mxu1  ;;  %v5504_v44 = vadd.f32 %v2979_v33, %v5360_v11  ;;  %v4199_v33 = vld [vmem:[%s5707_s8 + $0x90] sm:$0xff] }
 0xe24   : > { %4399 = vmatprep.subr.bf16.mxu0 %v4398_v31  ;;  %v5498_v43 = vadd.f32 %v2981_v35, %v5354_v18  ;;  %v4198_v31 = vld [vmem:[%s5707_s8 + $0x88] sm:$0xff]  ;;  %v3161_v35 = vpop.permute.xlu0 %3160 }
 0xe25   : > { %4401 = vmatpush1.bf16.msra.mxu0 %v4400_v34  ;;  %v4200_v34 = vld [vmem:[%s5707_s8 + $0x98] sm:$0xff] }
 0xe26   : > { %v2985_v42 = vpop.f32.mrb[82].mxu1 }
 0xe27   : > { %v5495_v0 = vadd.f32 %v2985_v42, %v5351_v17  ;;  %v2987_v36 = vpop.f32.mrb[83].mxu1 }
 0xe28   : > { %v5501_v45 = vadd.f32 %v2987_v36, %v5357_v22 }
 0xe29   : > { %v4404_v41 = vpack.c.bf16 %v5495_v0, %v5504_v44 }
 0xe2a   : > { %v4402_v37 = vpack.c.bf16 %v5501_v45, %v5498_v43  ;;  %v2991_v39 = vpop.f32.mrb[84].mxu1 }
 0xe2b   : > { %v2993_v46 = vpop.f32.mrb[85].mxu1  ;;  %v5520_v19 = vadd.f32 %v2991_v39, %v5376_v26  ;;  %v4192_v26 = vld [vmem:[%s5706_s7 + $0x98] sm:$0xff] }
 0xe2c   : > { %4403 = vmatprep.subr.bf16.mxu0 %v4402_v37  ;;  %v5514_v22 = vadd.f32 %v2993_v46, %v5370_v32  ;;  %v4190_v32 = vld [vmem:[%s5706_s7 + $0x88] sm:$0xff] }
 0xe2d   : > { %4405 = vmatpush1.bf16.msra.mxu0 %v4404_v41  ;;  %v3166_v41 = vpop.permute.xlu1 %3165 }
 0xe2e   : > { %v2997_v17 = vpop.f32.mrb[86].mxu1 }
 0xe2f   : > { %v5511_v18 = vadd.f32 %v2997_v17, %v5367_v29  ;;  %v2999_v50 = vpop.f32.mrb[87].mxu1  ;;  %v4189_v29 = vld [vmem:[%s5706_s7 + $0x80] sm:$0xff] }
 0xe30   : > { %v5517_v11 = vadd.f32 %v2999_v50, %v5373_v56  ;;  %v4191_v56 = vld [vmem:[%s5706_s7 + $0x90] sm:$0xff] }
 0xe31   : > { %v4408_v14 = vpack.c.bf16 %v5511_v18, %v5520_v19 }
 0xe32   : > { %v4406_v20 = vpack.c.bf16 %v5517_v11, %v5514_v22 }
 0xe34   : > { %4407 = vmatprep.subr.bf16.mxu0 %v4406_v20 }
 0xe35   : > { %4409 = vmatpush1.bf16.msra.mxu0 %v4408_v14 }
 0xe38   : > { %4193 = vmatmul.mubr.msk.f32.vlgmr.msra.gmra.mrb[80].mxu0 %vm1048_vm12, %v4189_v29 }
 0xe39   : > { %3105 = vmatprep.mubr.f32.mxu0 %v4524_v5 }
 0xe3c   : > { %4194 = vmatmul.mubr.msk.f32.gmra.mrb[82].mxu0 %vm1048_vm12, %v4190_v32 }
 0xe3d   : > { %3111 = vmatprep.mubr.f32.mxu0 %v4524_v5 }
 0xe40   : > { %4195 = vmatmul.mubr.msk.f32.gmra.mrb[84].mxu0 %vm1048_vm12, %v4191_v56  ;;  %v3171_v56 = vpop.permute.xlu0 %3170 }
 0xe41   : > { %3117 = vmatprep.mubr.f32.mxu0 %v4524_v5 }
 0xe44   : > { %4196 = vmatmul.mubr.msk.f32.gmra.mrb[86].mxu0 %vm1048_vm12, %v4192_v26 }
 0xe45   : > { %3254 = vmatprep.mubr.f32.mxu0 %v4524_v5 }
 0xf0b   : > { %v3101_v21 = vpop.f32.mrb[80].mxu0 }
 0xf0c   : > { %v3103_v51 = vpop.f32.mrb[81].mxu0  ;;  %v3132_v52 = vmul.f32 0.2, %v3101_v21  ;;  %vm3124_vm7 = vcmp.gt.f32.partialorder %v3101_v21, 0.0 }
 0xf0d   : > { %v3133_v53 = vmul.f32 0.2, %v3103_v51  ;;  %vm3125_vm8 = vcmp.gt.f32.partialorder %v3103_v51, 0.0 }
 0xf0e   : > { %v3140_v59 = vsel %vm3124_vm7, %v3101_v21, %v3132_v52 }
 0xf0f   : > { %v3107_v54 = vpop.f32.mrb[82].mxu0  ;;  %v3141_v1 = vsel %vm3125_vm8, %v3103_v51, %v3133_v53 }
 0xf10   : > { %vm3126_vm9 = vcmp.gt.f32.partialorder %v3107_v54, 0.0  ;;  %v3134_v27 = vmul.f32 0.2, %v3107_v54  ;;  %v3109_v55 = vpop.f32.mrb[83].mxu0 }
 0xf11   : > { %vm3127_vm11 = vcmp.gt.f32.partialorder %v3109_v55, 0.0  ;;  %v3135_v57 = vmul.f32 0.2, %v3109_v55 }
 0xf12   : > { %v3142_v63 = vsel %vm3126_vm9, %v3107_v54, %v3134_v27 }
 0xf13   : > { %v4412_v3 = vpack.c.bf16 %v3142_v63, %v3140_v59  ;;  %v3143_v4 = vsel %vm3127_vm11, %v3109_v55, %v3135_v57  ;;  %v3113_v40 = vpop.f32.mrb[84].mxu0 }
 0xf14   : > { %v3115_v6 = vpop.f32.mrb[85].mxu0  ;;  %v4410_v2 = vpack.c.bf16 %v3143_v4, %v3141_v1  ;;  %v3136_v7 = vmul.f32 0.2, %v3113_v40  ;;  %vm3128_vm13 = vcmp.gt.f32.partialorder %v3113_v40, 0.0  ;;  %v3176_v1 = vpop.permute.xlu1 %3175 }
 0xf15   : > { %v3137_v8 = vmul.f32 0.2, %v3115_v6  ;;  %vm3129_vm14 = vcmp.gt.f32.partialorder %v3115_v6, 0.0 }
 0xf16   : > { %4411 = vmatprep.subr.bf16.mxu0 %v4410_v2  ;;  %v3144_v15 = vsel %vm3128_vm13, %v3113_v40, %v3136_v7 }
 0xf17   : > { %v3119_v9 = vpop.f32.mrb[86].mxu0  ;;  %4413 = vmatpush1.bf16.msra.mxu0 %v4412_v3  ;;  %v3145_v24 = vsel %vm3129_vm14, %v3115_v6, %v3137_v8 }
 0xf18   : > { %vm3130_vm15 = vcmp.gt.f32.partialorder %v3119_v9, 0.0  ;;  %v3138_v16 = vmul.f32 0.2, %v3119_v9  ;;  %v3121_v10 = vpop.f32.mrb[87].mxu0 }
 0xf19   : > { %vm3131_vm0 = vcmp.gt.f32.partialorder %v3121_v10, 0.0  ;;  %v3139_v12 = vmul.f32 0.2, %v3121_v10 }
 0xf1a   : > { %v3146_v30 = vsel %vm3130_vm15, %v3119_v9, %v3138_v16 }
 0xf1b   : > { %v4416_v48 = vpack.c.bf16 %v3146_v30, %v3144_v15  ;;  %v3147_v49 = vsel %vm3131_vm0, %v3121_v10, %v3139_v12 }
 0xf1c   : > { %v4414_v58 = vpack.c.bf16 %v3147_v49, %v3145_v24  ;;  %v4210_v49 = vld [vmem:[%s5709_s10 + $0x108] sm:$0xff] }
 0xf1e   : > { %4415 = vmatprep.subr.bf16.mxu0 %v4414_v58  ;;  %v4211_v58 = vld [vmem:[%s5709_s10 + $0x110] sm:$0xff] }
 0xf1f   : > { %4417 = vmatpush1.bf16.msra.mxu0 %v4416_v48  ;;  %v4209_v48 = vld [vmem:[%s5709_s10 + $0x100] sm:$0xff] }
 0xf22   : > { %4205 = vmatmul.mubr.msk.f32.vlgmr.msra.gmra.mrb[88].mxu0 %vm806_vm10, %v4197_v38  ;;  %v4212_v38 = vld [vmem:[%s5709_s10 + $0x118] sm:$0xff] }
 0xf23   : > { %3260 = vmatprep.mubr.f32.mxu0 %v4524_v5 }
 0xf26   : > { %4206 = vmatmul.mubr.msk.f32.gmra.mrb[90].mxu0 %vm806_vm10, %v4198_v31  ;;  %v4213_v31 = vld [vmem:[%s5709_s10 + $0x120] sm:$0xff] }
 0xf27   : > { %3266 = vmatprep.mubr.f32.mxu0 %v4524_v5 }
 0xf2a   : > { %4207 = vmatmul.mubr.msk.f32.gmra.mrb[92].mxu0 %vm806_vm10, %v4199_v33  ;;  %v4214_v33 = vld [vmem:[%s5709_s10 + $0x128] sm:$0xff] }
 0xf2b   : > { %3272 = vmatprep.mubr.f32.mxu0 %v4524_v5 }
 0xf2e   : > { %4208 = vmatmul.mubr.msk.f32.gmra.mrb[94].mxu0 %vm806_vm10, %v4200_v34  ;;  %v4215_v34 = vld [vmem:[%s5709_s10 + $0x130] sm:$0xff] }
 0xf2f   : > { %3609 = vmatprep.mubr.f32.mxu0 %v4524_v5 }
 0xff5   : > { %v3256_v42 = vpop.f32.mrb[88].mxu0 }
 0xff6   : > { %v3257_v36 = vadd.f32 %v3256_v42, %v3161_v35  ;;  %v3258_v37 = vpop.f32.mrb[89].mxu0 }
 0xff7   : > { %v3259_v39 = vadd.f32 %v3258_v37, %v3161_v35  ;;  %v4216_v35 = vld [vmem:[%s5709_s10 + $0x138] sm:$0xff] }
 0xff8   : > { %v3287_v17 = vmul.f32 0.2, %v3257_v36  ;;  %vm3279_vm1 = vcmp.gt.f32.partialorder %v3257_v36, 0.0 }
 0xff9   : > { %v3262_v46 = vpop.f32.mrb[90].mxu0  ;;  %v3288_v14 = vmul.f32 0.2, %v3259_v39  ;;  %vm3280_vm2 = vcmp.gt.f32.partialorder %v3259_v39, 0.0 }
 0xffa   : > { %v3263_v50 = vadd.f32 %v3262_v46, %v3166_v41  ;;  %v3264_v20 = vpop.f32.mrb[91].mxu0  ;;  %v3295_v51 = vsel %vm3279_vm1, %v3257_v36, %v3287_v17 }
 0xffb   : > { %v3265_v29 = vadd.f32 %v3264_v20, %v3166_v41  ;;  %v3296_v57 = vsel %vm3280_vm2, %v3259_v39, %v3288_v14 }
 0xffc   : > { %vm3281_vm3 = vcmp.gt.f32.partialorder %v3263_v50, 0.0  ;;  %v3289_v32 = vmul.f32 0.2, %v3263_v50 }
 0xffd   : > { %vm3282_vm4 = vcmp.gt.f32.partialorder %v3265_v29, 0.0  ;;  %v3290_v26 = vmul.f32 0.2, %v3265_v29  ;;  %v3268_v21 = vpop.f32.mrb[92].mxu0 }
 0xffe   : > { %v3297_v52 = vsel %vm3281_vm3, %v3263_v50, %v3289_v32  ;;  %v3269_v53 = vadd.f32 %v3268_v21, %v3171_v56  ;;  %v3270_v54 = vpop.f32.mrb[93].mxu0 }
 0xfff   : > { %v4420_v27 = vpack.c.bf16 %v3297_v52, %v3295_v51  ;;  %v3271_v55 = vadd.f32 %v3270_v54, %v3171_v56  ;;  %v3298_v59 = vsel %vm3282_vm4, %v3265_v29, %v3290_v26 }
0x1000   : > { %v4418_v63 = vpack.c.bf16 %v3298_v59, %v3296_v57  ;;  %v3291_v4 = vmul.f32 0.2, %v3269_v53  ;;  %vm3283_vm5 = vcmp.gt.f32.partialorder %v3269_v53, 0.0 }
0x1001   : > { %v3274_v3 = vpop.f32.mrb[94].mxu0  ;;  %v3292_v2 = vmul.f32 0.2, %v3271_v55  ;;  %vm3284_vm6 = vcmp.gt.f32.partialorder %v3271_v55, 0.0 }
0x1002   : > { %v3275_v40 = vadd.f32 %v3274_v3, %v3176_v1  ;;  %v3276_v6 = vpop.f32.mrb[95].mxu0  ;;  %4419 = vmatprep.subr.bf16.mxu1 %v4418_v63  ;;  %v3299_v16 = vsel %vm3283_vm5, %v3269_v53, %v3291_v4 }
0x1003   : > { %v3277_v7 = vadd.f32 %v3276_v6, %v3176_v1  ;;  %4421 = vmatpush1.bf16.msra.mxu1 %v4420_v27  ;;  %v3300_v15 = vsel %vm3284_vm6, %v3271_v55, %v3292_v2  ;;  %v3470_v2 = vld [vmem:[%s5710_s11 + $0x28] sm:$0xff] }
0x1004   : > { %vm3285_vm7 = vcmp.gt.f32.partialorder %v3275_v40, 0.0  ;;  %v3293_v8 = vmul.f32 0.2, %v3275_v40 }
0x1005   : > { %vm3286_vm8 = vcmp.gt.f32.partialorder %v3277_v7, 0.0  ;;  %v3294_v9 = vmul.f32 0.2, %v3277_v7 }
0x1006   : > { %v3301_v10 = vsel %vm3285_vm7, %v3275_v40, %v3293_v8  ;;  %v3472_v8 = vld [vmem:[%s5710_s11 + $0x38] sm:$0xff] }
0x1007   : > { %v4424_v12 = vpack.c.bf16 %v3301_v10, %v3299_v16  ;;  %v3302_v30 = vsel %vm3286_vm8, %v3277_v7, %v3294_v9  ;;  %v3471_v7 = vld [vmem:[%s5710_s11 + $0x30] sm:$0xff]  ;;  %v3484_v9 = vpop.permute.xlu0 %3483 }
0x1008   : > { %v4422_v24 = vpack.c.bf16 %v3302_v30, %v3300_v15  ;;  %v3489_v30 = vpop.permute.xlu1 %3488 }
0x100a   : > { %4423 = vmatprep.subr.bf16.mxu1 %v4422_v24 }
0x100b   : > { %4425 = vmatpush1.bf16.msra.mxu1 %v4424_v12 }
0x100e   : > { %4217 = vmatmul.mubr.msk.f32.vlgmr.msra.gmra.mrb[88].mxu1 %vm806_vm10, %v4209_v48 }
0x100f   : > { %3406 = vmatprep.mubr.f32.mxu1 %v4524_v5 }
0x1012   : > { %4218 = vmatmul.mubr.msk.f32.gmra.mrb[90].mxu1 %vm806_vm10, %v4210_v49 }
0x1013   : > { %3412 = vmatprep.mubr.f32.mxu1 %v4524_v5 }
0x1016   : > { %4219 = vmatmul.mubr.msk.f32.gmra.mrb[92].mxu1 %vm806_vm10, %v4211_v58 }
0x1017   : > { %3418 = vmatprep.mubr.f32.mxu1 %v4524_v5 }
0x101a   : > { %4220 = vmatmul.mubr.msk.f32.gmra.mrb[94].mxu1 %vm806_vm10, %v4212_v38 }
0x101b   : > { %3424 = vmatprep.mubr.f32.mxu1 %v4524_v5 }
0x101e   : > { %4221 = vmatmul.mubr.msk.f32.gmra.mrb[96].mxu1 %vm806_vm10, %v4213_v31 }
0x101f   : > { %3430 = vmatprep.mubr.f32.mxu1 %v4524_v5 }
0x1022   : > { %4222 = vmatmul.mubr.msk.f32.gmra.mrb[98].mxu1 %vm806_vm10, %v4214_v33 }
0x1023   : > { %3436 = vmatprep.mubr.f32.mxu1 %v4524_v5 }
0x1026   : > { %4223 = vmatmul.mubr.msk.f32.gmra.mrb[100].mxu1 %vm806_vm10, %v4215_v34  ;;  %v3494_v34 = vpop.permute.xlu0 %3493 }
0x1027   : > { %3442 = vmatprep.mubr.f32.mxu1 %v4524_v5 }
0x102a   : > { %4224 = vmatmul.mubr.msk.f32.gmra.mrb[102].mxu1 %vm806_vm10, %v4216_v35 }
0x102b   : > { %3810 = vmatprep.mubr.f32.mxu1 %v4524_v5 }
0x10e1   : > { %v3402_v42 = vpop.f32.mrb[88].mxu1 }
0x10e2   : > { %v3404_v36 = vpop.f32.mrb[89].mxu1  ;;  %v3449_v39 = vadd.f32 %v3402_v42, %v5472_v25 }
0x10e3   : > { %v3450_v17 = vadd.f32 %v3404_v36, %v5466_v23 }
0x10e5   : > { %v3408_v37 = vpop.f32.mrb[90].mxu1 }
0x10e6   : > { %v3451_v41 = vadd.f32 %v3408_v37, %v5463_v13  ;;  %v3410_v46 = vpop.f32.mrb[91].mxu1 }
0x10e7   : > { %v3452_v50 = vadd.f32 %v3410_v46, %v5469_v28 }
0x10e8   : > { %v4428_v20 = vpack.c.bf16 %v3451_v41, %v3449_v39 }
0x10e9   : > { %v4426_v14 = vpack.c.bf16 %v3452_v50, %v3450_v17  ;;  %v3414_v29 = vpop.f32.mrb[92].mxu1 }
0x10ea   : > { %v3416_v32 = vpop.f32.mrb[93].mxu1  ;;  %v3453_v26 = vadd.f32 %v3414_v29, %v5488_v62  ;;  %v3499_v29 = vpop.permute.xlu1 %3498 }
0x10eb   : > { %4427 = vmatprep.subr.bf16.mxu0 %v4426_v14  ;;  %v3454_v25 = vadd.f32 %v3416_v32, %v5482_v47 }
0x10ec   : > { %4429 = vmatpush1.bf16.msra.mxu0 %v4428_v20 }
0x10ed   : > { %v3420_v56 = vpop.f32.mrb[94].mxu1 }
0x10ee   : > { %v3455_v21 = vadd.f32 %v3420_v56, %v5479_v60  ;;  %v3422_v51 = vpop.f32.mrb[95].mxu1 }
0x10ef   : > { %v3456_v13 = vadd.f32 %v3422_v51, %v5485_v61 }
0x10f0   : > { %v4432_v52 = vpack.c.bf16 %v3455_v21, %v3453_v26 }
0x10f1   : > { %v4430_v23 = vpack.c.bf16 %v3456_v13, %v3454_v25  ;;  %v3426_v53 = vpop.f32.mrb[96].mxu1 }
0x10f2   : > { %v3428_v28 = vpop.f32.mrb[97].mxu1  ;;  %v3457_v27 = vadd.f32 %v3426_v53, %v5504_v44 }
0x10f3   : > { %4431 = vmatprep.subr.bf16.mxu0 %v4430_v23  ;;  %v3458_v62 = vadd.f32 %v3428_v28, %v5498_v43 }
0x10f4   : > { %4433 = vmatpush1.bf16.msra.mxu0 %v4432_v52  ;;  %v3504_v52 = vpop.permute.xlu0 %3503 }
0x10f5   : > { %v3432_v54 = vpop.f32.mrb[98].mxu1 }
0x10f6   : > { %v3459_v55 = vadd.f32 %v3432_v54, %v5495_v0  ;;  %v3434_v57 = vpop.f32.mrb[99].mxu1 }
0x10f7   : > { %v3460_v60 = vadd.f32 %v3434_v57, %v5501_v45  ;;  %v3465_v45 = vld [vmem:[%s5710_s11] sm:$0xff] }
0x10f8   : > { %v4436_v59 = vpack.c.bf16 %v3459_v55, %v3457_v27 }
0x10f9   : > { %v4434_v47 = vpack.c.bf16 %v3460_v60, %v3458_v62  ;;  %v3438_v63 = vpop.f32.mrb[100].mxu1 }
0x10fa   : > { %v3440_v61 = vpop.f32.mrb[101].mxu1  ;;  %v3461_v3 = vadd.f32 %v3438_v63, %v5520_v19  ;;  %v3469_v19 = vld [vmem:[%s5710_s11 + $0x20] sm:$0xff]  ;;  %v3509_v63 = vpop.permute.xlu1 %3508 }
0x10fb   : > { %4435 = vmatprep.subr.bf16.mxu0 %v4434_v47  ;;  %v3462_v44 = vadd.f32 %v3440_v61, %v5514_v22  ;;  %v3467_v22 = vld [vmem:[%s5710_s11 + $0x10] sm:$0xff] }
0x10fc   : > { %4437 = vmatpush1.bf16.msra.mxu0 %v4436_v59 }
0x10fd   : > { %v3444_v1 = vpop.f32.mrb[102].mxu1 }
0x10fe   : > { %v3463_v4 = vadd.f32 %v3444_v1, %v5511_v18  ;;  %v3446_v40 = vpop.f32.mrb[103].mxu1  ;;  %v3466_v18 = vld [vmem:[%s5710_s11 + $0x8] sm:$0xff] }
0x10ff   : > { %v3464_v0 = vadd.f32 %v3446_v40, %v5517_v11  ;;  %v3468_v11 = vld [vmem:[%s5710_s11 + $0x18] sm:$0xff] }
0x1100   : > { %v4440_v6 = vpack.c.bf16 %v3463_v4, %v3461_v3 }
0x1101   : > { %v4438_v43 = vpack.c.bf16 %v3464_v0, %v3462_v44 }
0x1103   : > { %4439 = vmatprep.subr.bf16.mxu0 %v4438_v43 }
0x1104   : > { %4441 = vmatpush1.bf16.msra.mxu0 %v4440_v6  ;;  %v3514_v6 = vpop.permute.xlu0 %3513 }
0x1107   : > { %4225 = vmatmul.mubr.msk.f32.vlgmr.msra.gmra.mrb[96].mxu0 %vm1048_vm12, %v3465_v45 }
0x1108   : > { %3615 = vmatprep.mubr.f32.mxu0 %v4524_v5 }
0x110b   : > { %4226 = vmatmul.mubr.msk.f32.gmra.mrb[98].mxu0 %vm1048_vm12, %v3466_v18 }
0x110c   : > { %3621 = vmatprep.mubr.f32.mxu0 %v4524_v5 }
0x110f   : > { %4227 = vmatmul.mubr.msk.f32.gmra.mrb[100].mxu0 %vm1048_vm12, %v3467_v22 }
0x1110   : > { %3627 = vmatprep.mubr.f32.mxu0 %v4524_v5 }
0x1113   : > { %4228 = vmatmul.mubr.msk.f32.gmra.mrb[102].mxu0 %vm1048_vm12, %v3468_v11 }
0x1114   : > { %3633 = vmatprep.mubr.f32.mxu0 %v4524_v5 }
0x1117   : > { %4229 = vmatmul.mubr.msk.f32.gmra.mrb[104].mxu0 %vm1048_vm12, %v3469_v19 }
0x1118   : > { %3639 = vmatprep.mubr.f32.mxu0 %v4524_v5 }
0x111b   : > { %4230 = vmatmul.mubr.msk.f32.gmra.mrb[106].mxu0 %vm1048_vm12, %v3470_v2 }
0x111c   : > { %3645 = vmatprep.mubr.f32.mxu0 %v4524_v5 }
0x111f   : > { %4231 = vmatmul.mubr.msk.f32.gmra.mrb[108].mxu0 %vm1048_vm12, %v3471_v7 }
0x1120   : > { %3651 = vmatprep.mubr.f32.mxu0 %v4524_v5 }
0x1123   : > { %4232 = vmatmul.mubr.msk.f32.gmra.mrb[110].mxu0 %vm1048_vm12, %v3472_v8 }
0x1124   : > { %3933 = vmatprep.mubr.f32.mxu0 %v4524_v5 }
0x11da   : > { %v3611_v16 = vpop.f32.mrb[96].mxu0 }
0x11db   : > { %v3612_v10 = vadd.f32 %v3611_v16, %v3484_v9  ;;  %v3613_v12 = vpop.f32.mrb[97].mxu0 }
0x11dc   : > { %v3614_v15 = vadd.f32 %v3613_v12, %v3484_v9 }
0x11dd   : > { %v3674_v48 = vmul.f32 0.2, %v3612_v10  ;;  %vm3658_vm9 = vcmp.gt.f32.partialorder %v3612_v10, 0.0 }
0x11de   : > { %v3617_v24 = vpop.f32.mrb[98].mxu0  ;;  %v3675_v38 = vmul.f32 0.2, %v3614_v15  ;;  %vm3659_vm11 = vcmp.gt.f32.partialorder %v3614_v15, 0.0 }
0x11df   : > { %v3618_v49 = vadd.f32 %v3617_v24, %v3489_v30  ;;  %v3619_v58 = vpop.f32.mrb[99].mxu0  ;;  %v3690_v36 = vsel %vm3658_vm9, %v3612_v10, %v3674_v48  ;;  %v3519_v10 = vpop.permute.xlu1 %3518 }
0x11e0   : > { %v3620_v31 = vadd.f32 %v3619_v58, %v3489_v30  ;;  %v3691_v50 = vsel %vm3659_vm11, %v3614_v15, %v3675_v38 }
0x11e1   : > { %vm3660_vm13 = vcmp.gt.f32.partialorder %v3618_v49, 0.0  ;;  %v3676_v33 = vmul.f32 0.2, %v3618_v49 }
0x11e2   : > { %vm3661_vm14 = vcmp.gt.f32.partialorder %v3620_v31, 0.0  ;;  %v3677_v35 = vmul.f32 0.2, %v3620_v31  ;;  %v3623_v42 = vpop.f32.mrb[100].mxu0 }
0x11e3   : > { %v3692_v37 = vsel %vm3660_vm13, %v3618_v49, %v3676_v33  ;;  %v3624_v39 = vadd.f32 %v3623_v42, %v3494_v34  ;;  %v3625_v41 = vpop.f32.mrb[101].mxu0 }
0x11e4   : > { %v4444_v46 = vpack.c.bf16 %v3692_v37, %v3690_v36  ;;  %v3626_v17 = vadd.f32 %v3625_v41, %v3494_v34  ;;  %v3693_v20 = vsel %vm3661_vm14, %v3620_v31, %v3677_v35  ;;  %v3706_v37 = vld [vmem:[%s5712_s13] sm:$0xff]  ;;  %v3708_v41 = vld [vmem:[%s5712_s13 + $0x10] sm:$0xff] }
0x11e5   : > { %v4442_v14 = vpack.c.bf16 %v3693_v20, %v3691_v50  ;;  %v3678_v56 = vmul.f32 0.2, %v3624_v39  ;;  %vm3662_vm15 = vcmp.gt.f32.partialorder %v3624_v39, 0.0 }
0x11e6   : > { %v3629_v32 = vpop.f32.mrb[102].mxu0  ;;  %v3679_v51 = vmul.f32 0.2, %v3626_v17  ;;  %vm3663_vm0 = vcmp.gt.f32.partialorder %v3626_v17, 0.0 }
0x11e7   : > { %v3630_v26 = vadd.f32 %v3629_v32, %v3499_v29  ;;  %v3631_v21 = vpop.f32.mrb[103].mxu0  ;;  %4443 = vmatprep.subr.bf16.mxu1 %v4442_v14  ;;  %v3694_v28 = vsel %vm3662_vm15, %v3624_v39, %v3678_v56  ;;  %v3707_v39 = vld [vmem:[%s5712_s13 + $0x8] sm:$0xff]  ;;  %v3722_v32 = vpop.permute.xlu1 %3721 }
0x11e8   : > { %v3632_v25 = vadd.f32 %v3631_v21, %v3499_v29  ;;  %4445 = vmatpush1.bf16.msra.mxu1 %v4444_v46  ;;  %v3695_v60 = vsel %vm3663_vm0, %v3626_v17, %v3679_v51  ;;  %v3709_v46 = vld [vmem:[%s5712_s13 + $0x18] sm:$0xff]  ;;  %v3717_v17 = vpop.permute.xlu0 %3716 }
0x11e9   : > { %vm3664_vm1 = vcmp.gt.f32.partialorder %v3630_v26, 0.0  ;;  %v3680_v13 = vmul.f32 0.2, %v3630_v26 }
0x11ea   : > { %vm3665_vm2 = vcmp.gt.f32.partialorder %v3632_v25, 0.0  ;;  %v3681_v23 = vmul.f32 0.2, %v3632_v25  ;;  %v3635_v53 = vpop.f32.mrb[104].mxu0 }
0x11eb   : > { %v3696_v54 = vsel %vm3664_vm1, %v3630_v26, %v3680_v13  ;;  %v3636_v27 = vadd.f32 %v3635_v53, %v3504_v52  ;;  %v3637_v55 = vpop.f32.mrb[105].mxu0 }
0x11ec   : > { %v4448_v57 = vpack.c.bf16 %v3696_v54, %v3694_v28  ;;  %v3638_v62 = vadd.f32 %v3637_v55, %v3504_v52  ;;  %v3697_v59 = vsel %vm3665_vm2, %v3632_v25, %v3681_v23  ;;  %v3727_v52 = vpop.permute.xlu0 %3726 }
0x11ed   : > { %v4446_v47 = vpack.c.bf16 %v3697_v59, %v3695_v60  ;;  %v3682_v1 = vmul.f32 0.2, %v3636_v27  ;;  %vm3666_vm3 = vcmp.gt.f32.partialorder %v3636_v27, 0.0 }
0x11ee   : > { %v3641_v61 = vpop.f32.mrb[106].mxu0  ;;  %v3683_v40 = vmul.f32 0.2, %v3638_v62  ;;  %vm3667_vm4 = vcmp.gt.f32.partialorder %v3638_v62, 0.0 }
0x11ef   : > { %v3642_v3 = vadd.f32 %v3641_v61, %v3509_v63  ;;  %v3643_v4 = vpop.f32.mrb[107].mxu0  ;;  %4447 = vmatprep.subr.bf16.mxu1 %v4446_v47  ;;  %v3698_v18 = vsel %vm3666_vm3, %v3636_v27, %v3682_v1 }
0x11f0   : > { %v3644_v44 = vadd.f32 %v3643_v4, %v3509_v63  ;;  %4449 = vmatpush1.bf16.msra.mxu1 %v4448_v57  ;;  %v3699_v8 = vsel %vm3667_vm4, %v3638_v62, %v3683_v40  ;;  %v3732_v63 = vpop.permute.xlu1 %3731 }
0x11f1   : > { %vm3668_vm5 = vcmp.gt.f32.partialorder %v3642_v3, 0.0  ;;  %v3684_v0 = vmul.f32 0.2, %v3642_v3 }
0x11f2   : > { %vm3669_vm6 = vcmp.gt.f32.partialorder %v3644_v44, 0.0  ;;  %v3685_v43 = vmul.f32 0.2, %v3644_v44  ;;  %v3647_v45 = vpop.f32.mrb[108].mxu0 }
0x11f3   : > { %v3700_v22 = vsel %vm3668_vm5, %v3642_v3, %v3684_v0  ;;  %v3648_v11 = vadd.f32 %v3647_v45, %v3514_v6  ;;  %v3649_v19 = vpop.f32.mrb[109].mxu0 }
0x11f4   : > { %v4452_v2 = vpack.c.bf16 %v3700_v22, %v3698_v18  ;;  %v3650_v7 = vadd.f32 %v3649_v19, %v3514_v6  ;;  %v3701_v9 = vsel %vm3669_vm6, %v3644_v44, %v3685_v43 }
0x11f5   : > { %v4450_v16 = vpack.c.bf16 %v3701_v9, %v3699_v8  ;;  %v3686_v15 = vmul.f32 0.2, %v3648_v11  ;;  %vm3670_vm7 = vcmp.gt.f32.partialorder %v3648_v11, 0.0 }
0x11f6   : > { %v3653_v12 = vpop.f32.mrb[110].mxu0  ;;  %v3687_v48 = vmul.f32 0.2, %v3650_v7  ;;  %vm3671_vm8 = vcmp.gt.f32.partialorder %v3650_v7, 0.0 }
0x11f7   : > { %v3654_v30 = vadd.f32 %v3653_v12, %v3519_v10  ;;  %v3655_v24 = vpop.f32.mrb[111].mxu0  ;;  %4451 = vmatprep.subr.bf16.mxu1 %v4450_v16  ;;  %v3702_v31 = vsel %vm3670_vm7, %v3648_v11, %v3686_v15 }
0x11f8   : > { %v3656_v49 = vadd.f32 %v3655_v24, %v3519_v10  ;;  %4453 = vmatpush1.bf16.msra.mxu1 %v4452_v2  ;;  %v3703_v35 = vsel %vm3671_vm8, %v3650_v7, %v3687_v48  ;;  %v3859_v2 = vld [vmem:[%s5714_s15] sm:$0x7]  ;;  %v3864_v7 = vpop.permute.xlu0 %3863 }
0x11f9   : > { %vm3672_vm9 = vcmp.gt.f32.partialorder %v3654_v30, 0.0  ;;  %v3688_v58 = vmul.f32 0.2, %v3654_v30 }
0x11fa   : > { %vm3673_vm11 = vcmp.gt.f32.partialorder %v3656_v49, 0.0  ;;  %v3689_v38 = vmul.f32 0.2, %v3656_v49 }
0x11fb   : > { %v3704_v33 = vsel %vm3672_vm9, %v3654_v30, %v3688_v58 }
0x11fc   : > { %v4456_v34 = vpack.c.bf16 %v3704_v33, %v3702_v31  ;;  %v3705_v42 = vsel %vm3673_vm11, %v3656_v49, %v3689_v38 }
0x11fd   : > { %v4454_v36 = vpack.c.bf16 %v3705_v42, %v3703_v35 }
0x11ff   : > { %4455 = vmatprep.subr.bf16.mxu1 %v4454_v36 }
0x1200   : > { %4457 = vmatpush1.bf16.msra.mxu1 %v4456_v34 }
0x1203   : > { %4233 = vmatmul.mubr.msk.f32.vlgmr.msra.gmra.mrb[104].mxu1 %vm1048_vm12, %v3706_v37 }
0x1204   : > { %3816 = vmatprep.mubr.f32.mxu1 %v4524_v5 }
0x1207   : > { %4234 = vmatmul.mubr.msk.f32.gmra.mrb[106].mxu1 %vm1048_vm12, %v3707_v39 }
0x1208   : > { %3822 = vmatprep.mubr.f32.mxu1 %v4524_v5 }
0x120b   : > { %4235 = vmatmul.mubr.msk.f32.gmra.mrb[108].mxu1 %vm1048_vm12, %v3708_v41 }
0x120c   : > { %3828 = vmatprep.mubr.f32.mxu1 %v4524_v5 }
0x120f   : > { %4236 = vmatmul.mubr.msk.f32.gmra.mrb[110].mxu1 %vm1048_vm12, %v3709_v46 }
0x12d6   : > { %v3812_v50 = vpop.f32.mrb[104].mxu1 }
0x12d7   : > { %v3813_v20 = vadd.f32 %v3812_v50, %v3717_v17  ;;  %v3814_v14 = vpop.f32.mrb[105].mxu1 }
0x12d8   : > { %v3815_v29 = vadd.f32 %v3814_v14, %v3717_v17 }
0x12d9   : > { %v3843_v26 = vmul.f32 0.2, %v3813_v20  ;;  %vm3835_vm13 = vcmp.gt.f32.partialorder %v3813_v20, 0.0 }
0x12da   : > { %v3818_v56 = vpop.f32.mrb[106].mxu1  ;;  %v3844_v25 = vmul.f32 0.2, %v3815_v29  ;;  %vm3836_vm14 = vcmp.gt.f32.partialorder %v3815_v29, 0.0 }
0x12db   : > { %v3819_v21 = vadd.f32 %v3818_v56, %v3722_v32  ;;  %v3820_v51 = vpop.f32.mrb[107].mxu1  ;;  %v3851_v28 = vsel %vm3835_vm13, %v3813_v20, %v3843_v26 }
0x12dc   : > { %v3821_v13 = vadd.f32 %v3820_v51, %v3722_v32  ;;  %v3852_v60 = vsel %vm3836_vm14, %v3815_v29, %v3844_v25 }
0x12dd   : > { %vm3837_vm15 = vcmp.gt.f32.partialorder %v3819_v21, 0.0  ;;  %v3845_v5 = vmul.f32 0.2, %v3819_v21 }
0x12de   : > { %vm3838_vm0 = vcmp.gt.f32.partialorder %v3821_v13, 0.0  ;;  %v3846_v23 = vmul.f32 0.2, %v3821_v13  ;;  %v3824_v53 = vpop.f32.mrb[108].mxu1 }
0x12df   : > { %v3853_v54 = vsel %vm3837_vm15, %v3819_v21, %v3845_v5  ;;  %v3825_v27 = vadd.f32 %v3824_v53, %v3727_v52  ;;  %v3826_v55 = vpop.f32.mrb[109].mxu1 }
0x12e0   : > { %v4460_v57 = vpack.c.bf16 %v3853_v54, %v3851_v28  ;;  %v3827_v62 = vadd.f32 %v3826_v55, %v3727_v52  ;;  %v3854_v59 = vsel %vm3838_vm0, %v3821_v13, %v3846_v23 }
0x12e1   : > { %v4458_v47 = vpack.c.bf16 %v3854_v59, %v3852_v60  ;;  %v3847_v1 = vmul.f32 0.2, %v3825_v27  ;;  %vm3839_vm12 = vcmp.gt.f32.partialorder %v3825_v27, 0.0 }
0x12e2   : > { %v3830_v61 = vpop.f32.mrb[110].mxu1  ;;  %v3848_v40 = vmul.f32 0.2, %v3827_v62  ;;  %vm3840_vm1 = vcmp.gt.f32.partialorder %v3827_v62, 0.0 }
0x12e3   : > { %v3831_v3 = vadd.f32 %v3830_v61, %v3732_v63  ;;  %v3832_v4 = vpop.f32.mrb[111].mxu1  ;;  %4459 = vmatprep.subr.bf16.mxu0 %v4458_v47  ;;  %v3855_v43 = vsel %vm3839_vm12, %v3825_v27, %v3847_v1 }
0x12e4   : > { %v3833_v44 = vadd.f32 %v3832_v4, %v3732_v63  ;;  %4461 = vmatpush1.bf16.msra.mxu0 %v4460_v57  ;;  %v3856_v22 = vsel %vm3840_vm1, %v3827_v62, %v3848_v40 }
0x12e5   : > { %vm3841_vm2 = vcmp.gt.f32.partialorder %v3831_v3, 0.0  ;;  %v3849_v0 = vmul.f32 0.2, %v3831_v3 }
0x12e6   : > { %vm3842_vm3 = vcmp.gt.f32.partialorder %v3833_v44, 0.0  ;;  %v3850_v6 = vmul.f32 0.2, %v3833_v44 }
0x12e7   : > { %v3857_v45 = vsel %vm3841_vm2, %v3831_v3, %v3849_v0 }
0x12e8   : > { %v4464_v18 = vpack.c.bf16 %v3857_v45, %v3855_v43  ;;  %v3858_v11 = vsel %vm3842_vm3, %v3833_v44, %v3850_v6 }
0x12e9   : > { %v4462_v19 = vpack.c.bf16 %v3858_v11, %v3856_v22 }
0x12eb   : > { %4463 = vmatprep.subr.bf16.mxu0 %v4462_v19 }
0x12ec   : > { %4465 = vmatpush1.bf16.msra.mxu0 %v4464_v18 }
0x12ef   : > { %4237 = vmatmul.mubr.msk.f32.vlgmr.msra.gmra.mrb[112].mxu0 %vm806_vm10, %v3859_v2 }
0x13c2   : > { %v3935_v8 = vpop.f32.mrb[112].mxu0 }
0x13c3   : > { %v3936_v9 = vadd.f32 %v3935_v8, %v3864_v7  ;;  %v3937_v16 = vpop.f32.mrb[113].mxu0 }
0x13c4   : > { %v3938_v10 = vadd.f32 %v3937_v16, %v3864_v7 }
0x13c5   : > { %4495 = vtanh.f32 %v3936_v9 }
0x13c6   : > { %4497 = vtanh.f32 %v3938_v10 }
0x13cf   : > { %v4496_v12 = vpop.eup %4495 }
0x13d0   : > { %v4498_v15 = vpop.eup %4497 }
0x13d1   : > { %v3944_v30 = vcombine.low %v4496_v12, %v4498_v15 }
0x13d3   : > { %3946 = vst [vmem:[%s586_s22] sm:$0x77] %v3944_v30 }
0x13d4 PF: > { %s27_s26 = sadd.s32 1, %s4521_s26   ;;  %s5724_s24 = smov %s4517_s25 }
0x13d5   : > { %p24_p5 = scmp.ge.s32.totalorder %s27_s26, 4   ;;  %s5725_s25 = smov %s5727_s27 }
0x13d7   :  { %26 = sbr.rel (!%p24_p5) target bundleno = 4 (0x4), region = 134 }

</bundles_post_ra>
